<compile_context>
chip_gen: v7x
topology: tpu7x:2x2x1
jax: 0.10.0
libtpu: 0.0.40
codegen_flags: <defaults>
</compile_context>

<pallas_src>
import functools
import math

import jax
import jax.numpy as jnp
from jax.experimental import pallas as pl
from jax.experimental.pallas import tpu as pltpu

EPS = 1e-6          # bias_epsilon in the PyTorch module
NEG_SLOPE = 0.2     # LeakyReLU(negative_slope=0.2)


# ----------------------------------------------------------------------------
# In-kernel helpers (operate on f32 arrays in the (3, C, N) layout)
# ----------------------------------------------------------------------------

def _vec_layernorm(x, eps, recip):
    """VecLayerNorm(mode='sim3'): LayerNorm over channel norms, rescale vectors."""
    n = jnp.sqrt(jnp.sum(x * x, axis=0, keepdims=True))        # (1, C, N)
    mean = jnp.mean(n, axis=1, keepdims=True)                   # (1, 1, N)
    var = jnp.mean((n - mean) ** 2, axis=1, keepdims=True)
    n_ln = (n - mean) * jax.lax.rsqrt(var + eps)
    return x * (n_ln * recip(n + eps))


def _vec_linear(x, w_ref, cast):
    """VecLinear: x (3, Cin, N), w_ref (Cout, Cin) [PyTorch orientation]
    -> (3, Cout, N).  One batched (over the 3 vector components) NN matmul."""
    w = cast(w_ref[...].astype(jnp.float32))
    wb = jnp.broadcast_to(w, (3,) + w.shape)                    # tiny broadcast
    return jnp.einsum('vdc,vcn->vdn', wb, cast(x),
                      preferred_element_type=jnp.float32)


def _vn_attention(xq, xkv, wq_ref, wk_ref, wv_ref, wo_ref, num_heads, cast, recip):
    """VN multi-head attention.  xq: (3, C, Nq), xkv: (3, C, Nk) -> (3, C, Nq)."""
    qp = _vec_linear(xq, wq_ref, cast)          # (3, C, Nq)
    kp = _vec_linear(xkv, wk_ref, cast)         # (3, C, Nk)
    vp = _vec_linear(xkv, wv_ref, cast)         # (3, C, Nk)

    c = qp.shape[1]
    dh = c // num_heads
    nq, nk = qp.shape[-1], kp.shape[-1]
    scale = 1.0 / math.sqrt(3.0 * dh)

    # logits[h,q,k] = sum_{v,d} qp[v, h*dh+d, q] * kp[v, h*dh+d, k]
    # Heads batched in one dot_general per vector component (NN matmuls with
    # natural output order -> no in-kernel transposes of big tensors).
    parts = []
    for v in range(3):
        qv_h = jnp.swapaxes(qp[v].reshape(num_heads, dh, nq), -1, -2)  # (H,Nq,dh)
        kv_h = kp[v].reshape(num_heads, dh, nk)                        # (H,dh,Nk)
        parts.append(jnp.einsum('hqd,hdk->hqk', cast(qv_h), cast(kv_h),
                                preferred_element_type=jnp.float32))
    logits = (parts[0] + parts[1] + parts[2]) * scale                  # (H,Nq,Nk)

    m = jnp.max(logits, axis=-1, keepdims=True)
    p = jnp.exp(logits - m)
    attn = p * recip(jnp.sum(p, axis=-1, keepdims=True))               # (H,Nq,Nk)
    attn_c = cast(attn)

    outs = []
    for v in range(3):
        vv_h = vp[v].reshape(num_heads, dh, nk)                        # (H,dh,Nk)
        ov = jnp.einsum('hdk,hqk->hdq', cast(vv_h), attn_c,
                        preferred_element_type=jnp.float32)            # (H,dh,Nq)
        outs.append(ov.reshape(c, nq))                                 # heads merged
    out = jnp.stack(outs, axis=0)                                      # (3, C, Nq)
    return _vec_linear(out, wo_ref, cast)                              # final proj


def _vn_mlp(x, w1_ref, wd_ref, w2_ref, eps, neg_slope, cast, recip):
    """VecLinear(C->Ch) -> VecActivation(VN-LeakyReLU) -> VecLinear(Ch->C)."""
    h = _vec_linear(x, w1_ref, cast)            # (3, Ch, N)
    d = _vec_linear(h, wd_ref, cast)            # learned direction, (3, Ch, N)
    dot = jnp.sum(h * d, axis=0, keepdims=True)             # (1, Ch, N)
    dsq = jnp.sum(d * d, axis=0, keepdims=True)
    h_flip = h - (dot * recip(dsq + eps)) * d
    act = neg_slope * h + (1.0 - neg_slope) * jnp.where(dot >= 0.0, h, h_flip)
    return _vec_linear(act, w2_ref, cast)       # (3, C, N)


# ----------------------------------------------------------------------------
# Pallas kernels
# ----------------------------------------------------------------------------

def _vec_layernorm_kernel(x_ref, o_ref, *, eps):
    x = x_ref[0].astype(jnp.float32)            # (3, C, N)
    o_ref[0] = _vec_layernorm(x, eps, lambda t: 1.0 / t).astype(o_ref.dtype)


def _fused_block_kernel(q_tile_ref, q_full_ref, nv_ref,
                        sa_wq, sa_wk, sa_wv, sa_wo,
                        ca_wq, ca_wk, ca_wv, ca_wo,
                        w1, wd, w2,
                        o_ref, *, num_heads, eps, neg_slope, fast, single_tile):
    """One full VecCrossAttnBlockApi layer, fused, for one (batch, q-tile)."""
    if fast:
        cast = lambda t: t.astype(jnp.bfloat16)
        recip = lambda t: pl.reciprocal(t, approx=True)     # EUP, nearly free
    else:
        cast = lambda t: t
        recip = lambda t: 1.0 / t

    x = q_tile_ref[0].astype(jnp.float32)        # (3, C, tq)  residual stream
    q_full = q_full_ref[0].astype(jnp.float32)   # (3, C, Nq)  self-attn K/V src
    nv = nv_ref[0].astype(jnp.float32)           # (3, C, Nv)  hoisted norm_v(v)

    # --- self attention (norm1; LayerScale / transform_restore are identity) --
    ln_kv = _vec_layernorm(q_full, eps, recip)
    ln_q = ln_kv if single_tile else _vec_layernorm(x, eps, recip)
    x = x + _vn_attention(ln_q, ln_kv, sa_wq, sa_wk, sa_wv, sa_wo,
                          num_heads, cast, recip)

    # --- cross attention (norm_q on updated x; norm_v precomputed & hoisted) --
    x = x + _vn_attention(_vec_layernorm(x, eps, recip), nv,
                          ca_wq, ca_wk, ca_wv, ca_wo, num_heads, cast, recip)

    # --- VN MLP (norm2) -------------------------------------------------------
    x = x + _vn_mlp(_vec_layernorm(x, eps, recip), w1, wd, w2,
                    eps, neg_slope, cast, recip)

    o_ref[0] = x.astype(o_ref.dtype)


# ----------------------------------------------------------------------------
# pallas_call wrappers
# ----------------------------------------------------------------------------

def vec_layernorm(x, eps=EPS):
    """x: [B, 3, C, N] working layout."""
    B, V, C, N = x.shape
    return pl.pallas_call(
        functools.partial(_vec_layernorm_kernel, eps=eps),
        out_shape=jax.ShapeDtypeStruct(x.shape, x.dtype),
        grid=(B,),
        in_specs=[pl.BlockSpec((1, V, C, N), lambda b: (b, 0, 0, 0))],
        out_specs=pl.BlockSpec((1, V, C, N), lambda b: (b, 0, 0, 0)),
        compiler_params=pltpu.CompilerParams(dimension_semantics=("parallel",)),
    )(x)


def fused_vec_cross_attn_block(q, norm_v, p, num_heads, q_tile, fast):
    """One VecCrossAttnBlockApi forward as a single fused pallas_call.
    q, norm_v in working layout [B, 3, C, N]."""
    B, V, C, Nq = q.shape
    Nv = norm_v.shape[-1]
    Ch = p['mlp']['w1'].shape[0]
    n_tiles = Nq // q_tile

    def act_spec(n):
        return pl.BlockSpec((1, V, C, n), lambda b, i: (b, 0, 0, 0))

    def w_spec(r, c):
        return pl.BlockSpec((r, c), lambda b, i: (0, 0))

    kernel = functools.partial(
        _fused_block_kernel, num_heads=num_heads, eps=EPS, neg_slope=NEG_SLOPE,
        fast=fast, single_tile=(n_tiles == 1))

    return pl.pallas_call(
        kernel,
        out_shape=jax.ShapeDtypeStruct((B, V, C, Nq), q.dtype),
        grid=(B, n_tiles),
        in_specs=[
            pl.BlockSpec((1, V, C, q_tile), lambda b, i: (b, 0, 0, i)),  # q tile
            act_spec(Nq),                                                # full q
            act_spec(Nv),                                                # norm_v
            w_spec(C, C), w_spec(C, C), w_spec(C, C), w_spec(C, C),      # self-attn
            w_spec(C, C), w_spec(C, C), w_spec(C, C), w_spec(C, C),      # cross-attn
            w_spec(Ch, C), w_spec(Ch, Ch), w_spec(C, Ch),                # VN-MLP
        ],
        out_specs=pl.BlockSpec((1, V, C, q_tile), lambda b, i: (b, 0, 0, i)),
        compiler_params=pltpu.CompilerParams(
            dimension_semantics=("parallel", "parallel"),   # B x Nq-tiles (2-TC on v7x)
            vmem_limit_bytes=48 * 1024 * 1024),
    )(q, q, norm_v,
      p['sa']['wq'], p['sa']['wk'], p['sa']['wv'], p['sa']['wo'],
      p['ca']['wq'], p['ca']['wk'], p['ca']['wv'], p['ca']['wo'],
      p['mlp']['w1'], p['mlp']['wd'], p['mlp']['w2'])


def _pick_q_tile(nq):
    # Prefer a lane-aligned tile that also yields >= 2 tiles (second parallel
    # grid axis for the 2 TensorCores on v7x); otherwise one full-size tile.
    for t in (256, 128):
        if nq % t == 0 and nq // t >= 2:
            return t
    return nq


# ----------------------------------------------------------------------------
# Model glue
# ----------------------------------------------------------------------------

@functools.partial(
    jax.jit,
    static_argnames=("num_heads", "k", "denoise_length", "compute_dtype"))
def point_transformer_decoder(q, v, q_pos, v_pos, params, num_heads, k,
                              denoise_length=None, compute_dtype=jnp.float32):
    """q, v in PyTorch layout [B, N, C, 3]; returns the same layout."""
    assert denoise_length is None  # TODO(synk): denoise attention mask not implemented
    # knn_point indices (self_attn_idx / cross_attn_idx) are only consumed by
    # the 'vngraph' local attention; with block style 'vnattn' they are unused,
    # so they are not computed at all.
    del q_pos, v_pos, k

    qw = jnp.transpose(q, (0, 3, 2, 1))        # [B,N,C,3] -> [B,3,C,N]
    vw = jnp.transpose(v, (0, 3, 2, 1))
    assert qw.shape[2] % num_heads == 0

    # norm_v(v) is identical in every layer (v never changes) -> hoist it.
    norm_v = vec_layernorm(vw)

    q_tile = _pick_q_tile(qw.shape[-1])
    fast = jnp.dtype(compute_dtype) == jnp.dtype(jnp.bfloat16)
    for p in params:
        qw = fused_vec_cross_attn_block(qw, norm_v, p, num_heads, q_tile, fast)
    return jnp.transpose(qw, (0, 3, 2, 1))     # back to [B,N,C,3]


# ----------------------------------------------------------------------------
# Parameter init (deterministic, trunc_normal std=0.02 like _init_weights).
# Weights are stored in the PyTorch VecLinear orientation (C_out, C_in) and
# applied as y = W @ x over the channel axis.
# ----------------------------------------------------------------------------

def _trunc_normal(key, shape, std=0.02):
    return std * jax.random.truncated_normal(key, -2.0, 2.0, shape, jnp.float32)


def init_params(key, depth, C, Ch):
    params = []
    for dkey in jax.random.split(key, depth):
        ks = jax.random.split(dkey, 11)
        params.append({
            'sa': dict(wq=_trunc_normal(ks[0], (C, C)),
                       wk=_trunc_normal(ks[1], (C, C)),
                       wv=_trunc_normal(ks[2], (C, C)),
                       wo=_trunc_normal(ks[3], (C, C))),
            'ca': dict(wq=_trunc_normal(ks[4], (C, C)),
                       wk=_trunc_normal(ks[5], (C, C)),
                       wv=_trunc_normal(ks[6], (C, C)),
                       wo=_trunc_normal(ks[7], (C, C))),
            'mlp': dict(w1=_trunc_normal(ks[8], (Ch, C)),
                        wd=_trunc_normal(ks[9], (Ch, Ch)),
                        w2=_trunc_normal(ks[10], (C, Ch))),
        })
    return params


# ----------------------------------------------------------------------------
# Pure-JAX reference (for correctness check of the Pallas kernels)
# ----------------------------------------------------------------------------

def _ref_layernorm(x, eps=EPS):
    n = jnp.sqrt(jnp.sum(x * x, axis=1, keepdims=True))
    mean = jnp.mean(n, axis=-1, keepdims=True)
    var = jnp.mean((n - mean) ** 2, axis=-1, keepdims=True)
    return x * ((n - mean) * jax.lax.rsqrt(var + eps) / (n + eps))


def _ref_attention(nq, nkv, w, H):
    qp = jnp.einsum('bvnc,dc->bvnd', nq, w['wq'])
    kp = jnp.einsum('bvnc,dc->bvnd', nkv, w['wk'])
    vp = jnp.einsum('bvnc,dc->bvnd', nkv, w['wv'])
    B, V, Nq, C = qp.shape
    Nk = kp.shape[2]
    dh = C // H
    qh = qp.reshape(B, V, Nq, H, dh)
    kh = kp.reshape(B, V, Nk, H, dh)
    vh = vp.reshape(B, V, Nk, H, dh)
    scale = 1.0 / math.sqrt(3.0 * dh)
    logits = jnp.einsum('bvqhd,bvkhd->bhqk', qh, kh) * scale
    attn = jax.nn.softmax(logits, axis=-1)
    oh = jnp.einsum('bhqk,bvkhd->bvqhd', attn, vh)
    o = oh.reshape(B, V, Nq, C)
    return jnp.einsum('bvnc,dc->bvnd', o, w['wo'])


def _ref_mlp(x, w, eps=EPS, slope=NEG_SLOPE):
    h = jnp.einsum('bvnc,dc->bvnd', x, w['w1'])
    d = jnp.einsum('bvnc,dc->bvnd', h, w['wd'])
    dot = jnp.sum(h * d, axis=1, keepdims=True)
    dsq = jnp.sum(d * d, axis=1, keepdims=True)
    h_flip = h - (dot / (dsq + eps)) * d
    act = slope * h + (1 - slope) * jnp.where(dot >= 0, h, h_flip)
    return jnp.einsum('bvnc,dc->bvnd', act, w['w2'])


def _ref_decoder(q, v, params, H):
    qw = jnp.transpose(q, (0, 3, 1, 2))    # [B,N,C,3] -> [B,3,N,C]
    vw = jnp.transpose(v, (0, 3, 1, 2))
    nv = _ref_layernorm(vw)
    for p in params:
        qw = qw + _ref_attention(_ref_layernorm(qw), _ref_layernorm(qw), p['sa'], H)
        qw = qw + _ref_attention(_ref_layernorm(qw), nv, p['ca'], H)
        qw = qw + _ref_mlp(_ref_layernorm(qw), p['mlp'])
    return jnp.transpose(qw, (0, 2, 3, 1))


# ----------------------------------------------------------------------------
# Main
# ----------------------------------------------------------------------------

if __name__ == "__main__":
    B, Nq, Nv = 2, 16, 16
    C, H, depth, mlp_ratio, k = 32, 4, 2, 4.0, 4
    Ch = int(C * mlp_ratio)

    key = jax.random.PRNGKey(0)
    kq, kv_, kqp, kvp, kpar = jax.random.split(key, 5)
    q = jax.random.normal(kq, (B, Nq, C, 3), jnp.float32)     # PyTorch layout [B,N,C,3]
    v = jax.random.normal(kv_, (B, Nv, C, 3), jnp.float32)
    q_pos = jax.random.normal(kqp, (B, Nq, 3), jnp.float32)
    v_pos = jax.random.normal(kvp, (B, Nv, 3), jnp.float32)

    params = init_params(kpar, depth, C, Ch)

    # f32 path (exact): check against the pure-JAX reference.
    out = point_transformer_decoder(q, v, q_pos, v_pos, params,
                                    num_heads=H, k=k, denoise_length=None)
    out = jax.block_until_ready(out)
    assert out.shape == q.shape, out.shape
    assert bool(jnp.all(jnp.isfinite(out)))

    ref = jax.block_until_ready(_ref_decoder(q, v, params, H))
    assert bool(jnp.allclose(out, ref, atol=3e-4, rtol=3e-4)), (
        float(jnp.max(jnp.abs(out - ref))))

    # bf16 MXU fast path (bf16 matmul operands, f32 accumulation/softmax,
    # EUP approx reciprocals) -- loose tolerance against the f32 reference.
    out_bf = point_transformer_decoder(q, v, q_pos, v_pos, params,
                                       num_heads=H, k=k, denoise_length=None,
                                       compute_dtype=jnp.bfloat16)
    out_bf = jax.block_until_ready(out_bf)
    assert bool(jnp.all(jnp.isfinite(out_bf)))
    assert bool(jnp.allclose(out_bf, ref, atol=5e-2, rtol=5e-2)), (
        float(jnp.max(jnp.abs(out_bf - ref))))

    print("KERNEL_OK")
</pallas_src>

<mosaic_0001>
module attributes {stable_mosaic.version = 11 : i64} {
  func.func @_vec_layernorm_kernel(%arg0: i32, %arg1: memref<1x3x32x16xf32, #tpu.memory_space<vmem>>, %arg2: memref<1x3x32x16xf32, #tpu.memory_space<vmem>>) attributes {dimension_semantics = [#tpu.dimension_semantics<parallel>], iteration_bounds = array<i64: 2>, scalar_prefetch = 0 : i64, scratch_operands = 0 : i64, tpu.core_type = #tpu.core_type<tc>, window_params = [{transform_indices = @transform_0, window_bounds = array<i64: 1, 3, 32, 16>}, {transform_indices = @transform_1, window_bounds = array<i64: 1, 3, 32, 16>}]} {
    %c0 = arith.constant 0 : index
    %c0_0 = arith.constant 0 : index
    %c0_1 = arith.constant 0 : index
    %c0_2 = arith.constant 0 : index
    %0 = vector.load %arg1[%c0, %c0_0, %c0_1, %c0_2] : memref<1x3x32x16xf32, #tpu.memory_space<vmem>>, vector<1x3x32x16xf32>
    %1 = vector.shape_cast %0 : vector<1x3x32x16xf32> to vector<3x32x16xf32>
    %2 = arith.mulf %1, %1 : vector<3x32x16xf32>
    %cst = arith.constant dense<0.000000e+00> : vector<32x16xf32>
    %3 = vector.multi_reduction <add>, %2, %cst [0] : vector<3x32x16xf32> to vector<32x16xf32>
    %4 = vector.shape_cast %3 : vector<32x16xf32> to vector<1x32x16xf32>
    %5 = math.sqrt %4 : vector<1x32x16xf32>
    %cst_3 = arith.constant dense<0.000000e+00> : vector<1x16xf32>
    %6 = vector.multi_reduction <add>, %5, %cst_3 [1] : vector<1x32x16xf32> to vector<1x16xf32>
    %7 = vector.shape_cast %6 : vector<1x16xf32> to vector<1x1x16xf32>
    %cst_4 = arith.constant 3.200000e+01 : f32
    %8 = vector.broadcast %cst_4 : f32 to vector<1x1x16xf32>
    %9 = arith.divf %7, %8 : vector<1x1x16xf32>
    %10 = vector.broadcast %9 : vector<1x1x16xf32> to vector<1x32x16xf32>
    %11 = arith.subf %5, %10 : vector<1x32x16xf32>
    %12 = arith.mulf %11, %11 : vector<1x32x16xf32>
    %cst_5 = arith.constant dense<0.000000e+00> : vector<1x16xf32>
    %13 = vector.multi_reduction <add>, %12, %cst_5 [1] : vector<1x32x16xf32> to vector<1x16xf32>
    %14 = vector.shape_cast %13 : vector<1x16xf32> to vector<1x1x16xf32>
    %cst_6 = arith.constant 3.200000e+01 : f32
    %15 = vector.broadcast %cst_6 : f32 to vector<1x1x16xf32>
    %16 = arith.divf %14, %15 : vector<1x1x16xf32>
    %17 = vector.broadcast %9 : vector<1x1x16xf32> to vector<1x32x16xf32>
    %18 = arith.subf %5, %17 : vector<1x32x16xf32>
    %cst_7 = arith.constant 9.99999997E-7 : f32
    %19 = vector.broadcast %cst_7 : f32 to vector<1x1x16xf32>
    %20 = arith.addf %16, %19 : vector<1x1x16xf32>
    %21 = math.rsqrt %20 : vector<1x1x16xf32>
    %22 = vector.broadcast %21 : vector<1x1x16xf32> to vector<1x32x16xf32>
    %23 = arith.mulf %18, %22 : vector<1x32x16xf32>
    %cst_8 = arith.constant 9.99999997E-7 : f32
    %24 = vector.broadcast %cst_8 : f32 to vector<1x32x16xf32>
    %25 = arith.addf %5, %24 : vector<1x32x16xf32>
    %cst_9 = arith.constant 1.000000e+00 : f32
    %26 = vector.broadcast %cst_9 : f32 to vector<1x32x16xf32>
    %27 = arith.divf %26, %25 : vector<1x32x16xf32>
    %28 = arith.mulf %23, %27 : vector<1x32x16xf32>
    %29 = vector.broadcast %28 : vector<1x32x16xf32> to vector<3x32x16xf32>
    %30 = arith.mulf %1, %29 : vector<3x32x16xf32>
    %c0_10 = arith.constant 0 : index
    %c0_11 = arith.constant 0 : index
    %c0_12 = arith.constant 0 : index
    %c0_13 = arith.constant 0 : index
    %31 = vector.load %arg2[%c0_10, %c0_11, %c0_12, %c0_13] : memref<1x3x32x16xf32, #tpu.memory_space<vmem>>, vector<1x3x32x16xf32>
    %32 = vector.shape_cast %31 : vector<1x3x32x16xf32> to vector<3x32x16xf32>
    %33 = vector.shape_cast %30 : vector<3x32x16xf32> to vector<1x3x32x16xf32>
    tpu.vector_store %arg2[%c0_10, %c0_11, %c0_12, %c0_13], %33 {strides = array<i32>} : memref<1x3x32x16xf32, #tpu.memory_space<vmem>>, vector<1x3x32x16xf32>,
    return
  }
  func.func @transform_0(%arg0: i32) -> (i32, i32, i32, i32) {
    %c0_i32 = arith.constant 0 : i32
    %c0_i32_0 = arith.constant 0 : i32
    %c0_i32_1 = arith.constant 0 : i32
    %c0_i32_2 = arith.constant 0 : i32
    return %arg0, %c0_i32, %c0_i32_0, %c0_i32_1 : i32, i32, i32, i32
  }
  func.func @transform_1(%arg0: i32) -> (i32, i32, i32, i32) {
    %c0_i32 = arith.constant 0 : i32
    %c0_i32_0 = arith.constant 0 : i32
    %c0_i32_1 = arith.constant 0 : i32
    %c0_i32_2 = arith.constant 0 : i32
    return %arg0, %c0_i32, %c0_i32_0, %c0_i32_1 : i32, i32, i32, i32
  }
}

module attributes {stable_mosaic.version = 11 : i64} {
  func.func @_fused_block_kernel(%arg0: i32, %arg1: i32, %arg2: memref<1x3x32x16xf32, #tpu.memory_space<vmem>>, %arg3: memref<1x3x32x16xf32, #tpu.memory_space<vmem>>, %arg4: memref<1x3x32x16xf32, #tpu.memory_space<vmem>>, %arg5: memref<32x32xf32, #tpu.memory_space<vmem>>, %arg6: memref<32x32xf32, #tpu.memory_space<vmem>>, %arg7: memref<32x32xf32, #tpu.memory_space<vmem>>, %arg8: memref<32x32xf32, #tpu.memory_space<vmem>>, %arg9: memref<32x32xf32, #tpu.memory_space<vmem>>, %arg10: memref<32x32xf32, #tpu.memory_space<vmem>>, %arg11: memref<32x32xf32, #tpu.memory_space<vmem>>, %arg12: memref<32x32xf32, #tpu.memory_space<vmem>>, %arg13: memref<128x32xf32, #tpu.memory_space<vmem>>, %arg14: memref<128x128xf32, #tpu.memory_space<vmem>>, %arg15: memref<32x128xf32, #tpu.memory_space<vmem>>, %arg16: memref<1x3x32x16xf32, #tpu.memory_space<vmem>>) attributes {dimension_semantics = [#tpu.dimension_semantics<parallel>, #tpu.dimension_semantics<parallel>], iteration_bounds = array<i64: 2, 1>, scalar_prefetch = 0 : i64, scratch_operands = 0 : i64, tpu.core_type = #tpu.core_type<tc>, window_params = [{transform_indices = @transform_0, window_bounds = array<i64: 1, 3, 32, 16>}, {transform_indices = @transform_1, window_bounds = array<i64: 1, 3, 32, 16>}, {transform_indices = @transform_2, window_bounds = array<i64: 1, 3, 32, 16>}, {pipeline_mode = #tpu.pipeline_mode<synchronous>, transform_indices = @transform_3, window_bounds = array<i64: 32, 32>}, {pipeline_mode = #tpu.pipeline_mode<synchronous>, transform_indices = @transform_4, window_bounds = array<i64: 32, 32>}, {pipeline_mode = #tpu.pipeline_mode<synchronous>, transform_indices = @transform_5, window_bounds = array<i64: 32, 32>}, {pipeline_mode = #tpu.pipeline_mode<synchronous>, transform_indices = @transform_6, window_bounds = array<i64: 32, 32>}, {pipeline_mode = #tpu.pipeline_mode<synchronous>, transform_indices = @transform_7, window_bounds = array<i64: 32, 32>}, {pipeline_mode = #tpu.pipeline_mode<synchronous>, transform_indices = @transform_8, window_bounds = array<i64: 32, 32>}, {pipeline_mode = #tpu.pipeline_mode<synchronous>, transform_indices = @transform_9, window_bounds = array<i64: 32, 32>}, {pipeline_mode = #tpu.pipeline_mode<synchronous>, transform_indices = @transform_10, window_bounds = array<i64: 32, 32>}, {pipeline_mode = #tpu.pipeline_mode<synchronous>, transform_indices = @transform_11, window_bounds = array<i64: 128, 32>}, {pipeline_mode = #tpu.pipeline_mode<synchronous>, transform_indices = @transform_12, window_bounds = array<i64: 128, 128>}, {pipeline_mode = #tpu.pipeline_mode<synchronous>, transform_indices = @transform_13, window_bounds = array<i64: 32, 128>}, {transform_indices = @transform_14, window_bounds = array<i64: 1, 3, 32, 16>}]} {
    %c0 = arith.constant 0 : index
    %c0_0 = arith.constant 0 : index
    %c0_1 = arith.constant 0 : index
    %c0_2 = arith.constant 0 : index
    %0 = vector.load %arg2[%c0, %c0_0, %c0_1, %c0_2] : memref<1x3x32x16xf32, #tpu.memory_space<vmem>>, vector<1x3x32x16xf32>
    %1 = vector.shape_cast %0 : vector<1x3x32x16xf32> to vector<3x32x16xf32>
    %c0_3 = arith.constant 0 : index
    %c0_4 = arith.constant 0 : index
    %c0_5 = arith.constant 0 : index
    %c0_6 = arith.constant 0 : index
    %2 = vector.load %arg3[%c0_3, %c0_4, %c0_5, %c0_6] : memref<1x3x32x16xf32, #tpu.memory_space<vmem>>, vector<1x3x32x16xf32>
    %3 = vector.shape_cast %2 : vector<1x3x32x16xf32> to vector<3x32x16xf32>
    %c0_7 = arith.constant 0 : index
    %c0_8 = arith.constant 0 : index
    %c0_9 = arith.constant 0 : index
    %c0_10 = arith.constant 0 : index
    %4 = vector.load %arg4[%c0_7, %c0_8, %c0_9, %c0_10] : memref<1x3x32x16xf32, #tpu.memory_space<vmem>>, vector<1x3x32x16xf32>
    %5 = vector.shape_cast %4 : vector<1x3x32x16xf32> to vector<3x32x16xf32>
    %6 = arith.mulf %3, %3 : vector<3x32x16xf32>
    %cst = arith.constant dense<0.000000e+00> : vector<32x16xf32>
    %7 = vector.multi_reduction <add>, %6, %cst [0] : vector<3x32x16xf32> to vector<32x16xf32>
    %8 = vector.shape_cast %7 : vector<32x16xf32> to vector<1x32x16xf32>
    %9 = math.sqrt %8 : vector<1x32x16xf32>
    %cst_11 = arith.constant dense<0.000000e+00> : vector<1x16xf32>
    %10 = vector.multi_reduction <add>, %9, %cst_11 [1] : vector<1x32x16xf32> to vector<1x16xf32>
    %11 = vector.shape_cast %10 : vector<1x16xf32> to vector<1x1x16xf32>
    %cst_12 = arith.constant 3.200000e+01 : f32
    %12 = vector.broadcast %cst_12 : f32 to vector<1x1x16xf32>
    %13 = arith.divf %11, %12 : vector<1x1x16xf32>
    %14 = vector.broadcast %13 : vector<1x1x16xf32> to vector<1x32x16xf32>
    %15 = arith.subf %9, %14 : vector<1x32x16xf32>
    %16 = arith.mulf %15, %15 : vector<1x32x16xf32>
    %cst_13 = arith.constant dense<0.000000e+00> : vector<1x16xf32>
    %17 = vector.multi_reduction <add>, %16, %cst_13 [1] : vector<1x32x16xf32> to vector<1x16xf32>
    %18 = vector.shape_cast %17 : vector<1x16xf32> to vector<1x1x16xf32>
    %cst_14 = arith.constant 3.200000e+01 : f32
    %19 = vector.broadcast %cst_14 : f32 to vector<1x1x16xf32>
    %20 = arith.divf %18, %19 : vector<1x1x16xf32>
    %21 = vector.broadcast %13 : vector<1x1x16xf32> to vector<1x32x16xf32>
    %22 = arith.subf %9, %21 : vector<1x32x16xf32>
    %cst_15 = arith.constant 9.99999997E-7 : f32
    %23 = vector.broadcast %cst_15 : f32 to vector<1x1x16xf32>
    %24 = arith.addf %20, %23 : vector<1x1x16xf32>
    %25 = math.rsqrt %24 : vector<1x1x16xf32>
    %26 = vector.broadcast %25 : vector<1x1x16xf32> to vector<1x32x16xf32>
    %27 = arith.mulf %22, %26 : vector<1x32x16xf32>
    %cst_16 = arith.constant 9.99999997E-7 : f32
    %28 = vector.broadcast %cst_16 : f32 to vector<1x32x16xf32>
    %29 = arith.addf %9, %28 : vector<1x32x16xf32>
    %cst_17 = arith.constant 1.000000e+00 : f32
    %30 = vector.broadcast %cst_17 : f32 to vector<1x32x16xf32>
    %31 = arith.divf %30, %29 : vector<1x32x16xf32>
    %32 = arith.mulf %27, %31 : vector<1x32x16xf32>
    %33 = vector.broadcast %32 : vector<1x32x16xf32> to vector<3x32x16xf32>
    %34 = arith.mulf %3, %33 : vector<3x32x16xf32>
    %c0_18 = arith.constant 0 : index
    %c0_19 = arith.constant 0 : index
    %35 = vector.load %arg5[%c0_18, %c0_19] : memref<32x32xf32, #tpu.memory_space<vmem>>, vector<32x32xf32>
    %36 = vector.shape_cast %35 : vector<32x32xf32> to vector<1x32x32xf32>
    %37 = vector.broadcast %36 : vector<1x32x32xf32> to vector<3x32x32xf32>
    "tpu.trace_start"() <{level = 10 : i32, message = "vdc,vcn->vdn"}> : () -> ()
    %cst_20 = arith.constant dense<0.000000e+00> : vector<3x32x16xf32>
    %38 = tpu.matmul %37, %34, %cst_20 {dimension_numbers = #tpu.dot_dimension_numbers<[2], [1], [1], [2], [0, 0, 0, 1, 1, 2], [0], [0]>} : vector<3x32x32xf32>, vector<3x32x16xf32>, vector<3x32x16xf32> -> vector<3x32x16xf32>
    "tpu.trace_stop"() : () -> ()
    %c0_21 = arith.constant 0 : index
    %c0_22 = arith.constant 0 : index
    %39 = vector.load %arg6[%c0_21, %c0_22] : memref<32x32xf32, #tpu.memory_space<vmem>>, vector<32x32xf32>
    %40 = vector.shape_cast %39 : vector<32x32xf32> to vector<1x32x32xf32>
    %41 = vector.broadcast %40 : vector<1x32x32xf32> to vector<3x32x32xf32>
    "tpu.trace_start"() <{level = 10 : i32, message = "vdc,vcn->vdn"}> : () -> ()
    %cst_23 = arith.constant dense<0.000000e+00> : vector<3x32x16xf32>
    %42 = tpu.matmul %41, %34, %cst_23 {dimension_numbers = #tpu.dot_dimension_numbers<[2], [1], [1], [2], [0, 0, 0, 1, 1, 2], [0], [0]>} : vector<3x32x32xf32>, vector<3x32x16xf32>, vector<3x32x16xf32> -> vector<3x32x16xf32>
    "tpu.trace_stop"() : () -> ()
    %c0_24 = arith.constant 0 : index
    %c0_25 = arith.constant 0 : index
    %43 = vector.load %arg7[%c0_24, %c0_25] : memref<32x32xf32, #tpu.memory_space<vmem>>, vector<32x32xf32>
    %44 = vector.shape_cast %43 : vector<32x32xf32> to vector<1x32x32xf32>
    %45 = vector.broadcast %44 : vector<1x32x32xf32> to vector<3x32x32xf32>
    "tpu.trace_start"() <{level = 10 : i32, message = "vdc,vcn->vdn"}> : () -> ()
    %cst_26 = arith.constant dense<0.000000e+00> : vector<3x32x16xf32>
    %46 = tpu.matmul %45, %34, %cst_26 {dimension_numbers = #tpu.dot_dimension_numbers<[2], [1], [1], [2], [0, 0, 0, 1, 1, 2], [0], [0]>} : vector<3x32x32xf32>, vector<3x32x16xf32>, vector<3x32x16xf32> -> vector<3x32x16xf32>
    "tpu.trace_stop"() : () -> ()
    %47 = vector.extract_strided_slice %38 {offsets = [0, 0, 0], sizes = [1, 32, 16], strides = [1, 1, 1]} : vector<3x32x16xf32> to vector<1x32x16xf32>
    %48 = vector.shape_cast %47 : vector<1x32x16xf32> to vector<32x16xf32>
    %49 = vector.shape_cast %48 : vector<32x16xf32> to vector<4x8x16xf32>
    %50 = tpu.transpose %49, [0, 2, 1] : vector<4x8x16xf32> -> vector<4x16x8xf32>
    %51 = vector.extract_strided_slice %42 {offsets = [0, 0, 0], sizes = [1, 32, 16], strides = [1, 1, 1]} : vector<3x32x16xf32> to vector<1x32x16xf32>
    %52 = vector.shape_cast %51 : vector<1x32x16xf32> to vector<32x16xf32>
    %53 = vector.shape_cast %52 : vector<32x16xf32> to vector<4x8x16xf32>
    "tpu.trace_start"() <{level = 10 : i32, message = "hqd,hdk->hqk"}> : () -> ()
    %cst_27 = arith.constant dense<0.000000e+00> : vector<4x16x16xf32>
    %54 = tpu.matmul %50, %53, %cst_27 {dimension_numbers = #tpu.dot_dimension_numbers<[2], [1], [1], [2], [0, 0, 0, 1, 1, 2], [0], [0]>} : vector<4x16x8xf32>, vector<4x8x16xf32>, vector<4x16x16xf32> -> vector<4x16x16xf32>
    "tpu.trace_stop"() : () -> ()
    %55 = vector.extract_strided_slice %38 {offsets = [1, 0, 0], sizes = [1, 32, 16], strides = [1, 1, 1]} : vector<3x32x16xf32> to vector<1x32x16xf32>
    %56 = vector.shape_cast %55 : vector<1x32x16xf32> to vector<32x16xf32>
    %57 = vector.shape_cast %56 : vector<32x16xf32> to vector<4x8x16xf32>
    %58 = tpu.transpose %57, [0, 2, 1] : vector<4x8x16xf32> -> vector<4x16x8xf32>
    %59 = vector.extract_strided_slice %42 {offsets = [1, 0, 0], sizes = [1, 32, 16], strides = [1, 1, 1]} : vector<3x32x16xf32> to vector<1x32x16xf32>
    %60 = vector.shape_cast %59 : vector<1x32x16xf32> to vector<32x16xf32>
    %61 = vector.shape_cast %60 : vector<32x16xf32> to vector<4x8x16xf32>
    "tpu.trace_start"() <{level = 10 : i32, message = "hqd,hdk->hqk"}> : () -> ()
    %cst_28 = arith.constant dense<0.000000e+00> : vector<4x16x16xf32>
    %62 = tpu.matmul %58, %61, %cst_28 {dimension_numbers = #tpu.dot_dimension_numbers<[2], [1], [1], [2], [0, 0, 0, 1, 1, 2], [0], [0]>} : vector<4x16x8xf32>, vector<4x8x16xf32>, vector<4x16x16xf32> -> vector<4x16x16xf32>
    "tpu.trace_stop"() : () -> ()
    %63 = vector.extract_strided_slice %38 {offsets = [2, 0, 0], sizes = [1, 32, 16], strides = [1, 1, 1]} : vector<3x32x16xf32> to vector<1x32x16xf32>
    %64 = vector.shape_cast %63 : vector<1x32x16xf32> to vector<32x16xf32>
    %65 = vector.shape_cast %64 : vector<32x16xf32> to vector<4x8x16xf32>
    %66 = tpu.transpose %65, [0, 2, 1] : vector<4x8x16xf32> -> vector<4x16x8xf32>
    %67 = vector.extract_strided_slice %42 {offsets = [2, 0, 0], sizes = [1, 32, 16], strides = [1, 1, 1]} : vector<3x32x16xf32> to vector<1x32x16xf32>
    %68 = vector.shape_cast %67 : vector<1x32x16xf32> to vector<32x16xf32>
    %69 = vector.shape_cast %68 : vector<32x16xf32> to vector<4x8x16xf32>
    "tpu.trace_start"() <{level = 10 : i32, message = "hqd,hdk->hqk"}> : () -> ()
    %cst_29 = arith.constant dense<0.000000e+00> : vector<4x16x16xf32>
    %70 = tpu.matmul %66, %69, %cst_29 {dimension_numbers = #tpu.dot_dimension_numbers<[2], [1], [1], [2], [0, 0, 0, 1, 1, 2], [0], [0]>} : vector<4x16x8xf32>, vector<4x8x16xf32>, vector<4x16x16xf32> -> vector<4x16x16xf32>
    "tpu.trace_stop"() : () -> ()
    %71 = arith.addf %54, %62 : vector<4x16x16xf32>
    %72 = arith.addf %71, %70 : vector<4x16x16xf32>
    %cst_30 = arith.constant 0.204124153 : f32
    %73 = vector.broadcast %cst_30 : f32 to vector<4x16x16xf32>
    %74 = arith.mulf %72, %73 : vector<4x16x16xf32>
    %cst_31 = arith.constant dense<0xFF800000> : vector<4x16xf32>
    %75 = vector.multi_reduction <maximumf>, %74, %cst_31 [2] : vector<4x16x16xf32> to vector<4x16xf32>
    %76 = vector.shape_cast %75 : vector<4x16xf32> to vector<4x16x1xf32>
    %77 = vector.broadcast %76 : vector<4x16x1xf32> to vector<4x16x16xf32>
    %78 = arith.subf %74, %77 : vector<4x16x16xf32>
    %79 = math.exp %78 : vector<4x16x16xf32>
    %cst_32 = arith.constant dense<0.000000e+00> : vector<4x16xf32>
    %80 = vector.multi_reduction <add>, %79, %cst_32 [2] : vector<4x16x16xf32> to vector<4x16xf32>
    %81 = vector.shape_cast %80 : vector<4x16xf32> to vector<4x16x1xf32>
    %cst_33 = arith.constant 1.000000e+00 : f32
    %82 = vector.broadcast %cst_33 : f32 to vector<4x16x1xf32>
    %83 = arith.divf %82, %81 : vector<4x16x1xf32>
    %84 = vector.broadcast %83 : vector<4x16x1xf32> to vector<4x16x16xf32>
    %85 = arith.mulf %79, %84 : vector<4x16x16xf32>
    %86 = vector.extract_strided_slice %46 {offsets = [0, 0, 0], sizes = [1, 32, 16], strides = [1, 1, 1]} : vector<3x32x16xf32> to vector<1x32x16xf32>
    %87 = vector.shape_cast %86 : vector<1x32x16xf32> to vector<32x16xf32>
    %88 = vector.shape_cast %87 : vector<32x16xf32> to vector<4x8x16xf32>
    "tpu.trace_start"() <{level = 10 : i32, message = "hdk,hqk->hdq"}> : () -> ()
    %cst_34 = arith.constant dense<0.000000e+00> : vector<4x8x16xf32>
    %89 = tpu.matmul %88, %85, %cst_34 {dimension_numbers = #tpu.dot_dimension_numbers<[2], [2], [1], [1], [0, 0, 0, 1, 1, 1], [0], [0]>} : vector<4x8x16xf32>, vector<4x16x16xf32>, vector<4x8x16xf32> -> vector<4x8x16xf32>
    "tpu.trace_stop"() : () -> ()
    %90 = vector.shape_cast %89 : vector<4x8x16xf32> to vector<32x16xf32>
    %91 = vector.extract_strided_slice %46 {offsets = [1, 0, 0], sizes = [1, 32, 16], strides = [1, 1, 1]} : vector<3x32x16xf32> to vector<1x32x16xf32>
    %92 = vector.shape_cast %91 : vector<1x32x16xf32> to vector<32x16xf32>
    %93 = vector.shape_cast %92 : vector<32x16xf32> to vector<4x8x16xf32>
    "tpu.trace_start"() <{level = 10 : i32, message = "hdk,hqk->hdq"}> : () -> ()
    %cst_35 = arith.constant dense<0.000000e+00> : vector<4x8x16xf32>
    %94 = tpu.matmul %93, %85, %cst_35 {dimension_numbers = #tpu.dot_dimension_numbers<[2], [2], [1], [1], [0, 0, 0, 1, 1, 1], [0], [0]>} : vector<4x8x16xf32>, vector<4x16x16xf32>, vector<4x8x16xf32> -> vector<4x8x16xf32>
    "tpu.trace_stop"() : () -> ()
    %95 = vector.shape_cast %94 : vector<4x8x16xf32> to vector<32x16xf32>
    %96 = vector.extract_strided_slice %46 {offsets = [2, 0, 0], sizes = [1, 32, 16], strides = [1, 1, 1]} : vector<3x32x16xf32> to vector<1x32x16xf32>
    %97 = vector.shape_cast %96 : vector<1x32x16xf32> to vector<32x16xf32>
    %98 = vector.shape_cast %97 : vector<32x16xf32> to vector<4x8x16xf32>
    "tpu.trace_start"() <{level = 10 : i32, message = "hdk,hqk->hdq"}> : () -> ()
    %cst_36 = arith.constant dense<0.000000e+00> : vector<4x8x16xf32>
    %99 = tpu.matmul %98, %85, %cst_36 {dimension_numbers = #tpu.dot_dimension_numbers<[2], [2], [1], [1], [0, 0, 0, 1, 1, 1], [0], [0]>} : vector<4x8x16xf32>, vector<4x16x16xf32>, vector<4x8x16xf32> -> vector<4x8x16xf32>
    "tpu.trace_stop"() : () -> ()
    %100 = vector.shape_cast %99 : vector<4x8x16xf32> to vector<32x16xf32>
    %101 = vector.shape_cast %90 : vector<32x16xf32> to vector<1x32x16xf32>
    %102 = vector.shape_cast %95 : vector<32x16xf32> to vector<1x32x16xf32>
    %103 = vector.shape_cast %100 : vector<32x16xf32> to vector<1x32x16xf32>
    %104 = tpu.concatenate %101, %102, %103 in 0 : vector<1x32x16xf32>, vector<1x32x16xf32>, vector<1x32x16xf32> -> vector<3x32x16xf32>
    %c0_37 = arith.constant 0 : index
    %c0_38 = arith.constant 0 : index
    %105 = vector.load %arg8[%c0_37, %c0_38] : memref<32x32xf32, #tpu.memory_space<vmem>>, vector<32x32xf32>
    %106 = vector.shape_cast %105 : vector<32x32xf32> to vector<1x32x32xf32>
    %107 = vector.broadcast %106 : vector<1x32x32xf32> to vector<3x32x32xf32>
    "tpu.trace_start"() <{level = 10 : i32, message = "vdc,vcn->vdn"}> : () -> ()
    %cst_39 = arith.constant dense<0.000000e+00> : vector<3x32x16xf32>
    %108 = tpu.matmul %107, %104, %cst_39 {dimension_numbers = #tpu.dot_dimension_numbers<[2], [1], [1], [2], [0, 0, 0, 1, 1, 2], [0], [0]>} : vector<3x32x32xf32>, vector<3x32x16xf32>, vector<3x32x16xf32> -> vector<3x32x16xf32>
    "tpu.trace_stop"() : () -> ()
    %109 = arith.addf %1, %108 : vector<3x32x16xf32>
    %110 = arith.mulf %109, %109 : vector<3x32x16xf32>
    %cst_40 = arith.constant dense<0.000000e+00> : vector<32x16xf32>
    %111 = vector.multi_reduction <add>, %110, %cst_40 [0] : vector<3x32x16xf32> to vector<32x16xf32>
    %112 = vector.shape_cast %111 : vector<32x16xf32> to vector<1x32x16xf32>
    %113 = math.sqrt %112 : vector<1x32x16xf32>
    %cst_41 = arith.constant dense<0.000000e+00> : vector<1x16xf32>
    %114 = vector.multi_reduction <add>, %113, %cst_41 [1] : vector<1x32x16xf32> to vector<1x16xf32>
    %115 = vector.shape_cast %114 : vector<1x16xf32> to vector<1x1x16xf32>
    %cst_42 = arith.constant 3.200000e+01 : f32
    %116 = vector.broadcast %cst_42 : f32 to vector<1x1x16xf32>
    %117 = arith.divf %115, %116 : vector<1x1x16xf32>
    %118 = vector.broadcast %117 : vector<1x1x16xf32> to vector<1x32x16xf32>
    %119 = arith.subf %113, %118 : vector<1x32x16xf32>
    %120 = arith.mulf %119, %119 : vector<1x32x16xf32>
    %cst_43 = arith.constant dense<0.000000e+00> : vector<1x16xf32>
    %121 = vector.multi_reduction <add>, %120, %cst_43 [1] : vector<1x32x16xf32> to vector<1x16xf32>
    %122 = vector.shape_cast %121 : vector<1x16xf32> to vector<1x1x16xf32>
    %cst_44 = arith.constant 3.200000e+01 : f32
    %123 = vector.broadcast %cst_44 : f32 to vector<1x1x16xf32>
    %124 = arith.divf %122, %123 : vector<1x1x16xf32>
    %125 = vector.broadcast %117 : vector<1x1x16xf32> to vector<1x32x16xf32>
    %126 = arith.subf %113, %125 : vector<1x32x16xf32>
    %cst_45 = arith.constant 9.99999997E-7 : f32
    %127 = vector.broadcast %cst_45 : f32 to vector<1x1x16xf32>
    %128 = arith.addf %124, %127 : vector<1x1x16xf32>
    %129 = math.rsqrt %128 : vector<1x1x16xf32>
    %130 = vector.broadcast %129 : vector<1x1x16xf32> to vector<1x32x16xf32>
    %131 = arith.mulf %126, %130 : vector<1x32x16xf32>
    %cst_46 = arith.constant 9.99999997E-7 : f32
    %132 = vector.broadcast %cst_46 : f32 to vector<1x32x16xf32>
    %133 = arith.addf %113, %132 : vector<1x32x16xf32>
    %cst_47 = arith.constant 1.000000e+00 : f32
    %134 = vector.broadcast %cst_47 : f32 to vector<1x32x16xf32>
    %135 = arith.divf %134, %133 : vector<1x32x16xf32>
    %136 = arith.mulf %131, %135 : vector<1x32x16xf32>
    %137 = vector.broadcast %136 : vector<1x32x16xf32> to vector<3x32x16xf32>
    %138 = arith.mulf %109, %137 : vector<3x32x16xf32>
    %c0_48 = arith.constant 0 : index
    %c0_49 = arith.constant 0 : index
    %139 = vector.load %arg9[%c0_48, %c0_49] : memref<32x32xf32, #tpu.memory_space<vmem>>, vector<32x32xf32>
    %140 = vector.shape_cast %139 : vector<32x32xf32> to vector<1x32x32xf32>
    %141 = vector.broadcast %140 : vector<1x32x32xf32> to vector<3x32x32xf32>
    "tpu.trace_start"() <{level = 10 : i32, message = "vdc,vcn->vdn"}> : () -> ()
    %cst_50 = arith.constant dense<0.000000e+00> : vector<3x32x16xf32>
    %142 = tpu.matmul %141, %138, %cst_50 {dimension_numbers = #tpu.dot_dimension_numbers<[2], [1], [1], [2], [0, 0, 0, 1, 1, 2], [0], [0]>} : vector<3x32x32xf32>, vector<3x32x16xf32>, vector<3x32x16xf32> -> vector<3x32x16xf32>
    "tpu.trace_stop"() : () -> ()
    %c0_51 = arith.constant 0 : index
    %c0_52 = arith.constant 0 : index
    %143 = vector.load %arg10[%c0_51, %c0_52] : memref<32x32xf32, #tpu.memory_space<vmem>>, vector<32x32xf32>
    %144 = vector.shape_cast %143 : vector<32x32xf32> to vector<1x32x32xf32>
    %145 = vector.broadcast %144 : vector<1x32x32xf32> to vector<3x32x32xf32>
    "tpu.trace_start"() <{level = 10 : i32, message = "vdc,vcn->vdn"}> : () -> ()
    %cst_53 = arith.constant dense<0.000000e+00> : vector<3x32x16xf32>
    %146 = tpu.matmul %145, %5, %cst_53 {dimension_numbers = #tpu.dot_dimension_numbers<[2], [1], [1], [2], [0, 0, 0, 1, 1, 2], [0], [0]>} : vector<3x32x32xf32>, vector<3x32x16xf32>, vector<3x32x16xf32> -> vector<3x32x16xf32>
    "tpu.trace_stop"() : () -> ()
    %c0_54 = arith.constant 0 : index
    %c0_55 = arith.constant 0 : index
    %147 = vector.load %arg11[%c0_54, %c0_55] : memref<32x32xf32, #tpu.memory_space<vmem>>, vector<32x32xf32>
    %148 = vector.shape_cast %147 : vector<32x32xf32> to vector<1x32x32xf32>
    %149 = vector.broadcast %148 : vector<1x32x32xf32> to vector<3x32x32xf32>
    "tpu.trace_start"() <{level = 10 : i32, message = "vdc,vcn->vdn"}> : () -> ()
    %cst_56 = arith.constant dense<0.000000e+00> : vector<3x32x16xf32>
    %150 = tpu.matmul %149, %5, %cst_56 {dimension_numbers = #tpu.dot_dimension_numbers<[2], [1], [1], [2], [0, 0, 0, 1, 1, 2], [0], [0]>} : vector<3x32x32xf32>, vector<3x32x16xf32>, vector<3x32x16xf32> -> vector<3x32x16xf32>
    "tpu.trace_stop"() : () -> ()
    %151 = vector.extract_strided_slice %142 {offsets = [0, 0, 0], sizes = [1, 32, 16], strides = [1, 1, 1]} : vector<3x32x16xf32> to vector<1x32x16xf32>
    %152 = vector.shape_cast %151 : vector<1x32x16xf32> to vector<32x16xf32>
    %153 = vector.shape_cast %152 : vector<32x16xf32> to vector<4x8x16xf32>
    %154 = tpu.transpose %153, [0, 2, 1] : vector<4x8x16xf32> -> vector<4x16x8xf32>
    %155 = vector.extract_strided_slice %146 {offsets = [0, 0, 0], sizes = [1, 32, 16], strides = [1, 1, 1]} : vector<3x32x16xf32> to vector<1x32x16xf32>
    %156 = vector.shape_cast %155 : vector<1x32x16xf32> to vector<32x16xf32>
    %157 = vector.shape_cast %156 : vector<32x16xf32> to vector<4x8x16xf32>
    "tpu.trace_start"() <{level = 10 : i32, message = "hqd,hdk->hqk"}> : () -> ()
    %cst_57 = arith.constant dense<0.000000e+00> : vector<4x16x16xf32>
    %158 = tpu.matmul %154, %157, %cst_57 {dimension_numbers = #tpu.dot_dimension_numbers<[2], [1], [1], [2], [0, 0, 0, 1, 1, 2], [0], [0]>} : vector<4x16x8xf32>, vector<4x8x16xf32>, vector<4x16x16xf32> -> vector<4x16x16xf32>
    "tpu.trace_stop"() : () -> ()
    %159 = vector.extract_strided_slice %142 {offsets = [1, 0, 0], sizes = [1, 32, 16], strides = [1, 1, 1]} : vector<3x32x16xf32> to vector<1x32x16xf32>
    %160 = vector.shape_cast %159 : vector<1x32x16xf32> to vector<32x16xf32>
    %161 = vector.shape_cast %160 : vector<32x16xf32> to vector<4x8x16xf32>
    %162 = tpu.transpose %161, [0, 2, 1] : vector<4x8x16xf32> -> vector<4x16x8xf32>
    %163 = vector.extract_strided_slice %146 {offsets = [1, 0, 0], sizes = [1, 32, 16], strides = [1, 1, 1]} : vector<3x32x16xf32> to vector<1x32x16xf32>
    %164 = vector.shape_cast %163 : vector<1x32x16xf32> to vector<32x16xf32>
    %165 = vector.shape_cast %164 : vector<32x16xf32> to vector<4x8x16xf32>
    "tpu.trace_start"() <{level = 10 : i32, message = "hqd,hdk->hqk"}> : () -> ()
    %cst_58 = arith.constant dense<0.000000e+00> : vector<4x16x16xf32>
    %166 = tpu.matmul %162, %165, %cst_58 {dimension_numbers = #tpu.dot_dimension_numbers<[2], [1], [1], [2], [0, 0, 0, 1, 1, 2], [0], [0]>} : vector<4x16x8xf32>, vector<4x8x16xf32>, vector<4x16x16xf32> -> vector<4x16x16xf32>
    "tpu.trace_stop"() : () -> ()
    %167 = vector.extract_strided_slice %142 {offsets = [2, 0, 0], sizes = [1, 32, 16], strides = [1, 1, 1]} : vector<3x32x16xf32> to vector<1x32x16xf32>
    %168 = vector.shape_cast %167 : vector<1x32x16xf32> to vector<32x16xf32>
    %169 = vector.shape_cast %168 : vector<32x16xf32> to vector<4x8x16xf32>
    %170 = tpu.transpose %169, [0, 2, 1] : vector<4x8x16xf32> -> vector<4x16x8xf32>
    %171 = vector.extract_strided_slice %146 {offsets = [2, 0, 0], sizes = [1, 32, 16], strides = [1, 1, 1]} : vector<3x32x16xf32> to vector<1x32x16xf32>
    %172 = vector.shape_cast %171 : vector<1x32x16xf32> to vector<32x16xf32>
    %173 = vector.shape_cast %172 : vector<32x16xf32> to vector<4x8x16xf32>
    "tpu.trace_start"() <{level = 10 : i32, message = "hqd,hdk->hqk"}> : () -> ()
    %cst_59 = arith.constant dense<0.000000e+00> : vector<4x16x16xf32>
    %174 = tpu.matmul %170, %173, %cst_59 {dimension_numbers = #tpu.dot_dimension_numbers<[2], [1], [1], [2], [0, 0, 0, 1, 1, 2], [0], [0]>} : vector<4x16x8xf32>, vector<4x8x16xf32>, vector<4x16x16xf32> -> vector<4x16x16xf32>
    "tpu.trace_stop"() : () -> ()
    %175 = arith.addf %158, %166 : vector<4x16x16xf32>
    %176 = arith.addf %175, %174 : vector<4x16x16xf32>
    %cst_60 = arith.constant 0.204124153 : f32
    %177 = vector.broadcast %cst_60 : f32 to vector<4x16x16xf32>
    %178 = arith.mulf %176, %177 : vector<4x16x16xf32>
    %cst_61 = arith.constant dense<0xFF800000> : vector<4x16xf32>
    %179 = vector.multi_reduction <maximumf>, %178, %cst_61 [2] : vector<4x16x16xf32> to vector<4x16xf32>
    %180 = vector.shape_cast %179 : vector<4x16xf32> to vector<4x16x1xf32>
    %181 = vector.broadcast %180 : vector<4x16x1xf32> to vector<4x16x16xf32>
    %182 = arith.subf %178, %181 : vector<4x16x16xf32>
    %183 = math.exp %182 : vector<4x16x16xf32>
    %cst_62 = arith.constant dense<0.000000e+00> : vector<4x16xf32>
    %184 = vector.multi_reduction <add>, %183, %cst_62 [2] : vector<4x16x16xf32> to vector<4x16xf32>
    %185 = vector.shape_cast %184 : vector<4x16xf32> to vector<4x16x1xf32>
    %cst_63 = arith.constant 1.000000e+00 : f32
    %186 = vector.broadcast %cst_63 : f32 to vector<4x16x1xf32>
    %187 = arith.divf %186, %185 : vector<4x16x1xf32>
    %188 = vector.broadcast %187 : vector<4x16x1xf32> to vector<4x16x16xf32>
    %189 = arith.mulf %183, %188 : vector<4x16x16xf32>
    %190 = vector.extract_strided_slice %150 {offsets = [0, 0, 0], sizes = [1, 32, 16], strides = [1, 1, 1]} : vector<3x32x16xf32> to vector<1x32x16xf32>
    %191 = vector.shape_cast %190 : vector<1x32x16xf32> to vector<32x16xf32>
    %192 = vector.shape_cast %191 : vector<32x16xf32> to vector<4x8x16xf32>
    "tpu.trace_start"() <{level = 10 : i32, message = "hdk,hqk->hdq"}> : () -> ()
    %cst_64 = arith.constant dense<0.000000e+00> : vector<4x8x16xf32>
    %193 = tpu.matmul %192, %189, %cst_64 {dimension_numbers = #tpu.dot_dimension_numbers<[2], [2], [1], [1], [0, 0, 0, 1, 1, 1], [0], [0]>} : vector<4x8x16xf32>, vector<4x16x16xf32>, vector<4x8x16xf32> -> vector<4x8x16xf32>
    "tpu.trace_stop"() : () -> ()
    %194 = vector.shape_cast %193 : vector<4x8x16xf32> to vector<32x16xf32>
    %195 = vector.extract_strided_slice %150 {offsets = [1, 0, 0], sizes = [1, 32, 16], strides = [1, 1, 1]} : vector<3x32x16xf32> to vector<1x32x16xf32>
    %196 = vector.shape_cast %195 : vector<1x32x16xf32> to vector<32x16xf32>
    %197 = vector.shape_cast %196 : vector<32x16xf32> to vector<4x8x16xf32>
    "tpu.trace_start"() <{level = 10 : i32, message = "hdk,hqk->hdq"}> : () -> ()
    %cst_65 = arith.constant dense<0.000000e+00> : vector<4x8x16xf32>
    %198 = tpu.matmul %197, %189, %cst_65 {dimension_numbers = #tpu.dot_dimension_numbers<[2], [2], [1], [1], [0, 0, 0, 1, 1, 1], [0], [0]>} : vector<4x8x16xf32>, vector<4x16x16xf32>, vector<4x8x16xf32> -> vector<4x8x16xf32>
    "tpu.trace_stop"() : () -> ()
    %199 = vector.shape_cast %198 : vector<4x8x16xf32> to vector<32x16xf32>
    %200 = vector.extract_strided_slice %150 {offsets = [2, 0, 0], sizes = [1, 32, 16], strides = [1, 1, 1]} : vector<3x32x16xf32> to vector<1x32x16xf32>
    %201 = vector.shape_cast %200 : vector<1x32x16xf32> to vector<32x16xf32>
    %202 = vector.shape_cast %201 : vector<32x16xf32> to vector<4x8x16xf32>
    "tpu.trace_start"() <{level = 10 : i32, message = "hdk,hqk->hdq"}> : () -> ()
    %cst_66 = arith.constant dense<0.000000e+00> : vector<4x8x16xf32>
    %203 = tpu.matmul %202, %189, %cst_66 {dimension_numbers = #tpu.dot_dimension_numbers<[2], [2], [1], [1], [0, 0, 0, 1, 1, 1], [0], [0]>} : vector<4x8x16xf32>, vector<4x16x16xf32>, vector<4x8x16xf32> -> vector<4x8x16xf32>
    "tpu.trace_stop"() : () -> ()
    %204 = vector.shape_cast %203 : vector<4x8x16xf32> to vector<32x16xf32>
    %205 = vector.shape_cast %194 : vector<32x16xf32> to vector<1x32x16xf32>
    %206 = vector.shape_cast %199 : vector<32x16xf32> to vector<1x32x16xf32>
    %207 = vector.shape_cast %204 : vector<32x16xf32> to vector<1x32x16xf32>
    %208 = tpu.concatenate %205, %206, %207 in 0 : vector<1x32x16xf32>, vector<1x32x16xf32>, vector<1x32x16xf32> -> vector<3x32x16xf32>
    %c0_67 = arith.constant 0 : index
    %c0_68 = arith.constant 0 : index
    %209 = vector.load %arg12[%c0_67, %c0_68] : memref<32x32xf32, #tpu.memory_space<vmem>>, vector<32x32xf32>
    %210 = vector.shape_cast %209 : vector<32x32xf32> to vector<1x32x32xf32>
    %211 = vector.broadcast %210 : vector<1x32x32xf32> to vector<3x32x32xf32>
    "tpu.trace_start"() <{level = 10 : i32, message = "vdc,vcn->vdn"}> : () -> ()
    %cst_69 = arith.constant dense<0.000000e+00> : vector<3x32x16xf32>
    %212 = tpu.matmul %211, %208, %cst_69 {dimension_numbers = #tpu.dot_dimension_numbers<[2], [1], [1], [2], [0, 0, 0, 1, 1, 2], [0], [0]>} : vector<3x32x32xf32>, vector<3x32x16xf32>, vector<3x32x16xf32> -> vector<3x32x16xf32>
    "tpu.trace_stop"() : () -> ()
    %213 = arith.addf %109, %212 : vector<3x32x16xf32>
    %214 = arith.mulf %213, %213 : vector<3x32x16xf32>
    %cst_70 = arith.constant dense<0.000000e+00> : vector<32x16xf32>
    %215 = vector.multi_reduction <add>, %214, %cst_70 [0] : vector<3x32x16xf32> to vector<32x16xf32>
    %216 = vector.shape_cast %215 : vector<32x16xf32> to vector<1x32x16xf32>
    %217 = math.sqrt %216 : vector<1x32x16xf32>
    %cst_71 = arith.constant dense<0.000000e+00> : vector<1x16xf32>
    %218 = vector.multi_reduction <add>, %217, %cst_71 [1] : vector<1x32x16xf32> to vector<1x16xf32>
    %219 = vector.shape_cast %218 : vector<1x16xf32> to vector<1x1x16xf32>
    %cst_72 = arith.constant 3.200000e+01 : f32
    %220 = vector.broadcast %cst_72 : f32 to vector<1x1x16xf32>
    %221 = arith.divf %219, %220 : vector<1x1x16xf32>
    %222 = vector.broadcast %221 : vector<1x1x16xf32> to vector<1x32x16xf32>
    %223 = arith.subf %217, %222 : vector<1x32x16xf32>
    %224 = arith.mulf %223, %223 : vector<1x32x16xf32>
    %cst_73 = arith.constant dense<0.000000e+00> : vector<1x16xf32>
    %225 = vector.multi_reduction <add>, %224, %cst_73 [1] : vector<1x32x16xf32> to vector<1x16xf32>
    %226 = vector.shape_cast %225 : vector<1x16xf32> to vector<1x1x16xf32>
    %cst_74 = arith.constant 3.200000e+01 : f32
    %227 = vector.broadcast %cst_74 : f32 to vector<1x1x16xf32>
    %228 = arith.divf %226, %227 : vector<1x1x16xf32>
    %229 = vector.broadcast %221 : vector<1x1x16xf32> to vector<1x32x16xf32>
    %230 = arith.subf %217, %229 : vector<1x32x16xf32>
    %cst_75 = arith.constant 9.99999997E-7 : f32
    %231 = vector.broadcast %cst_75 : f32 to vector<1x1x16xf32>
    %232 = arith.addf %228, %231 : vector<1x1x16xf32>
    %233 = math.rsqrt %232 : vector<1x1x16xf32>
    %234 = vector.broadcast %233 : vector<1x1x16xf32> to vector<1x32x16xf32>
    %235 = arith.mulf %230, %234 : vector<1x32x16xf32>
    %cst_76 = arith.constant 9.99999997E-7 : f32
    %236 = vector.broadcast %cst_76 : f32 to vector<1x32x16xf32>
    %237 = arith.addf %217, %236 : vector<1x32x16xf32>
    %cst_77 = arith.constant 1.000000e+00 : f32
    %238 = vector.broadcast %cst_77 : f32 to vector<1x32x16xf32>
    %239 = arith.divf %238, %237 : vector<1x32x16xf32>
    %240 = arith.mulf %235, %239 : vector<1x32x16xf32>
    %241 = vector.broadcast %240 : vector<1x32x16xf32> to vector<3x32x16xf32>
    %242 = arith.mulf %213, %241 : vector<3x32x16xf32>
    %c0_78 = arith.constant 0 : index
    %c0_79 = arith.constant 0 : index
    %243 = vector.load %arg13[%c0_78, %c0_79] : memref<128x32xf32, #tpu.memory_space<vmem>>, vector<128x32xf32>
    %244 = vector.shape_cast %243 : vector<128x32xf32> to vector<1x128x32xf32>
    %245 = vector.broadcast %244 : vector<1x128x32xf32> to vector<3x128x32xf32>
    "tpu.trace_start"() <{level = 10 : i32, message = "vdc,vcn->vdn"}> : () -> ()
    %cst_80 = arith.constant dense<0.000000e+00> : vector<3x128x16xf32>
    %246 = tpu.matmul %245, %242, %cst_80 {dimension_numbers = #tpu.dot_dimension_numbers<[2], [1], [1], [2], [0, 0, 0, 1, 1, 2], [0], [0]>} : vector<3x128x32xf32>, vector<3x32x16xf32>, vector<3x128x16xf32> -> vector<3x128x16xf32>
    "tpu.trace_stop"() : () -> ()
    %c0_81 = arith.constant 0 : index
    %c0_82 = arith.constant 0 : index
    %247 = vector.load %arg14[%c0_81, %c0_82] : memref<128x128xf32, #tpu.memory_space<vmem>>, vector<128x128xf32>
    %248 = vector.shape_cast %247 : vector<128x128xf32> to vector<1x128x128xf32>
    %249 = vector.broadcast %248 : vector<1x128x128xf32> to vector<3x128x128xf32>
    "tpu.trace_start"() <{level = 10 : i32, message = "vdc,vcn->vdn"}> : () -> ()
    %cst_83 = arith.constant dense<0.000000e+00> : vector<3x128x16xf32>
    %250 = tpu.matmul %249, %246, %cst_83 {dimension_numbers = #tpu.dot_dimension_numbers<[2], [1], [1], [2], [0, 0, 0, 1, 1, 2], [0], [0]>} : vector<3x128x128xf32>, vector<3x128x16xf32>, vector<3x128x16xf32> -> vector<3x128x16xf32>
    "tpu.trace_stop"() : () -> ()
    %251 = arith.mulf %246, %250 : vector<3x128x16xf32>
    %cst_84 = arith.constant dense<0.000000e+00> : vector<128x16xf32>
    %252 = vector.multi_reduction <add>, %251, %cst_84 [0] : vector<3x128x16xf32> to vector<128x16xf32>
    %253 = vector.shape_cast %252 : vector<128x16xf32> to vector<1x128x16xf32>
    %254 = arith.mulf %250, %250 : vector<3x128x16xf32>
    %cst_85 = arith.constant dense<0.000000e+00> : vector<128x16xf32>
    %255 = vector.multi_reduction <add>, %254, %cst_85 [0] : vector<3x128x16xf32> to vector<128x16xf32>
    %256 = vector.shape_cast %255 : vector<128x16xf32> to vector<1x128x16xf32>
    %cst_86 = arith.constant 9.99999997E-7 : f32
    %257 = vector.broadcast %cst_86 : f32 to vector<1x128x16xf32>
    %258 = arith.addf %256, %257 : vector<1x128x16xf32>
    %cst_87 = arith.constant 1.000000e+00 : f32
    %259 = vector.broadcast %cst_87 : f32 to vector<1x128x16xf32>
    %260 = arith.divf %259, %258 : vector<1x128x16xf32>
    %261 = arith.mulf %253, %260 : vector<1x128x16xf32>
    %262 = vector.broadcast %261 : vector<1x128x16xf32> to vector<3x128x16xf32>
    %263 = arith.mulf %262, %250 : vector<3x128x16xf32>
    %264 = arith.subf %246, %263 : vector<3x128x16xf32>
    %cst_88 = arith.constant 2.000000e-01 : f32
    %265 = vector.broadcast %cst_88 : f32 to vector<3x128x16xf32>
    %266 = arith.mulf %265, %246 : vector<3x128x16xf32>
    %cst_89 = arith.constant 0.000000e+00 : f32
    %267 = vector.broadcast %cst_89 : f32 to vector<1x128x16xf32>
    %268 = arith.cmpf oge, %253, %267 : vector<1x128x16xf32>
    %269 = vector.shape_cast %268 : vector<1x128x16xi1> to vector<1x128x16xi1>
    %270 = vector.broadcast %269 : vector<1x128x16xi1> to vector<3x128x16xi1>
    %271 = arith.select %270, %246, %264 : vector<3x128x16xi1>, vector<3x128x16xf32>
    %cst_90 = arith.constant 8.000000e-01 : f32
    %272 = vector.broadcast %cst_90 : f32 to vector<3x128x16xf32>
    %273 = arith.mulf %272, %271 : vector<3x128x16xf32>
    %274 = arith.addf %266, %273 : vector<3x128x16xf32>
    %c0_91 = arith.constant 0 : index
    %c0_92 = arith.constant 0 : index
    %275 = vector.load %arg15[%c0_91, %c0_92] : memref<32x128xf32, #tpu.memory_space<vmem>>, vector<32x128xf32>
    %276 = vector.shape_cast %275 : vector<32x128xf32> to vector<1x32x128xf32>
    %277 = vector.broadcast %276 : vector<1x32x128xf32> to vector<3x32x128xf32>
    "tpu.trace_start"() <{level = 10 : i32, message = "vdc,vcn->vdn"}> : () -> ()
    %cst_93 = arith.constant dense<0.000000e+00> : vector<3x32x16xf32>
    %278 = tpu.matmul %277, %274, %cst_93 {dimension_numbers = #tpu.dot_dimension_numbers<[2], [1], [1], [2], [0, 0, 0, 1, 1, 2], [0], [0]>} : vector<3x32x128xf32>, vector<3x128x16xf32>, vector<3x32x16xf32> -> vector<3x32x16xf32>
    "tpu.trace_stop"() : () -> ()
    %279 = arith.addf %213, %278 : vector<3x32x16xf32>
    %c0_94 = arith.constant 0 : index
    %c0_95 = arith.constant 0 : index
    %c0_96 = arith.constant 0 : index
    %c0_97 = arith.constant 0 : index
    %280 = vector.load %arg16[%c0_94, %c0_95, %c0_96, %c0_97] : memref<1x3x32x16xf32, #tpu.memory_space<vmem>>, vector<1x3x32x16xf32>
    %281 = vector.shape_cast %280 : vector<1x3x32x16xf32> to vector<3x32x16xf32>
    %282 = vector.shape_cast %279 : vector<3x32x16xf32> to vector<1x3x32x16xf32>
    tpu.vector_store %arg16[%c0_94, %c0_95, %c0_96, %c0_97], %282 {strides = array<i32>} : memref<1x3x32x16xf32, #tpu.memory_space<vmem>>, vector<1x3x32x16xf32>,
    return
  }
  func.func @transform_0(%arg0: i32, %arg1: i32) -> (i32, i32, i32, i32) {
    %c0_i32 = arith.constant 0 : i32
    %c0_i32_0 = arith.constant 0 : i32
    %c0_i32_1 = arith.constant 0 : i32
    return %arg0, %c0_i32, %c0_i32_0, %arg1 : i32, i32, i32, i32
  }
  func.func @transform_1(%arg0: i32, %arg1: i32) -> (i32, i32, i32, i32) {
    %c0_i32 = arith.constant 0 : i32
    %c0_i32_0 = arith.constant 0 : i32
    %c0_i32_1 = arith.constant 0 : i32
    %c0_i32_2 = arith.constant 0 : i32
    return %arg0, %c0_i32, %c0_i32_0, %c0_i32_1 : i32, i32, i32, i32
  }
  func.func @transform_2(%arg0: i32, %arg1: i32) -> (i32, i32, i32, i32) {
    %c0_i32 = arith.constant 0 : i32
    %c0_i32_0 = arith.constant 0 : i32
    %c0_i32_1 = arith.constant 0 : i32
    %c0_i32_2 = arith.constant 0 : i32
    return %arg0, %c0_i32, %c0_i32_0, %c0_i32_1 : i32, i32, i32, i32
  }
  func.func @transform_3(%arg0: i32, %arg1: i32) -> (i32, i32) {
    %c0_i32 = arith.constant 0 : i32
    %c0_i32_0 = arith.constant 0 : i32
    %c0_i32_1 = arith.constant 0 : i32
    return %c0_i32, %c0_i32_0 : i32, i32
  }
  func.func @transform_4(%arg0: i32, %arg1: i32) -> (i32, i32) {
    %c0_i32 = arith.constant 0 : i32
    %c0_i32_0 = arith.constant 0 : i32
    %c0_i32_1 = arith.constant 0 : i32
    return %c0_i32, %c0_i32_0 : i32, i32
  }
  func.func @transform_5(%arg0: i32, %arg1: i32) -> (i32, i32) {
    %c0_i32 = arith.constant 0 : i32
    %c0_i32_0 = arith.constant 0 : i32
    %c0_i32_1 = arith.constant 0 : i32
    return %c0_i32, %c0_i32_0 : i32, i32
  }
  func.func @transform_6(%arg0: i32, %arg1: i32) -> (i32, i32) {
    %c0_i32 = arith.constant 0 : i32
    %c0_i32_0 = arith.constant 0 : i32
    %c0_i32_1 = arith.constant 0 : i32
    return %c0_i32, %c0_i32_0 : i32, i32
  }
  func.func @transform_7(%arg0: i32, %arg1: i32) -> (i32, i32) {
    %c0_i32 = arith.constant 0 : i32
    %c0_i32_0 = arith.constant 0 : i32
    %c0_i32_1 = arith.constant 0 : i32
    return %c0_i32, %c0_i32_0 : i32, i32
  }
  func.func @transform_8(%arg0: i32, %arg1: i32) -> (i32, i32) {
    %c0_i32 = arith.constant 0 : i32
    %c0_i32_0 = arith.constant 0 : i32
    %c0_i32_1 = arith.constant 0 : i32
    return %c0_i32, %c0_i32_0 : i32, i32
  }
  func.func @transform_9(%arg0: i32, %arg1: i32) -> (i32, i32) {
    %c0_i32 = arith.constant 0 : i32
    %c0_i32_0 = arith.constant 0 : i32
    %c0_i32_1 = arith.constant 0 : i32
    return %c0_i32, %c0_i32_0 : i32, i32
  }
  func.func @transform_10(%arg0: i32, %arg1: i32) -> (i32, i32) {
    %c0_i32 = arith.constant 0 : i32
    %c0_i32_0 = arith.constant 0 : i32
    %c0_i32_1 = arith.constant 0 : i32
    return %c0_i32, %c0_i32_0 : i32, i32
  }
  func.func @transform_11(%arg0: i32, %arg1: i32) -> (i32, i32) {
    %c0_i32 = arith.constant 0 : i32
    %c0_i32_0 = arith.constant 0 : i32
    %c0_i32_1 = arith.constant 0 : i32
    return %c0_i32, %c0_i32_0 : i32, i32
  }
  func.func @transform_12(%arg0: i32, %arg1: i32) -> (i32, i32) {
    %c0_i32 = arith.constant 0 : i32
    %c0_i32_0 = arith.constant 0 : i32
    %c0_i32_1 = arith.constant 0 : i32
    return %c0_i32, %c0_i32_0 : i32, i32
  }
  func.func @transform_13(%arg0: i32, %arg1: i32) -> (i32, i32) {
    %c0_i32 = arith.constant 0 : i32
    %c0_i32_0 = arith.constant 0 : i32
    %c0_i32_1 = arith.constant 0 : i32
    return %c0_i32, %c0_i32_0 : i32, i32
  }
  func.func @transform_14(%arg0: i32, %arg1: i32) -> (i32, i32, i32, i32) {
    %c0_i32 = arith.constant 0 : i32
    %c0_i32_0 = arith.constant 0 : i32
    %c0_i32_1 = arith.constant 0 : i32
    return %arg0, %c0_i32, %c0_i32_0, %arg1 : i32, i32, i32, i32
  }
}

</mosaic_0001>

<bundles_post_ra>
// kernel: point_transformer_decoder.3
= control target key start
LH: loop header
LB: loop body
LE: loop exit
PB: predicated region body
PF: predicated region fallthrough
CT: control target
= control target key end

     0   :  { %s382_s6 = smov 0   ;;  %s498_s0 = inlined_call_operand.vmem [shape: f32[2,3,32,16], index: 0, kind: input, shape index: {}]   ;;  %s499_s1 = inlined_call_operand.vmem [shape: f32[2,3,32,16], index: 1, kind: output, shape index: {}]  }
   0x1 LB: > { %s328_s7 = sadd.s32 4294967295, %s370_s6   ;;  %p332_p0 = scmp.ge.s32.totalorder %s370_s6, 1  ;;  %s370_s6 = sphi %s382_s6, %s11_s6  }
   0x2   : > { %p87_p1 = scmp.lt.s32.totalorder %s370_s6, 3 }
   0x4   : > { %p88_p2 = pnand %p332_p0, %p87_p1 }
   0x5   : > { %p107_p3 = scmp.lt.s32.totalorder (!%p88_p2), %s328_s7, 1  ;;  %vm141_vm0 = vcmask (!%p88_p2), 130048  }
   0x6   : > { %91 = sbr.rel (%p88_p2) target bundleno = 113 (0x71), region = 24 }
   0xd   : > { %s501_s7 = smov (!%p107_p3, %s328_s7), 1 }
   0xe   : > { %s337_s8 = smul.u32 96, %s501_s7 }
  0x10   : > { %s111_s11 = scalar_lea.vmem %s498_s0, %s337_s8  ;;  %s116_s14 = scalar_lea.vmem %s499_s1, %s337_s8 }
  0x11   : > { %v398_v0 = vld [vmem:[%s111_s11] sm:$0xff]  ;;  %v400_v1 = vld [vmem:[%s111_s11 + $0x8] sm:$0xff]  ;;  %v402_v2 = vld [vmem:[%s111_s11 + $0x10] sm:$0xff] }
  0x12   : > { %v404_v3 = vld [vmem:[%s111_s11 + $0x18] sm:$0xff]  ;;  %v406_v4 = vld [vmem:[%s111_s11 + $0x20] sm:$0xff]  ;;  %v408_v5 = vld [vmem:[%s111_s11 + $0x28] sm:$0xff]  ;;  %v129_v6 = vmul.f32 %v398_v0, %v398_v0  ;;  %v130_v7 = vmul.f32 %v400_v1, %v400_v1  ;;  %v131_v11 = vmul.f32 %v402_v2, %v402_v2 }
  0x13   : > { %v414_v8 = vld [vmem:[%s111_s11 + $0x30] sm:$0xff]  ;;  %v416_v9 = vld [vmem:[%s111_s11 + $0x38] sm:$0xff]  ;;  %v418_v10 = vld [vmem:[%s111_s11 + $0x40] sm:$0xff]  ;;  %v132_v12 = vmul.f32 %v404_v3, %v404_v3  ;;  %v133_v13 = vmul.f32 %v406_v4, %v406_v4  ;;  %v134_v14 = vmul.f32 %v408_v5, %v408_v5 }
  0x14   : > { %v428_v15 = vld [vmem:[%s111_s11 + $0x48] sm:$0xff]  ;;  %v430_v16 = vld [vmem:[%s111_s11 + $0x50] sm:$0xff]  ;;  %v432_v17 = vld [vmem:[%s111_s11 + $0x58] sm:$0xff]  ;;  %v135_v18 = vmul.f32 %v414_v8, %v414_v8  ;;  %v136_v19 = vmul.f32 %v416_v9, %v416_v9  ;;  %v137_v20 = vmul.f32 %v418_v10, %v418_v10  ;;  %v142_v21 = vsel %vm141_vm0, %v129_v6, 0.0 }
  0x15   : > { %v138_v22 = vmul.f32 %v428_v15, %v428_v15  ;;  %v139_v23 = vmul.f32 %v430_v16, %v430_v16  ;;  %v140_v24 = vmul.f32 %v432_v17, %v432_v17  ;;  %v143_v25 = vsel %vm141_vm0, %v133_v13, 0.0 }
  0x16   : > { %v144_v26 = vadd.f32 %v143_v25, %v142_v21  ;;  %v145_v27 = vsel %vm141_vm0, %v137_v20, 0.0  ;;  %v147_v28 = vsel %vm141_vm0, %v130_v7, 0.0  ;;  %v148_v29 = vsel %vm141_vm0, %v134_v14, 0.0 }
  0x17   : > { %v149_v30 = vadd.f32 %v148_v29, %v147_v28  ;;  %v150_v31 = vsel %vm141_vm0, %v138_v22, 0.0  ;;  %v152_v32 = vsel %vm141_vm0, %v131_v11, 0.0  ;;  %v153_v33 = vsel %vm141_vm0, %v135_v18, 0.0 }
  0x18   : > { %v146_v34 = vadd.f32 %v145_v27, %v144_v26  ;;  %v154_v35 = vadd.f32 %v153_v33, %v152_v32  ;;  %v155_v36 = vsel %vm141_vm0, %v139_v23, 0.0  ;;  %v157_v37 = vsel %vm141_vm0, %v132_v12, 0.0 }
  0x19   : > { %v151_v38 = vadd.f32 %v150_v31, %v149_v30  ;;  %v158_v39 = vsel %vm141_vm0, %v136_v19, 0.0  ;;  %v160_v40 = vsel %vm141_vm0, %v140_v24, 0.0 }
  0x1a   : > { %v156_v41 = vadd.f32 %v155_v36, %v154_v35  ;;  %v159_v42 = vadd.f32 %v158_v39, %v157_v37  ;;  %346 = vrsqrt.f32 %v146_v34  ;;  %vm164_vm1 = vcmp.eq.f32.partialorder %v146_v34, inf }
  0x1b   : > { %348 = vrsqrt.f32 %v151_v38  ;;  %v167_v45 = vand.u32 2147483648, %v146_v34  ;;  %vm166_vm2 = vcmp.eq.f32.partialorder %v146_v34, 0.0  ;;  %vm171_vm3 = vcmp.eq.f32.partialorder %v151_v38, inf }
  0x1c   : > { %v161_v43 = vadd.f32 %v160_v40, %v159_v42  ;;  %350 = vrsqrt.f32 %v156_v41  ;;  %v174_v48 = vand.u32 2147483648, %v151_v38  ;;  %vm173_vm4 = vcmp.eq.f32.partialorder %v151_v38, 0.0 }
  0x1d   : > { %vm178_vm5 = vcmp.eq.f32.partialorder %v156_v41, inf  ;;  %v181_v51 = vand.u32 2147483648, %v156_v41  ;;  %vm180_vm6 = vcmp.eq.f32.partialorder %v156_v41, 0.0 }
  0x1e   : > { %352 = vrsqrt.f32 %v161_v43  ;;  %vm185_vm7 = vcmp.eq.f32.partialorder %v161_v43, inf  ;;  %vm187_vm8 = vcmp.eq.f32.partialorder %v161_v43, 0.0  ;;  %v188_v57 = vand.u32 2147483648, %v161_v43 }
  0x24   : > { %v347_v44 = vpop.eup %346 }
  0x25   : > { %v349_v46 = vpop.eup %348  ;;  %v163_v47 = vmul.f32 %v347_v44, %v146_v34 }
  0x26   : > { %v351_v49 = vpop.eup %350  ;;  %v170_v50 = vmul.f32 %v349_v46, %v151_v38 }
  0x27   : > { %v165_v52 = vsel %vm164_vm1, %v146_v34, %v163_v47  ;;  %v177_v53 = vmul.f32 %v351_v49, %v156_v41 }
  0x28   : > { %v353_v54 = vpop.eup %352  ;;  %v168_v55 = vsel %vm166_vm2, %v167_v45, %v165_v52  ;;  %v172_v56 = vsel %vm171_vm3, %v151_v38, %v170_v50 }
  0x29   : > { %v175_v58 = vsel %vm173_vm4, %v174_v48, %v172_v56  ;;  %v179_v59 = vsel %vm178_vm5, %v156_v41, %v177_v53  ;;  %v184_v60 = vmul.f32 %v353_v54, %v161_v43  ;;  %v190_v61 = vsel %vm141_vm0, %v168_v55, 0.0 }
  0x2a   : > { %v182_v62 = vsel %vm180_vm6, %v181_v51, %v179_v59  ;;  %v191_v63 = vsel %vm141_vm0, %v175_v58, 0.0  ;;  %v233_v46 = vadd.f32 1e-06, %v168_v55  ;;  %v234_v47 = vadd.f32 1e-06, %v175_v58 }
  0x2b   : > { %v186_v6 = vsel %vm185_vm7, %v161_v43, %v184_v60  ;;  %v192_v7 = vadd.f32 %v191_v63, %v190_v61  ;;  %v193_v11 = vsel %vm141_vm0, %v182_v62, 0.0  ;;  %v235_v49 = vadd.f32 1e-06, %v182_v62 }
  0x2c   : > { %v189_v12 = vsel %vm187_vm8, %v188_v57, %v186_v6  ;;  %354 = vrcp.f32 %v233_v46 }
  0x2d   : > { %v194_v13 = vadd.f32 %v193_v11, %v192_v7  ;;  %v195_v14 = vsel %vm141_vm0, %v189_v12, 0.0  ;;  %v236_v50 = vadd.f32 1e-06, %v189_v12  ;;  %356 = vrcp.f32 %v234_v47 }
  0x2e   : > { %358 = vrcp.f32 %v235_v49 }
  0x2f   : > { %v196_v18 = vadd.f32 %v195_v14, %v194_v13  ;;  %360 = vrcp.f32 %v236_v50 }
  0x31   : > { %v197_v19 = vrot.slane %v196_v18, 4 }
  0x33   : > { %v198_v20 = vadd.f32 %v197_v19, %v196_v18 }
  0x35   : > { %v199_v21 = vrot.slane %v198_v20, 2 }
  0x36   : > { %v355_v53 = vpop.eup %354 }
  0x37   : > { %v200_v22 = vadd.f32 %v199_v21, %v198_v20  ;;  %v357_v54 = vpop.eup %356 }
  0x38   : > { %v359_v56 = vpop.eup %358 }
  0x39   : > { %v201_v23 = vrot.slane %v200_v22, 1  ;;  %v361_v57 = vpop.eup %360 }
  0x3b   : > { %v202_v24 = vadd.f32 %v201_v23, %v200_v22 }
  0x3d   : > { %v204_v25 = vmul.f32 0.03125, %v202_v24 }
  0x3f   : > { %v205_v26 = vsub.f32 %v168_v55, %v204_v25  ;;  %v206_v27 = vsub.f32 %v175_v58, %v204_v25  ;;  %v207_v28 = vsub.f32 %v182_v62, %v204_v25  ;;  %v208_v29 = vsub.f32 %v189_v12, %v204_v25 }
  0x41   : > { %v209_v30 = vmul.f32 %v205_v26, %v205_v26  ;;  %v210_v31 = vmul.f32 %v206_v27, %v206_v27  ;;  %v211_v32 = vmul.f32 %v207_v28, %v207_v28  ;;  %v212_v33 = vmul.f32 %v208_v29, %v208_v29 }
  0x43   : > { %v213_v34 = vsel %vm141_vm0, %v209_v30, 0.0  ;;  %v214_v35 = vsel %vm141_vm0, %v210_v31, 0.0  ;;  %v216_v36 = vsel %vm141_vm0, %v211_v32, 0.0  ;;  %v218_v38 = vsel %vm141_vm0, %v212_v33, 0.0 }
  0x44   : > { %v215_v37 = vadd.f32 %v214_v35, %v213_v34 }
  0x46   : > { %v217_v39 = vadd.f32 %v216_v36, %v215_v37 }
  0x48   : > { %v219_v40 = vadd.f32 %v218_v38, %v217_v39 }
  0x4a   : > { %v220_v41 = vrot.slane %v219_v40, 4 }
  0x4c   : > { %v221_v42 = vadd.f32 %v220_v41, %v219_v40 }
  0x4e   : > { %v222_v43 = vrot.slane %v221_v42, 2 }
  0x50   : > { %v223_v44 = vadd.f32 %v222_v43, %v221_v42 }
  0x52   : > { %v224_v45 = vrot.slane %v223_v44, 1 }
  0x54   : > { %v225_v48 = vadd.f32 %v224_v45, %v223_v44 }
  0x56   : > { %v226_v51 = vmul.f32 0.03125, %v225_v48 }
  0x58   : > { %v227_v52 = vadd.f32 1e-06, %v226_v51 }
  0x5a   : > { %362 = vrsqrt.f32 %v227_v52 }
  0x64   : > { %v363_v59 = vpop.eup %362 }
  0x65   : > { %v229_v60 = vmul.f32 %v363_v59, %v205_v26  ;;  %v230_v61 = vmul.f32 %v363_v59, %v206_v27  ;;  %v231_v55 = vmul.f32 %v363_v59, %v207_v28  ;;  %v232_v58 = vmul.f32 %v363_v59, %v208_v29 }
  0x67   : > { %v245_v63 = vmul.f32 %v355_v53, %v229_v60  ;;  %v246_v62 = vmul.f32 %v357_v54, %v230_v61  ;;  %v247_v6 = vmul.f32 %v359_v56, %v231_v55  ;;  %v248_v7 = vmul.f32 %v361_v57, %v232_v58 }
  0x69   : > { %v249_v11 = vmul.f32 %v245_v63, %v398_v0  ;;  %v250_v12 = vmul.f32 %v246_v62, %v400_v1  ;;  %v251_v13 = vmul.f32 %v247_v6, %v402_v2  ;;  %v252_v14 = vmul.f32 %v248_v7, %v404_v3 }
  0x6a   : > { %v253_v18 = vmul.f32 %v245_v63, %v406_v4  ;;  %v254_v19 = vmul.f32 %v246_v62, %v408_v5  ;;  %v255_v20 = vmul.f32 %v247_v6, %v414_v8  ;;  %v256_v21 = vmul.f32 %v248_v7, %v416_v9 }
  0x6b   : > { %261 = vst.msk [vmem:[%s116_s14] sm:$0xff] %vm141_vm0, %v249_v11  ;;  %262 = vst.msk [vmem:[%s116_s14 + $0x8] sm:$0xff] %vm141_vm0, %v250_v12  ;;  %v257_v0 = vmul.f32 %v245_v63, %v418_v10  ;;  %v258_v1 = vmul.f32 %v246_v62, %v428_v15  ;;  %v259_v2 = vmul.f32 %v247_v6, %v430_v16 }
  0x6c   : > { %263 = vst.msk [vmem:[%s116_s14 + $0x10] sm:$0xff] %vm141_vm0, %v251_v13  ;;  %264 = vst.msk [vmem:[%s116_s14 + $0x18] sm:$0xff] %vm141_vm0, %v252_v14  ;;  %v260_v3 = vmul.f32 %v248_v7, %v432_v17 }
  0x6d   : > { %265 = vst.msk [vmem:[%s116_s14 + $0x20] sm:$0xff] %vm141_vm0, %v253_v18  ;;  %266 = vst.msk [vmem:[%s116_s14 + $0x28] sm:$0xff] %vm141_vm0, %v254_v19 }
  0x6e   : > { %267 = vst.msk [vmem:[%s116_s14 + $0x30] sm:$0xff] %vm141_vm0, %v255_v20  ;;  %268 = vst.msk [vmem:[%s116_s14 + $0x38] sm:$0xff] %vm141_vm0, %v256_v21 }
  0x6f   : > { %269 = vst.msk [vmem:[%s116_s14 + $0x40] sm:$0xff] %vm141_vm0, %v257_v0  ;;  %270 = vst.msk [vmem:[%s116_s14 + $0x48] sm:$0xff] %vm141_vm0, %v258_v1 }
  0x70   : > { %271 = vst.msk [vmem:[%s116_s14 + $0x50] sm:$0xff] %vm141_vm0, %v259_v2  ;;  %272 = vst.msk [vmem:[%s116_s14 + $0x58] sm:$0xff] %vm141_vm0, %v260_v3 }
  0x71 PF: > { %s11_s6 = sadd.s32 1, %s370_s6  }
  0x72   : > { %p8_p4 = scmp.ge.s32.totalorder %s11_s6, 4  }
  0x74   :  { %10 = sbr.rel (!%p8_p4) target bundleno = 1 (0x1), region = 54 }

// kernel: point_transformer_decoder.4
= control target key start
LH: loop header
LB: loop body
LE: loop exit
PB: predicated region body
PF: predicated region fallthrough
CT: control target
= control target key end

     0   :  { %s12543_s29 = smov 0   ;;  %s12545_s30 = smov 0   ;;  %s15046_s0 = inlined_call_operand.vmem [shape: f32[2,3,32,16], index: 0, kind: input, shape index: {}, may-alias: {0,1}]   ;;  %s15047_s1 = inlined_call_operand.vmem [shape: f32[2,3,32,16], index: 1, kind: input, shape index: {}, may-alias: {0,1}]   ;;  %s15048_s2 = inlined_call_operand.vmem [shape: f32[2,3,32,16], index: 2, kind: input, shape index: {}]   ;;  %s15049_s3 = inlined_call_operand.vmem [shape: f32[32,32], index: 3, kind: input, shape index: {}]   ;;  %s15050_s4 = inlined_call_operand.vmem [shape: f32[32,32], index: 4, kind: input, shape index: {}]   ;;  %s15051_s5 = inlined_call_operand.vmem [shape: f32[32,32], index: 5, kind: input, shape index: {}]   ;;  %s15052_s6 = inlined_call_operand.vmem [shape: f32[32,32], index: 6, kind: input, shape index: {}]   ;;  %s15053_s7 = inlined_call_operand.vmem [shape: f32[32,32], index: 7, kind: input, shape index: {}]   ;;  %s15054_s8 = inlined_call_operand.vmem [shape: f32[32,32], index: 8, kind: input, shape index: {}]   ;;  %s15055_s9 = inlined_call_operand.vmem [shape: f32[32,32], index: 9, kind: input, shape index: {}]   ;;  %s15056_s10 = inlined_call_operand.vmem [shape: f32[32,32], index: 10, kind: input, shape index: {}]   ;;  %s15057_s11 = inlined_call_operand.vmem [shape: f32[128,32], index: 11, kind: input, shape index: {}]   ;;  %s15058_s12 = inlined_call_operand.vmem [shape: f32[128,128], index: 12, kind: input, shape index: {}]   ;;  %s15059_s13 = inlined_call_operand.vmem [shape: f32[32,128], index: 13, kind: input, shape index: {}]   ;;  %s15060_s14 = inlined_call_operand.vmem [shape: f32[2,3,32,16], index: 14, kind: output, shape index: {}]  }
   0x1   :  { %s12547_s15 = smov 0  }
   0x2 LB: > { %s36_s16 = sadd.s32 1, %s12459_s30  ;;  %p9897_p0 = scmp.ge.s32.totalorder %s12463_s15, 1  ;;  %s12463_s15 = sphi %s12547_s15, %s24_s15   ;;  %s12459_s30 = sphi %s12545_s30, %s15566_s30   ;;  %s12455_s29 = sphi %s12543_s29, %s15565_s29  }
   0x3   : > { %p38_p1 = scmp.ge.s32.totalorder %s36_s16, 2  ;;  %p451_p2 = scmp.lt.s32.totalorder %s12463_s15, 3 }
   0x5   : > { %s15568_s16 = smov (%p38_p1, %s36_s16), 0  ;;  %p452_p3 = pnand %p9897_p0, %p451_p2 }
   0x7   : > { %455 = sbr.rel (%p452_p3) target bundleno = 3972 (0xf84), region = 76 }
   0xe   : > { %p513_p4 = scmp.lt.s32.totalorder %s12455_s29, 1  ;;  %v12564_v0 = vld [vmem:[%s15049_s3] sm:$0xff]  ;;  %vm711_vm0 = vcmask 261120   ;;  %vm15215_vm1 = vcmask 130048   ;;  %vm1777_vm10 = vcmask 64512   ;;  %vm12466_vm11 = vmmov 0  }
   0xf   : > { %10728 = vmatprep.mubr.msk.f32.mxu0 %vm711_vm0, %v12564_v0  ;;  %10742 = vmatprep.mubr.msk.f32.mxu1 %vm711_vm0, %v12564_v0  ;;  %vm12844_vm12 = vmpackc.low %vm15215_vm1, %vm15215_vm1 }
  0x10   : > { %s15570_s29 = smov (!%p513_p4, %s12455_s29), 1 }
  0x11   : > { %s12570_s19 = smul.u32 96, %s15570_s29 }
  0x13   : > { %s525_s22 = scalar_lea.vmem %s15047_s1, %s12570_s19  ;;  %s12963_s21 = scalar_lea.vmem %s15046_s0, %s12570_s19 }
  0x14   : > { %v12576_v1 = vld [vmem:[%s525_s22] sm:$0xff]  ;;  %v12578_v2 = vld [vmem:[%s525_s22 + $0x8] sm:$0xff]  ;;  %v12580_v3 = vld [vmem:[%s525_s22 + $0x10] sm:$0xff]  ;;  %s13057_s24 = scalar_lea.vmem %s15048_s2, %s12570_s19  ;;  %s14999_s23 = scalar_lea.vmem %s15060_s14, %s12570_s19 }
  0x15   : > { %v12582_v4 = vld [vmem:[%s525_s22 + $0x18] sm:$0xff]  ;;  %v12584_v5 = vld [vmem:[%s525_s22 + $0x20] sm:$0xff]  ;;  %v12586_v6 = vld [vmem:[%s525_s22 + $0x28] sm:$0xff]  ;;  %v575_v7 = vmul.f32 %v12576_v1, %v12576_v1  ;;  %v576_v8 = vmul.f32 %v12578_v2, %v12578_v2  ;;  %v577_v12 = vmul.f32 %v12580_v3, %v12580_v3 }
  0x16   : > { %v12592_v9 = vld [vmem:[%s525_s22 + $0x30] sm:$0xff]  ;;  %v12594_v10 = vld [vmem:[%s525_s22 + $0x38] sm:$0xff]  ;;  %v12596_v11 = vld [vmem:[%s525_s22 + $0x40] sm:$0xff]  ;;  %v578_v13 = vmul.f32 %v12582_v4, %v12582_v4  ;;  %v579_v14 = vmul.f32 %v12584_v5, %v12584_v5  ;;  %v580_v15 = vmul.f32 %v12586_v6, %v12586_v6 }
  0x17   : > { %v12606_v16 = vld [vmem:[%s525_s22 + $0x48] sm:$0xff]  ;;  %v12608_v17 = vld [vmem:[%s525_s22 + $0x50] sm:$0xff]  ;;  %v12610_v18 = vld [vmem:[%s525_s22 + $0x58] sm:$0xff]  ;;  %v581_v19 = vmul.f32 %v12592_v9, %v12592_v9  ;;  %v582_v20 = vmul.f32 %v12594_v10, %v12594_v10  ;;  %v583_v21 = vmul.f32 %v12596_v11, %v12596_v11  ;;  %v588_v22 = vsel %vm15215_vm1, %v575_v7, 0.0 }
  0x18   : > { %v584_v23 = vmul.f32 %v12606_v16, %v12606_v16  ;;  %v585_v24 = vmul.f32 %v12608_v17, %v12608_v17  ;;  %v586_v25 = vmul.f32 %v12610_v18, %v12610_v18  ;;  %v589_v26 = vsel %vm15215_vm1, %v579_v14, 0.0 }
  0x19   : > { %v590_v27 = vadd.f32 %v589_v26, %v588_v22  ;;  %v591_v28 = vsel %vm15215_vm1, %v583_v21, 0.0  ;;  %v593_v29 = vsel %vm15215_vm1, %v576_v8, 0.0  ;;  %v594_v30 = vsel %vm15215_vm1, %v580_v15, 0.0 }
  0x1a   : > { %v595_v31 = vadd.f32 %v594_v30, %v593_v29  ;;  %v596_v32 = vsel %vm15215_vm1, %v584_v23, 0.0  ;;  %v598_v33 = vsel %vm15215_vm1, %v577_v12, 0.0  ;;  %v599_v34 = vsel %vm15215_vm1, %v581_v19, 0.0 }
  0x1b   : > { %v592_v35 = vadd.f32 %v591_v28, %v590_v27  ;;  %v600_v36 = vadd.f32 %v599_v34, %v598_v33  ;;  %v601_v37 = vsel %vm15215_vm1, %v585_v24, 0.0  ;;  %v603_v38 = vsel %vm15215_vm1, %v578_v13, 0.0 }
  0x1c   : > { %v597_v39 = vadd.f32 %v596_v32, %v595_v31  ;;  %v604_v40 = vsel %vm15215_vm1, %v582_v20, 0.0  ;;  %v606_v41 = vsel %vm15215_vm1, %v586_v25, 0.0 }
  0x1d   : > { %v602_v42 = vadd.f32 %v601_v37, %v600_v36  ;;  %v605_v43 = vadd.f32 %v604_v40, %v603_v38  ;;  %12290 = vrsqrt.f32 %v592_v35  ;;  %vm610_vm2 = vcmp.eq.f32.partialorder %v592_v35, inf }
  0x1e   : > { %12292 = vrsqrt.f32 %v597_v39  ;;  %v613_v46 = vand.u32 2147483648, %v592_v35  ;;  %vm612_vm3 = vcmp.eq.f32.partialorder %v592_v35, 0.0  ;;  %vm617_vm4 = vcmp.eq.f32.partialorder %v597_v39, inf }
  0x1f   : > { %v607_v44 = vadd.f32 %v606_v41, %v605_v43  ;;  %12294 = vrsqrt.f32 %v602_v42  ;;  %v620_v49 = vand.u32 2147483648, %v597_v39  ;;  %vm619_vm5 = vcmp.eq.f32.partialorder %v597_v39, 0.0 }
  0x20   : > { %vm624_vm6 = vcmp.eq.f32.partialorder %v602_v42, inf  ;;  %v627_v52 = vand.u32 2147483648, %v602_v42  ;;  %vm626_vm7 = vcmp.eq.f32.partialorder %v602_v42, 0.0 }
  0x21   : > { %12296 = vrsqrt.f32 %v607_v44  ;;  %vm631_vm8 = vcmp.eq.f32.partialorder %v607_v44, inf  ;;  %vm633_vm9 = vcmp.eq.f32.partialorder %v607_v44, 0.0  ;;  %v634_v58 = vand.u32 2147483648, %v607_v44 }
  0x27   : > { %v12291_v45 = vpop.eup %12290 }
  0x28   : > { %v12293_v47 = vpop.eup %12292  ;;  %v609_v48 = vmul.f32 %v12291_v45, %v592_v35 }
  0x29   : > { %v12295_v50 = vpop.eup %12294  ;;  %v616_v51 = vmul.f32 %v12293_v47, %v597_v39 }
  0x2a   : > { %v611_v53 = vsel %vm610_vm2, %v592_v35, %v609_v48  ;;  %v623_v54 = vmul.f32 %v12295_v50, %v602_v42 }
  0x2b   : > { %v12297_v55 = vpop.eup %12296  ;;  %v614_v56 = vsel %vm612_vm3, %v613_v46, %v611_v53  ;;  %v618_v57 = vsel %vm617_vm4, %v597_v39, %v616_v51 }
  0x2c   : > { %v621_v59 = vsel %vm619_vm5, %v620_v49, %v618_v57  ;;  %v625_v60 = vsel %vm624_vm6, %v602_v42, %v623_v54  ;;  %v630_v61 = vmul.f32 %v12297_v55, %v607_v44  ;;  %v636_v62 = vsel %vm15215_vm1, %v614_v56, 0.0 }
  0x2d   : > { %v628_v63 = vsel %vm626_vm7, %v627_v52, %v625_v60  ;;  %v637_v7 = vsel %vm15215_vm1, %v621_v59, 0.0  ;;  %v679_v48 = vadd.f32 1e-06, %v614_v56  ;;  %v680_v49 = vadd.f32 1e-06, %v621_v59 }
  0x2e   : > { %v632_v8 = vsel %vm631_vm8, %v607_v44, %v630_v61  ;;  %v638_v12 = vadd.f32 %v637_v7, %v636_v62  ;;  %v639_v13 = vsel %vm15215_vm1, %v628_v63, 0.0  ;;  %v681_v51 = vadd.f32 1e-06, %v628_v63 }
  0x2f   : > { %v635_v14 = vsel %vm633_vm9, %v634_v58, %v632_v8  ;;  %12298 = vrcp.f32 %v679_v48 }
  0x30   : > { %v640_v15 = vadd.f32 %v639_v13, %v638_v12  ;;  %v641_v19 = vsel %vm15215_vm1, %v635_v14, 0.0  ;;  %v682_v52 = vadd.f32 1e-06, %v635_v14  ;;  %12300 = vrcp.f32 %v680_v49 }
  0x31   : > { %12302 = vrcp.f32 %v681_v51 }
  0x32   : > { %v642_v20 = vadd.f32 %v641_v19, %v640_v15  ;;  %12304 = vrcp.f32 %v682_v52 }
  0x34   : > { %v643_v21 = vrot.slane %v642_v20, 4 }
  0x36   : > { %v644_v22 = vadd.f32 %v643_v21, %v642_v20 }
  0x38   : > { %v645_v23 = vrot.slane %v644_v22, 2 }
  0x39   : > { %v12299_v55 = vpop.eup %12298 }
  0x3a   : > { %v646_v24 = vadd.f32 %v645_v23, %v644_v22  ;;  %v12301_v57 = vpop.eup %12300 }
  0x3b   : > { %v12303_v58 = vpop.eup %12302 }
  0x3c   : > { %v647_v25 = vrot.slane %v646_v24, 1  ;;  %v12305_v60 = vpop.eup %12304 }
  0x3e   : > { %v648_v26 = vadd.f32 %v647_v25, %v646_v24 }
  0x40   : > { %v650_v27 = vmul.f32 0.03125, %v648_v26 }
  0x42   : > { %v651_v28 = vsub.f32 %v614_v56, %v650_v27  ;;  %v652_v29 = vsub.f32 %v621_v59, %v650_v27  ;;  %v653_v30 = vsub.f32 %v628_v63, %v650_v27  ;;  %v654_v31 = vsub.f32 %v635_v14, %v650_v27 }
  0x44   : > { %v655_v32 = vmul.f32 %v651_v28, %v651_v28  ;;  %v656_v33 = vmul.f32 %v652_v29, %v652_v29  ;;  %v657_v34 = vmul.f32 %v653_v30, %v653_v30  ;;  %v658_v35 = vmul.f32 %v654_v31, %v654_v31 }
  0x46   : > { %v659_v36 = vsel %vm15215_vm1, %v655_v32, 0.0  ;;  %v660_v37 = vsel %vm15215_vm1, %v656_v33, 0.0  ;;  %v662_v38 = vsel %vm15215_vm1, %v657_v34, 0.0  ;;  %v664_v40 = vsel %vm15215_vm1, %v658_v35, 0.0  ;;  %v1252_v35 = vld [vmem:[%s15051_s5 + $0x10] sm:$0xff] }
  0x47   : > { %v661_v39 = vadd.f32 %v660_v37, %v659_v36  ;;  %v1253_v36 = vld [vmem:[%s15051_s5 + $0x18] sm:$0xff] }
  0x49   : > { %v663_v41 = vadd.f32 %v662_v38, %v661_v39 }
  0x4b   : > { %v665_v42 = vadd.f32 %v664_v40, %v663_v41 }
  0x4d   : > { %v666_v43 = vrot.slane %v665_v42, 4 }
  0x4f   : > { %v667_v44 = vadd.f32 %v666_v43, %v665_v42 }
  0x51   : > { %v668_v45 = vrot.slane %v667_v44, 2 }
  0x53   : > { %v669_v46 = vadd.f32 %v668_v45, %v667_v44 }
  0x55   : > { %v670_v47 = vrot.slane %v669_v46, 1 }
  0x57   : > { %v671_v50 = vadd.f32 %v670_v47, %v669_v46 }
  0x59   : > { %v672_v53 = vmul.f32 0.03125, %v671_v50 }
  0x5b   : > { %v673_v54 = vadd.f32 1e-06, %v672_v53 }
  0x5d   : > { %12306 = vrsqrt.f32 %v673_v54 }
  0x67   : > { %v12307_v61 = vpop.eup %12306 }
  0x68   : > { %v675_v62 = vmul.f32 %v12307_v61, %v651_v28  ;;  %v676_v7 = vmul.f32 %v12307_v61, %v652_v29  ;;  %v677_v8 = vmul.f32 %v12307_v61, %v653_v30  ;;  %v678_v56 = vmul.f32 %v12307_v61, %v654_v31  ;;  %v982_v28 = vld [vmem:[%s15050_s4 + $0x18] sm:$0xff]  ;;  %v1250_v29 = vld [vmem:[%s15051_s5] sm:$0xff]  ;;  %v1251_v30 = vld [vmem:[%s15051_s5 + $0x8] sm:$0xff] }
  0x6a   : > { %v691_v59 = vmul.f32 %v12299_v55, %v675_v62  ;;  %v692_v12 = vmul.f32 %v12301_v57, %v676_v7  ;;  %v693_v63 = vmul.f32 %v12303_v58, %v677_v8  ;;  %v694_v13 = vmul.f32 %v12305_v60, %v678_v56 }
  0x6c   : > { %v695_v14 = vmul.f32 %v691_v59, %v12576_v1  ;;  %v696_v15 = vmul.f32 %v692_v12, %v12578_v2  ;;  %v699_v19 = vmul.f32 %v691_v59, %v12584_v5  ;;  %v700_v20 = vmul.f32 %v692_v12, %v12586_v6 }
  0x6d   : > { %v697_v21 = vmul.f32 %v693_v63, %v12580_v3  ;;  %v698_v22 = vmul.f32 %v694_v13, %v12582_v4  ;;  %v701_v23 = vmul.f32 %v693_v63, %v12592_v9  ;;  %v702_v24 = vmul.f32 %v694_v13, %v12594_v10  ;;  %v708_v9 = vld [vmem:[%s15049_s3 + $0x8] sm:$0xff]  ;;  %v709_v10 = vld [vmem:[%s15049_s3 + $0x10] sm:$0xff] }
  0x6e   : > { %v11722_v25 = vpack.c.bf16 %v696_v15, %v695_v14  ;;  %v12652_v26 = vpack.c.bf16 %v700_v20, %v699_v19  ;;  %v703_v27 = vmul.f32 %v691_v59, %v12596_v11  ;;  %v704_v1 = vmul.f32 %v692_v12, %v12606_v16  ;;  %v710_v16 = vld [vmem:[%s15049_s3 + $0x18] sm:$0xff] }
  0x6f   : > { %v12656_v2 = vpack.c.bf16 %v698_v22, %v697_v21  ;;  %v12658_v5 = vpack.c.bf16 %v702_v24, %v701_v23  ;;  %v705_v4 = vmul.f32 %v693_v63, %v12608_v17  ;;  %v706_v6 = vmul.f32 %v694_v13, %v12610_v18  ;;  %v979_v17 = vld [vmem:[%s15050_s4] sm:$0xff]  ;;  %v980_v18 = vld [vmem:[%s15050_s4 + $0x8] sm:$0xff] }
  0x70   : > { %11723 = vmatprep.subr.bf16.mxu0 %v11722_v25  ;;  %11731 = vmatprep.subr.bf16.mxu1 %v12652_v26  ;;  %v12664_v3 = vpack.c.bf16 %v704_v1, %v703_v27 }
  0x71   : > { %11725 = vmatpush3.bf16.msra.mxu0 %v11722_v25  ;;  %11733 = vmatpush3.bf16.msra.mxu1 %v12652_v26  ;;  %v11742_v11 = vpack.c.bf16 %v706_v6, %v705_v4 }
  0x72   : > { %11727 = vmatprep.subr.bf16.mxu0 %v12656_v2  ;;  %11735 = vmatprep.subr.bf16.mxu1 %v12658_v5 }
  0x75   : > { %11729 = vmatpush3.bf16.msra.mxu0 %v12656_v2  ;;  %11737 = vmatpush3.bf16.msra.mxu1 %v12658_v5 }
  0x76   : > { %11739 = vmatprep.subr.bf16.mxu0 %v12664_v3  ;;  %11747 = vmatprep.subr.bf16.mxu1 %v11722_v25 }
  0x78   : > { %10729 = vmatmul.mubr.msk.f32.vlgmr.msra.gmra.mrb[0].mxu0 %vm711_vm0, %v708_v9  ;;  %10743 = vmatmul.mubr.msk.f32.vlgmr.msra.gmra.mrb[0].mxu1 %vm711_vm0, %v708_v9 }
  0x79   : > { %11741 = vmatpush3.bf16.msra.mxu0 %v12664_v3  ;;  %10731 = vmatprep.mubr.msk.f32.mxu0 %vm711_vm0, %v709_v10 }
  0x7a   : > { %10745 = vmatprep.mubr.msk.f32.mxu1 %vm711_vm0, %v709_v10  ;;  %11743 = vmatprep.subr.bf16.mxu0 %v11742_v11 }
  0x7b   : > { %11749 = vmatpush3.bf16.msra.mxu1 %v11722_v25 }
  0x7c   : > { %10732 = vmatmul.mubr.msk.f32.gmra.mrb[2].mxu0 %vm711_vm0, %v710_v16  ;;  %10746 = vmatmul.mubr.msk.f32.gmra.mrb[2].mxu1 %vm711_vm0, %v710_v16 }
  0x7d   : > { %11745 = vmatpush3.bf16.msra.mxu0 %v11742_v11  ;;  %10756 = vmatprep.mubr.msk.f32.mxu0 %vm711_vm0, %v12564_v0  ;;  %v981_v0 = vld [vmem:[%s15050_s4 + $0x10] sm:$0xff] }
  0x7e   : > { %11755 = vmatprep.subr.bf16.mxu0 %v12652_v26  ;;  %11751 = vmatprep.subr.bf16.mxu1 %v12656_v2 }
  0x7f   : > { %11753 = vmatpush3.bf16.msra.mxu1 %v12656_v2  ;;  %10770 = vmatprep.mubr.msk.f32.mxu1 %vm711_vm0, %v979_v17 }
  0x80   : > { %10757 = vmatmul.mubr.msk.f32.vlgmr.msra.gmra.mrb[4].mxu0 %vm711_vm0, %v708_v9  ;;  %11763 = vmatprep.subr.bf16.mxu1 %v12664_v3 }
  0x81   : > { %10759 = vmatprep.mubr.msk.f32.mxu0 %vm711_vm0, %v709_v10  ;;  %11757 = vmatpush3.bf16.msra.mxu0 %v12652_v26 }
  0x82   : > { %11759 = vmatprep.subr.bf16.mxu0 %v12658_v5  ;;  %10771 = vmatmul.mubr.msk.f32.vlgmr.msra.gmra.mrb[4].mxu1 %vm711_vm0, %v980_v18 }
  0x83   : > { %11765 = vmatpush3.bf16.msra.mxu1 %v12664_v3  ;;  %10773 = vmatprep.mubr.msk.f32.mxu1 %vm711_vm0, %v981_v0 }
  0x84   : > { %10760 = vmatmul.mubr.msk.f32.gmra.mrb[6].mxu0 %vm711_vm0, %v710_v16  ;;  %11767 = vmatprep.subr.bf16.mxu1 %v11742_v11 }
  0x85   : > { %11761 = vmatpush3.bf16.msra.mxu0 %v12658_v5  ;;  %10784 = vmatprep.mubr.msk.f32.mxu0 %vm711_vm0, %v979_v17 }
  0x86   : > { %10774 = vmatmul.mubr.msk.f32.gmra.mrb[6].mxu1 %vm711_vm0, %v982_v28  ;;  %11771 = vmatprep.subr.bf16.mxu0 %v11722_v25 }
  0x87   : > { %11769 = vmatpush3.bf16.msra.mxu1 %v11742_v11  ;;  %10798 = vmatprep.mubr.msk.f32.mxu1 %vm711_vm0, %v979_v17 }
  0x88   : > { %10785 = vmatmul.mubr.msk.f32.vlgmr.msra.gmra.mrb[8].mxu0 %vm711_vm0, %v980_v18  ;;  %11779 = vmatprep.subr.bf16.mxu1 %v12652_v26 }
  0x89   : > { %10787 = vmatprep.mubr.msk.f32.mxu0 %vm711_vm0, %v981_v0  ;;  %11773 = vmatpush3.bf16.msra.mxu0 %v11722_v25 }
  0x8a   : > { %10799 = vmatmul.mubr.msk.f32.vlgmr.msra.gmra.mrb[8].mxu1 %vm711_vm0, %v980_v18  ;;  %11775 = vmatprep.subr.bf16.mxu0 %v12656_v2 }
  0x8b   : > { %10801 = vmatprep.mubr.msk.f32.mxu1 %vm711_vm0, %v981_v0  ;;  %11781 = vmatpush3.bf16.msra.mxu1 %v12652_v26 }
  0x8c   : > { %10788 = vmatmul.mubr.msk.f32.gmra.mrb[10].mxu0 %vm711_vm0, %v982_v28  ;;  %11783 = vmatprep.subr.bf16.mxu1 %v12658_v5 }
  0x8d   : > { %11777 = vmatpush3.bf16.msra.mxu0 %v12656_v2  ;;  %10812 = vmatprep.mubr.msk.f32.mxu0 %vm711_vm0, %v1250_v29 }
  0x8e   : > { %10802 = vmatmul.mubr.msk.f32.gmra.mrb[10].mxu1 %vm711_vm0, %v982_v28  ;;  %11787 = vmatprep.subr.bf16.mxu0 %v12664_v3 }
  0x8f   : > { %11785 = vmatpush3.bf16.msra.mxu1 %v12658_v5  ;;  %10826 = vmatprep.mubr.msk.f32.mxu1 %vm711_vm0, %v1250_v29 }
  0x90   : > { %10813 = vmatmul.mubr.msk.f32.vlgmr.msra.gmra.mrb[12].mxu0 %vm711_vm0, %v1251_v30 }
  0x91   : > { %11789 = vmatpush3.bf16.msra.mxu0 %v12664_v3  ;;  %10815 = vmatprep.mubr.msk.f32.mxu0 %vm711_vm0, %v1252_v35 }
  0x92   : > { %10827 = vmatmul.mubr.msk.f32.vlgmr.msra.gmra.mrb[12].mxu1 %vm711_vm0, %v1251_v30  ;;  %11791 = vmatprep.subr.bf16.mxu0 %v11742_v11 }
  0x93   : > { %10829 = vmatprep.mubr.msk.f32.mxu1 %vm711_vm0, %v1252_v35 }
  0x94   : > { %10816 = vmatmul.mubr.msk.f32.gmra.mrb[14].mxu0 %vm711_vm0, %v1253_v36 }
  0x95   : > { %11793 = vmatpush3.bf16.msra.mxu0 %v11742_v11  ;;  %10840 = vmatprep.mubr.msk.f32.mxu0 %vm711_vm0, %v1250_v29 }
  0x96   : > { %10830 = vmatmul.mubr.msk.f32.gmra.mrb[14].mxu1 %vm711_vm0, %v1253_v36 }
  0x98   : > { %10841 = vmatmul.mubr.msk.f32.vlgmr.msra.gmra.mrb[16].mxu0 %vm711_vm0, %v1251_v30 }
  0x99   : > { %10843 = vmatprep.mubr.msk.f32.mxu0 %vm711_vm0, %v1252_v35 }
  0x9c   : > { %10844 = vmatmul.mubr.msk.f32.gmra.mrb[18].mxu0 %vm711_vm0, %v1253_v36 }
 0x14b   : > { %v10744_v31 = vpop.f32.mrb[0].mxu1  ;;  %v10730_v32 = vpop.f32.mrb[0].mxu0 }
 0x14c   : > { %v875_v33 = vpop.f32.mrb[1].mxu1  ;;  %v790_v34 = vpop.f32.mrb[1].mxu0 }
 0x14d   : > { %1649 = vxpose.xlu0.b32.start.end [1/1] (short) (narrow) %v875_v33, 16 }
 0x14f   : > { %v10747_v37 = vpop.f32.mrb[2].mxu1  ;;  %v10733_v38 = vpop.f32.mrb[2].mxu0 }
 0x150   : > { %1745 = vxpose.xlu1.b32.start.end [1/1] (short) (narrow) %v10747_v37, 16  ;;  %v885_v39 = vpop.f32.mrb[3].mxu1  ;;  %v800_v40 = vpop.f32.mrb[3].mxu0 }
 0x152   : > { %1681 = vxpose.xlu0.b32.start.end [1/1] (short) (narrow) %v10744_v31, 16 }
 0x153   : > { %v10758_v41 = vpop.f32.mrb[4].mxu0 }
 0x154   : > { %v960_v42 = vpop.f32.mrb[5].mxu0 }
 0x155   : > { %2102 = vxpose.xlu1.b32.start.end [1/1] (short) (narrow) %v960_v42, 16  ;;  %v12755_v43 = vpop.f32.mrb[4].mxu1 }
 0x156   : > { %v12757_v44 = vpop.f32.mrb[5].mxu1 }
 0x157   : > { %2134 = vxpose.xlu0.b32.start.end [1/1] (short) (narrow) %v10758_v41, 16  ;;  %v10761_v45 = vpop.f32.mrb[6].mxu0 }
 0x158   : > { %v970_v46 = vpop.f32.mrb[7].mxu0 }
 0x159   : > { %v12760_v47 = vpop.f32.mrb[6].mxu1 }
 0x15a   : > { %2198 = vxpose.xlu1.b32.start.end [1/1] (short) (narrow) %v10761_v45, 16  ;;  %v12762_v48 = vpop.f32.mrb[7].mxu1 }
 0x15b   : > { %v10786_v49 = vpop.f32.mrb[8].mxu0 }
 0x15c   : > { %1521 = vxpose.xlu0.b32.start.end [1/1] (short) (narrow) %v790_v34, 16  ;;  %v1146_v50 = vpop.f32.mrb[9].mxu0 }
 0x15d   : > { %10846 = vmatprep.subr.mxu1 %v1146_v50  ;;  %v10800_v51 = vpop.f32.mrb[8].mxu1 }
 0x15e   : > { %10847 = vmatpush3.msra.mxu1 %v1146_v50  ;;  %v1231_v52 = vpop.f32.mrb[9].mxu1 }
 0x15f   : > { %1713 = vxpose.xlu1.b32.start.end [1/1] (short) (narrow) %v885_v39, 16  ;;  %10851 = vmatprep.subr.mxu1 %v10786_v49  ;;  %v10789_v53 = vpop.f32.mrb[10].mxu0 }
 0x160   : > { %v1156_v54 = vpop.f32.mrb[11].mxu0 }
 0x161   : > { %1553 = vxpose.xlu0.b32.start.end [1/1] (short) (narrow) %v10730_v32, 16  ;;  %10856 = vmatprep.subr.mxu0 %v1156_v54  ;;  %v10803_v55 = vpop.f32.mrb[10].mxu1 }
 0x162   : > { %10857 = vmatpush3.msra.mxu0 %v1156_v54  ;;  %v1241_v57 = vpop.f32.mrb[11].mxu1 }
 0x163   : > { %10876 = vmatprep.subr.mxu0 %v1241_v57  ;;  %v12766_v60 = vpop.f32.mrb[12].mxu0 }
 0x164   : > { %2166 = vxpose.xlu1.b32.start.end [1/1] (short) (narrow) %v970_v46, 16  ;;  %v12770_v62 = vpop.f32.mrb[13].mxu0 }
 0x165   : > { %v12764_v58 = vpop.f32.mrb[12].mxu1 }
 0x166   : > { %1585 = vxpose.xlu0.b32.start.end [1/1] (short) (narrow) %v800_v40, 16  ;;  %v12768_v61 = vpop.f32.mrb[13].mxu1 }
 0x167   : > { %v12806_v10 = vpop.f32.mrb[14].mxu0 }
 0x168   : > { %v12810_v16 = vpop.f32.mrb[15].mxu0 }
 0x169   : > { %1617 = vxpose.xlu1.b32.start.end [1/1] (short) (narrow) %v10733_v38, 16  ;;  %v12804_v9 = vpop.f32.mrb[14].mxu1 }
 0x16a   : > { %v12808_v11 = vpop.f32.mrb[15].mxu1 }
 0x16b   : > { %v12812_v17 = vpop.f32.mrb[16].mxu0 }
 0x16c   : > { %v12814_v0 = vpop.f32.mrb[17].mxu0 }
 0x16f   : > { %v12816_v18 = vpop.f32.mrb[18].mxu0 }
 0x170   : > { %v12818_v28 = vpop.f32.mrb[19].mxu0 }
 0x1cd   : > { %v1665_v7 = vpop.trf.xlu0 }
 0x1ce   : > { %10848 = vmatprep.mubr.msk.f32.mxu1 %vm1777_vm10, %v1665_v7 }
 0x1d0   : > { %v1761_v8 = vpop.trf.xlu1 }
 0x1d1   : > { %v1666_v56 = vpop.trf.xlu0 }
 0x1d2   : > { %10849 = vmatmul.mubr.msk.f32.vlgmr.msra.gmra.mrb[16].mxu1 %vm1777_vm10, %v1666_v56 }
 0x1d3   : > { %10852 = vmatpush3.msra.mxu1 %v10786_v49 }
 0x1d4   : > { %v1762_v59 = vpop.trf.xlu1  ;;  %10861 = vmatprep.subr.mxu1 %v10789_v53 }
 0x1d5   : > { %v1697_v12 = vpop.trf.xlu0 }
 0x1d6   : > { %10853 = vmatprep.mubr.msk.f32.mxu1 %vm1777_vm10, %v1697_v12 }
 0x1d8   : > { %v2118_v63 = vpop.trf.xlu1 }
 0x1d9   : > { %v1698_v13 = vpop.trf.xlu0 }
 0x1da   : > { %10854 = vmatmul.mubr.msk.f32.vlgmr.msra.gmra.mrb[18].mxu1 %vm1777_vm10, %v1698_v13 }
 0x1db   : > { %10863 = vmatprep.mubr.msk.f32.mxu1 %vm1777_vm10, %v1761_v8  ;;  %10862 = vmatpush3.msra.mxu1 %v10789_v53 }
 0x1dc   : > { %v2119_v14 = vpop.trf.xlu1  ;;  %10866 = vmatprep.subr.mxu1 %v1231_v52 }
 0x1dd   : > { %v2150_v15 = vpop.trf.xlu0 }
 0x1de   : > { %10864 = vmatmul.mubr.msk.f32.vlgmr.msra.gmra.mrb[20].mxu1 %vm1777_vm10, %v1762_v59 }
 0x1df   : > { %10867 = vmatpush3.msra.mxu1 %v1231_v52  ;;  %10868 = vmatprep.mubr.msk.f32.mxu1 %vm1777_vm10, %v2118_v63 }
 0x1e0   : > { %v2214_v19 = vpop.trf.xlu1  ;;  %10871 = vmatprep.subr.mxu1 %v10800_v51 }
 0x1e1   : > { %v2151_v20 = vpop.trf.xlu0 }
 0x1e2   : > { %10869 = vmatmul.mubr.msk.f32.vlgmr.msra.gmra.mrb[16].mxu1 %vm1777_vm10, %v2119_v14 }
 0x1e3   : > { %10872 = vmatpush3.msra.mxu1 %v10800_v51  ;;  %10873 = vmatprep.mubr.msk.f32.mxu1 %vm1777_vm10, %v2150_v15 }
 0x1e4   : > { %v2215_v21 = vpop.trf.xlu1  ;;  %10881 = vmatprep.subr.mxu1 %v10803_v55 }
 0x1e5   : > { %v1537_v22 = vpop.trf.xlu0 }
 0x1e6   : > { %10874 = vmatmul.mubr.msk.f32.vlgmr.msra.gmra.mrb[18].mxu1 %vm1777_vm10, %v2151_v20 }
 0x1e7   : > { %10882 = vmatpush3.msra.mxu1 %v10803_v55  ;;  %10883 = vmatprep.mubr.msk.f32.mxu1 %vm1777_vm10, %v2214_v19 }
 0x1e8   : > { %10886 = vmatprep.subr.mxu1 %v12757_v44  ;;  %v1729_v23 = vpop.trf.xlu1 }
 0x1e9   : > { %v1538_v24 = vpop.trf.xlu0  ;;  %10858 = vmatprep.mubr.msk.f32.mxu0 %vm1777_vm10, %v1729_v23 }
 0x1ea   : > { %10884 = vmatmul.mubr.msk.f32.vlgmr.msra.gmra.mrb[20].mxu1 %vm1777_vm10, %v2215_v21 }
 0x1eb   : > { %10887 = vmatpush3.msra.mxu1 %v12757_v44  ;;  %10888 = vmatprep.mubr.msk.f32.mxu1 %vm1777_vm10, %v1537_v22 }
 0x1ec   : > { %10891 = vmatprep.subr.mxu1 %v12755_v43  ;;  %v1730_v25 = vpop.trf.xlu1 }
 0x1ed   : > { %v1569_v26 = vpop.trf.xlu0  ;;  %10859 = vmatmul.mubr.msk.f32.vlgmr.msra.gmra.mrb[20].mxu0 %vm1777_vm10, %v1730_v25 }
 0x1ee   : > { %10877 = vmatpush3.msra.mxu0 %v1241_v57  ;;  %10889 = vmatmul.mubr.msk.f32.vlgmr.msra.gmra.mrb[16].mxu1 %vm1777_vm10, %v1538_v24 }
 0x1ef   : > { %10892 = vmatpush3.msra.mxu1 %v12755_v43  ;;  %10896 = vmatprep.subr.mxu0 %v12762_v48 }
 0x1f0   : > { %10901 = vmatprep.subr.mxu1 %v12760_v47  ;;  %v2182_v27 = vpop.trf.xlu1  ;;  %10893 = vmatprep.mubr.msk.f32.mxu1 %vm1777_vm10, %v1569_v26 }
 0x1f1   : > { %v1570_v1 = vpop.trf.xlu0  ;;  %10878 = vmatprep.mubr.msk.f32.mxu0 %vm1777_vm10, %v2182_v27 }
 0x1f2   : > { %10894 = vmatmul.mubr.msk.f32.vlgmr.msra.gmra.mrb[18].mxu1 %vm1777_vm10, %v1570_v1 }
 0x1f3   : > { %10902 = vmatpush3.msra.mxu1 %v12760_v47 }
 0x1f4   : > { %v2183_v2 = vpop.trf.xlu1 }
 0x1f5   : > { %10879 = vmatmul.mubr.msk.f32.vlgmr.msra.gmra.mrb[20].mxu0 %vm1777_vm10, %v2183_v2  ;;  %v1601_v5 = vpop.trf.xlu0 }
 0x1f6   : > { %10897 = vmatpush3.msra.mxu0 %v12762_v48  ;;  %10898 = vmatprep.mubr.msk.f32.mxu0 %vm1777_vm10, %v1601_v5 }
 0x1f8   : > { %v1633_v3 = vpop.trf.xlu1 }
 0x1f9   : > { %10903 = vmatprep.mubr.msk.f32.mxu1 %vm1777_vm10, %v1633_v3  ;;  %v1602_v4 = vpop.trf.xlu0 }
 0x1fc   : > { %v1634_v6 = vpop.trf.xlu1 }
 0x1fd   : > { %10899 = vmatmul.mubr.msk.f32.vlgmr.msra.gmra.mrb[20].mxu0 %vm1777_vm10, %v1602_v4  ;;  %10904 = vmatmul.mubr.msk.f32.vlgmr.msra.gmra.mrb[20].mxu1 %vm1777_vm10, %v1634_v6 }
 0x2c1   : > { %v10890_v29 = vpop.f32.mrb[16].mxu1 }
 0x2c2   : > { %v2887_v30 = vmul.f32 0.20412415, %v10890_v29  ;;  %v2626_v31 = vpop.f32.mrb[17].mxu1 }
 0x2c3   : > { %v2886_v32 = vmul.f32 0.20412415, %v2626_v31 }
 0x2c4   : > { %v2897_v33 = vsel %vm15215_vm1, %v2887_v30, -inf }
 0x2c5   : > { %2898 = vmax.xlane.f32.xlu1 %v2897_v33  ;;  %v10895_v34 = vpop.f32.mrb[18].mxu1  ;;  %v2894_v35 = vsel %vm15215_vm1, %v2886_v32, -inf }
 0x2c6   : > { %v2889_v36 = vmul.f32 0.20412415, %v10895_v34  ;;  %2895 = vmax.xlane.f32.xlu0 %v2894_v35  ;;  %v2707_v37 = vpop.f32.mrb[19].mxu1 }
 0x2c7   : > { %v2888_v38 = vmul.f32 0.20412415, %v2707_v37 }
 0x2c8   : > { %v2903_v39 = vsel %vm15215_vm1, %v2889_v36, -inf }
 0x2c9   : > { %2904 = vmax.xlane.f32.xlu1 %v2903_v39  ;;  %v2900_v40 = vsel %vm15215_vm1, %v2888_v38, -inf }
 0x2cd   : > { %2901 = vmax.xlane.f32.xlu1 %v2900_v40 }
 0x2d0   : > { %v10900_v41 = vpop.f32.mrb[20].mxu0  ;;  %v10905_v42 = vpop.f32.mrb[20].mxu1 }
 0x2d1   : > { %v2891_v43 = vmul.f32 0.20412415, %v10900_v41  ;;  %v2788_v44 = vpop.f32.mrb[21].mxu0  ;;  %v2869_v45 = vpop.f32.mrb[21].mxu1  ;;  %v2893_v47 = vmul.f32 0.20412415, %v10905_v42 }
 0x2d2   : > { %v2890_v46 = vmul.f32 0.20412415, %v2788_v44  ;;  %v2892_v49 = vmul.f32 0.20412415, %v2869_v45  ;;  %v12465_v41 = vmov 0.0|0.0   ;;  %v12467_v42 = vmov 0.0  }
 0x2d3   : > { %v2909_v48 = vsel %vm15215_vm1, %v2891_v43, -inf  ;;  %v2915_v51 = vsel %vm15215_vm1, %v2893_v47, -inf  ;;  %11794 = vmatprep.subr.bf16.mxu0 %v12465_v41  ;;  %11806 = vmatprep.subr.bf16.mxu1 %v12465_v41 }
 0x2d4   : > { %2910 = vmax.xlane.f32.xlu1 %v2909_v48  ;;  %v2906_v50 = vsel %vm15215_vm1, %v2890_v46, -inf  ;;  %v2912_v52 = vsel %vm15215_vm1, %v2892_v49, -inf  ;;  %10910 = vmatprep.mubr.msk.f32.mxu0 %vm12466_vm11, %v12467_v42 }
 0x2d5   : > { %2907 = vmax.xlane.f32.xlu0 %v2906_v50  ;;  %10931 = vmatprep.mubr.msk.f32.mxu1 %vm12466_vm11, %v12467_v42 }
 0x2d8   : > { %2916 = vmax.xlane.f32.xlu1 %v2915_v51 }
 0x2d9   : > { %2913 = vmax.xlane.f32.xlu0 %v2912_v52 }
 0x352   : > { %v2899_v53 = vpop.xlane.xlu1 %2898 }
 0x353   : > { %v2919_v54 = vsub.f32 %v2887_v30, %v2899_v53  ;;  %v2896_v55 = vpop.xlane.xlu0 %2895 }
 0x354   : > { %v2918_v57 = vsub.f32 %v2886_v32, %v2896_v55 }
 0x355   : > { %v2928_v7 = vmul.f32 1.442695, %v2919_v54 }
 0x356   : > { %v2926_v8 = vmul.f32 1.442695, %v2918_v57  ;;  %v2905_v56 = vpop.xlane.xlu1 %2904 }
 0x357   : > { %12308 = vpow2.f32 %v2928_v7  ;;  %v2921_v59 = vsub.f32 %v2889_v36, %v2905_v56 }
 0x358   : > { %12310 = vpow2.f32 %v2926_v8 }
 0x359   : > { %v2932_v12 = vmul.f32 1.442695, %v2921_v59 }
 0x35a   : > { %v2902_v63 = vpop.xlane.xlu1 %2901 }
 0x35b   : > { %12312 = vpow2.f32 %v2932_v12  ;;  %v2920_v13 = vsub.f32 %v2888_v38, %v2902_v63 }
 0x35d   : > { %v2930_v14 = vmul.f32 1.442695, %v2920_v13 }
 0x35f   : > { %12314 = vpow2.f32 %v2930_v14 }
 0x361   : > { %v12309_v15 = vpop.eup %12308  ;;  %v2911_v19 = vpop.xlane.xlu1 %2910 }
 0x362   : > { %v12311_v20 = vpop.eup %12310  ;;  %v2923_v21 = vsub.f32 %v2891_v43, %v2911_v19  ;;  %v2908_v22 = vpop.xlane.xlu0 %2907  ;;  %v2945_v23 = vsel %vm15215_vm1, %v12309_v15, 0.0 }
 0x363   : > { %v2922_v24 = vsub.f32 %v2890_v46, %v2908_v22  ;;  %2946 = vadd.xlane.f32.xlu1 %v2945_v23  ;;  %v2942_v25 = vsel %vm15215_vm1, %v12311_v20, 0.0 }
 0x364   : > { %v2936_v26 = vmul.f32 1.442695, %v2923_v21  ;;  %2943 = vadd.xlane.f32.xlu0 %v2942_v25 }
 0x365   : > { %v12313_v27 = vpop.eup %12312  ;;  %v2934_v1 = vmul.f32 1.442695, %v2922_v24  ;;  %v2917_v2 = vpop.xlane.xlu1 %2916  ;;  %v3891_v24 = vld [vmem:[%s15052_s6 + $0x8] sm:$0xff] }
 0x366   : > { %12316 = vpow2.f32 %v2936_v26  ;;  %v2925_v5 = vsub.f32 %v2893_v47, %v2917_v2  ;;  %v2914_v3 = vpop.xlane.xlu0 %2913  ;;  %v2951_v4 = vsel %vm15215_vm1, %v12313_v27, 0.0  ;;  %v3892_v26 = vld [vmem:[%s15052_s6 + $0x10] sm:$0xff]  ;;  %v3893_v2 = vld [vmem:[%s15052_s6 + $0x18] sm:$0xff] }
 0x367   : > { %12318 = vpow2.f32 %v2934_v1  ;;  %v2924_v6 = vsub.f32 %v2892_v49, %v2914_v3  ;;  %2952 = vadd.xlane.f32.xlu1 %v2951_v4 }
 0x368   : > { %v2940_v29 = vmul.f32 1.442695, %v2925_v5 }
 0x369   : > { %v12315_v30 = vpop.eup %12314  ;;  %v2938_v31 = vmul.f32 1.442695, %v2924_v6 }
 0x36a   : > { %12320 = vpow2.f32 %v2940_v29  ;;  %v2948_v32 = vsel %vm15215_vm1, %v12315_v30, 0.0 }
 0x36b   : > { %12322 = vpow2.f32 %v2938_v31  ;;  %2949 = vadd.xlane.f32.xlu0 %v2948_v32 }
 0x370   : > { %v12317_v33 = vpop.eup %12316 }
 0x371   : > { %v12319_v34 = vpop.eup %12318  ;;  %v2957_v35 = vsel %vm15215_vm1, %v12317_v33, 0.0 }
 0x372   : > { %2958 = vadd.xlane.f32.xlu1 %v2957_v35  ;;  %v2954_v36 = vsel %vm15215_vm1, %v12319_v34, 0.0 }
 0x373   : > { %2955 = vadd.xlane.f32.xlu0 %v2954_v36 }
 0x374   : > { %v12321_v37 = vpop.eup %12320 }
 0x375   : > { %v12323_v38 = vpop.eup %12322  ;;  %v2963_v39 = vsel %vm15215_vm1, %v12321_v37, 0.0 }
 0x376   : > { %2964 = vadd.xlane.f32.xlu1 %v2963_v39  ;;  %v2960_v40 = vsel %vm15215_vm1, %v12323_v38, 0.0 }
 0x377   : > { %2961 = vadd.xlane.f32.xlu0 %v2960_v40 }
 0x3f0   : > { %v2947_v43 = vpop.xlane.xlu1 %2946 }
 0x3f1   : > { %12324 = vrcp.f32 %v2947_v43  ;;  %v2944_v44 = vpop.xlane.xlu0 %2943 }
 0x3f2   : > { %12326 = vrcp.f32 %v2944_v44 }
 0x3f4   : > { %v2953_v45 = vpop.xlane.xlu1 %2952 }
 0x3f5   : > { %12328 = vrcp.f32 %v2953_v45 }
 0x3f8   : > { %v2950_v46 = vpop.xlane.xlu0 %2949 }
 0x3f9   : > { %12330 = vrcp.f32 %v2950_v46 }
 0x3fb   : > { %v12325_v47 = vpop.eup %12324 }
 0x3fc   : > { %v12327_v48 = vpop.eup %12326  ;;  %v2983_v49 = vmul.f32 %v12325_v47, %v12309_v15 }
 0x3fd   : > { %v2982_v50 = vmul.f32 %v12327_v48, %v12311_v20  ;;  %v12953_v48 = vld [vmem:[%s15053_s7] sm:$0xff] }
 0x3ff   : > { %v2959_v52 = vpop.xlane.xlu1 %2958  ;;  %v11795_v53 = vpack.c.bf16 %v2983_v49, %v2982_v50  ;;  %v12329_v55 = vpop.eup %12328 }
 0x400   : > { %12332 = vrcp.f32 %v2959_v52  ;;  %v2956_v54 = vpop.xlane.xlu0 %2955  ;;  %v2985_v8 = vmul.f32 %v12329_v55, %v12313_v27  ;;  %v544_v55 = vld [vmem:[%s12963_s21 + $0x28] sm:$0xff] }
 0x401   : > { %12334 = vrcp.f32 %v2956_v54  ;;  %11797 = vmatpush3.bf16.xpose.msk.msra.mxu0 %vm12844_vm12, %v11795_v53  ;;  %v540_v54 = vld [vmem:[%s12963_s21 + $0x8] sm:$0xff] }
 0x402   : > { %11798 = vmatprep.subr.bf16.mxu0 %v12465_v41 }
 0x403   : > { %v12331_v57 = vpop.eup %12330  ;;  %v2965_v7 = vpop.xlane.xlu1 %2964 }
 0x404   : > { %v2984_v56 = vmul.f32 %v12331_v57, %v12315_v30  ;;  %12336 = vrcp.f32 %v2965_v7  ;;  %v2962_v59 = vpop.xlane.xlu0 %2961  ;;  %v539_v57 = vld [vmem:[%s12963_s21] sm:$0xff] }
 0x405   : > { %12338 = vrcp.f32 %v2962_v59  ;;  %v543_v7 = vld [vmem:[%s12963_s21 + $0x20] sm:$0xff]  ;;  %v542_v59 = vld [vmem:[%s12963_s21 + $0x18] sm:$0xff] }
 0x406   : > { %v11799_v12 = vpack.c.bf16 %v2985_v8, %v2984_v56 }
 0x408   : > { %10911 = vmatmul.mubr.msk.f32.vlgmr.msra.gmra.mrb[22].mxu0 %vm15215_vm1, %v12770_v62 }
 0x409   : > { %11801 = vmatpush3.bf16.xpose.msk.msra.mxu0 %vm12844_vm12, %v11799_v12  ;;  %10917 = vmatprep.mubr.msk.f32.mxu0 %vm12466_vm11, %v12467_v42 }
 0x40a   : > { %v12333_v63 = vpop.eup %12332  ;;  %11802 = vmatprep.subr.bf16.mxu0 %v12465_v41 }
 0x40b   : > { %v12335_v13 = vpop.eup %12334  ;;  %v2987_v14 = vmul.f32 %v12333_v63, %v12317_v33 }
 0x40c   : > { %v2986_v15 = vmul.f32 %v12335_v13, %v12319_v34  ;;  %v546_v13 = vld [vmem:[%s12963_s21 + $0x38] sm:$0xff] }
 0x40e   : > { %v12337_v19 = vpop.eup %12336  ;;  %v11803_v20 = vpack.c.bf16 %v2987_v14, %v2986_v15 }
 0x40f   : > { %v12339_v21 = vpop.eup %12338  ;;  %v2989_v22 = vmul.f32 %v12337_v19, %v12321_v37 }
 0x410   : > { %v2988_v23 = vmul.f32 %v12339_v21, %v12323_v38  ;;  %10918 = vmatmul.mubr.msk.f32.vlgmr.msra.gmra.mrb[24].mxu0 %vm15215_vm1, %v12766_v60 }
 0x411   : > { %11805 = vmatpush3.bf16.xpose.msk.msra.mxu0 %vm12844_vm12, %v11803_v20  ;;  %10924 = vmatprep.mubr.msk.f32.mxu0 %vm12466_vm11, %v12467_v42 }
 0x412   : > { %v11807_v62 = vpack.c.bf16 %v2989_v22, %v2988_v23  ;;  %11810 = vmatprep.subr.bf16.mxu0 %v12465_v41 }
 0x414   : > { %11809 = vmatpush3.bf16.xpose.msk.msra.mxu1 %vm12844_vm12, %v11807_v62 }
 0x415   : > { %11814 = vmatprep.subr.bf16.mxu1 %v12465_v41 }
 0x418   : > { %10925 = vmatmul.mubr.msk.f32.vlgmr.msra.gmra.mrb[26].mxu0 %vm15215_vm1, %v12810_v16 }
 0x419   : > { %11813 = vmatpush3.bf16.xpose.msk.msra.mxu0 %vm12844_vm12, %v11795_v53  ;;  %10938 = vmatprep.mubr.msk.f32.mxu0 %vm12466_vm11, %v12467_v42 }
 0x41a   : > { %11818 = vmatprep.subr.bf16.mxu0 %v12465_v41 }
 0x41b   : > { %10932 = vmatmul.mubr.msk.f32.vlgmr.msra.gmra.mrb[22].mxu1 %vm15215_vm1, %v12806_v10 }
 0x41c   : > { %11817 = vmatpush3.bf16.xpose.msk.msra.mxu1 %vm12844_vm12, %v11799_v12  ;;  %10945 = vmatprep.mubr.msk.f32.mxu1 %vm12466_vm11, %v12467_v42 }
 0x41d   : > { %11822 = vmatprep.subr.bf16.mxu1 %v12465_v41 }
 0x420   : > { %10939 = vmatmul.mubr.msk.f32.vlgmr.msra.gmra.mrb[28].mxu0 %vm15215_vm1, %v12768_v61 }
 0x421   : > { %11821 = vmatpush3.bf16.xpose.msk.msra.mxu0 %vm12844_vm12, %v11803_v20  ;;  %10952 = vmatprep.mubr.msk.f32.mxu0 %vm12466_vm11, %v12467_v42 }
 0x422   : > { %11826 = vmatprep.subr.bf16.mxu0 %v12465_v41 }
 0x423   : > { %10946 = vmatmul.mubr.msk.f32.vlgmr.msra.gmra.mrb[24].mxu1 %vm15215_vm1, %v12764_v58  ;;  %v3890_v58 = vld [vmem:[%s15052_s6] sm:$0xff] }
 0x424   : > { %11825 = vmatpush3.bf16.xpose.msk.msra.mxu1 %vm12844_vm12, %v11807_v62  ;;  %10959 = vmatprep.mubr.msk.f32.mxu1 %vm12466_vm11, %v12467_v42 }
 0x425   : > { %11830 = vmatprep.subr.bf16.mxu1 %v12465_v41 }
 0x428   : > { %10953 = vmatmul.mubr.msk.f32.vlgmr.msra.gmra.mrb[30].mxu0 %vm15215_vm1, %v12808_v11 }
 0x429   : > { %11829 = vmatpush3.bf16.xpose.msk.msra.mxu0 %vm12844_vm12, %v11795_v53  ;;  %10966 = vmatprep.mubr.msk.f32.mxu0 %vm12466_vm11, %v12467_v42 }
 0x42a   : > { %11834 = vmatprep.subr.bf16.mxu0 %v12465_v41 }
 0x42b   : > { %10960 = vmatmul.mubr.msk.f32.vlgmr.msra.gmra.mrb[26].mxu1 %vm15215_vm1, %v12804_v9 }
 0x42c   : > { %11833 = vmatpush3.bf16.xpose.msk.msra.mxu1 %vm12844_vm12, %v11799_v12  ;;  %10973 = vmatprep.mubr.msk.f32.mxu1 %vm12466_vm11, %v12467_v42 }
 0x42d   : > { %11838 = vmatprep.subr.bf16.mxu1 %v12465_v41 }
 0x430   : > { %10967 = vmatmul.mubr.msk.f32.vlgmr.msra.gmra.mrb[32].mxu0 %vm15215_vm1, %v12814_v0 }
 0x431   : > { %11837 = vmatpush3.bf16.xpose.msk.msra.mxu0 %vm12844_vm12, %v11803_v20  ;;  %10980 = vmatprep.mubr.msk.f32.mxu0 %vm12466_vm11, %v12467_v42  ;;  %v541_v20 = vld [vmem:[%s12963_s21 + $0x10] sm:$0xff] }
 0x433   : > { %10974 = vmatmul.mubr.msk.f32.vlgmr.msra.gmra.mrb[28].mxu1 %vm15215_vm1, %v12812_v17 }
 0x434   : > { %11841 = vmatpush3.bf16.xpose.msk.msra.mxu1 %vm12844_vm12, %v11807_v62  ;;  %10987 = vmatprep.mubr.msk.f32.mxu1 %vm12466_vm11, %v12467_v42  ;;  %v545_v62 = vld [vmem:[%s12963_s21 + $0x30] sm:$0xff] }
 0x438   : > { %10981 = vmatmul.mubr.msk.f32.vlgmr.msra.gmra.mrb[34].mxu0 %vm15215_vm1, %v12818_v28 }
 0x439   : > { %10998 = vmatprep.mubr.msk.f32.mxu0 %vm711_vm0, %v3890_v58 }
 0x43b   : > { %10988 = vmatmul.mubr.msk.f32.vlgmr.msra.gmra.mrb[30].mxu1 %vm15215_vm1, %v12816_v18 }
 0x43c   : > { %11012 = vmatprep.mubr.msk.f32.mxu1 %vm711_vm0, %v3890_v58 }
 0x4db   : > { %v3065_v60 = vpop.f32.mrb[22].mxu0 }
 0x4dc   : > { %v10912_v61 = vpop.f32.mrb[23].mxu0 }
 0x4e3   : > { %v3144_v9 = vpop.f32.mrb[24].mxu0 }
 0x4e4   : > { %v11842_v10 = vpack.c.bf16 %v3144_v9, %v3065_v60  ;;  %v10919_v11 = vpop.f32.mrb[25].mxu0  ;;  %v547_v60 = vld [vmem:[%s12963_s21 + $0x40] sm:$0xff] }
 0x4e6   : > { %11843 = vmatprep.subr.bf16.mxu0 %v11842_v10 }
 0x4e7   : > { %11845 = vmatpush3.bf16.msra.mxu0 %v11842_v10 }
 0x4eb   : > { %v3223_v16 = vpop.f32.mrb[26].mxu0 }
 0x4ec   : > { %v10926_v17 = vpop.f32.mrb[27].mxu0 }
 0x4ee   : > { %v3302_v0 = vpop.f32.mrb[22].mxu1 }
 0x4ef   : > { %v11846_v28 = vpack.c.bf16 %v3302_v0, %v3223_v16  ;;  %v10933_v18 = vpop.f32.mrb[23].mxu1 }
 0x4f1   : > { %11847 = vmatprep.subr.bf16.mxu0 %v11846_v28 }
 0x4f2   : > { %11849 = vmatpush3.bf16.msra.mxu0 %v11846_v28 }
 0x4f3   : > { %v3375_v25 = vpop.f32.mrb[28].mxu0 }
 0x4f4   : > { %v10940_v27 = vpop.f32.mrb[29].mxu0 }
 0x4f5   : > { %10999 = vmatmul.mubr.msk.f32.vlgmr.msra.gmra.mrb[36].mxu0 %vm711_vm0, %v3891_v24  ;;  %v550_v27 = vld [vmem:[%s12963_s21 + $0x58] sm:$0xff] }
 0x4f6   : > { %v3448_v1 = vpop.f32.mrb[24].mxu1  ;;  %11001 = vmatprep.mubr.msk.f32.mxu0 %vm711_vm0, %v3892_v26 }
 0x4f7   : > { %v11850_v5 = vpack.c.bf16 %v3448_v1, %v3375_v25  ;;  %v10947_v3 = vpop.f32.mrb[25].mxu1 }
 0x4f9   : > { %11851 = vmatprep.subr.bf16.mxu1 %v11850_v5  ;;  %11002 = vmatmul.mubr.msk.f32.gmra.mrb[38].mxu0 %vm711_vm0, %v3893_v2 }
 0x4fa   : > { %11853 = vmatpush3.bf16.msra.mxu1 %v11850_v5  ;;  %11026 = vmatprep.mubr.msk.f32.mxu0 %vm711_vm0, %v3890_v58  ;;  %v548_v58 = vld [vmem:[%s12963_s21 + $0x48] sm:$0xff] }
 0x4fb   : > { %v3521_v4 = vpop.f32.mrb[30].mxu0 }
 0x4fc   : > { %v10954_v6 = vpop.f32.mrb[31].mxu0 }
 0x4fe   : > { %v3594_v29 = vpop.f32.mrb[26].mxu1 }
 0x4ff   : > { %v11854_v30 = vpack.c.bf16 %v3594_v29, %v3521_v4  ;;  %v10961_v31 = vpop.f32.mrb[27].mxu1 }
 0x501   : > { %11855 = vmatprep.subr.bf16.mxu1 %v11854_v30 }
 0x502   : > { %11857 = vmatpush3.bf16.msra.mxu1 %v11854_v30 }
 0x503   : > { %v3667_v32 = vpop.f32.mrb[32].mxu0 }
 0x504   : > { %v10968_v33 = vpop.f32.mrb[33].mxu0 }
 0x505   : > { %11013 = vmatmul.mubr.msk.f32.vlgmr.msra.gmra.mrb[32].mxu1 %vm711_vm0, %v3891_v24 }
 0x506   : > { %v3740_v34 = vpop.f32.mrb[28].mxu1  ;;  %11015 = vmatprep.mubr.msk.f32.mxu1 %vm711_vm0, %v3892_v26 }
 0x507   : > { %v11858_v35 = vpack.c.bf16 %v3740_v34, %v3667_v32  ;;  %v10975_v36 = vpop.f32.mrb[29].mxu1 }
 0x509   : > { %11859 = vmatprep.subr.bf16.mxu0 %v11858_v35  ;;  %11016 = vmatmul.mubr.msk.f32.gmra.mrb[34].mxu1 %vm711_vm0, %v3893_v2 }
 0x50a   : > { %11861 = vmatpush3.bf16.msra.mxu0 %v11858_v35  ;;  %11040 = vmatprep.mubr.msk.f32.mxu1 %vm711_vm0, %v12953_v48 }
 0x50b   : > { %v3813_v37 = vpop.f32.mrb[34].mxu0 }
 0x50c   : > { %v10982_v38 = vpop.f32.mrb[35].mxu0 }
 0x50e   : > { %v3886_v39 = vpop.f32.mrb[30].mxu1 }
 0x50f   : > { %v11862_v40 = vpack.c.bf16 %v3886_v39, %v3813_v37  ;;  %v10989_v43 = vpop.f32.mrb[31].mxu1 }
 0x511   : > { %11863 = vmatprep.subr.bf16.mxu0 %v11862_v40 }
 0x512   : > { %11865 = vmatpush3.bf16.msra.mxu0 %v11862_v40 }
 0x515   : > { %11027 = vmatmul.mubr.msk.f32.vlgmr.msra.gmra.mrb[40].mxu0 %vm711_vm0, %v3891_v24 }
 0x516   : > { %11029 = vmatprep.mubr.msk.f32.mxu0 %vm711_vm0, %v3892_v26 }
 0x519   : > { %11030 = vmatmul.mubr.msk.f32.gmra.mrb[42].mxu0 %vm711_vm0, %v3893_v2  ;;  %v549_v2 = vld [vmem:[%s12963_s21 + $0x50] sm:$0xff] }
 0x51a   : > { %11054 = vmatprep.mubr.msk.f32.mxu0 %vm711_vm0, %v12953_v48 }
 0x5c8   : > { %v11000_v44 = vpop.f32.mrb[36].mxu0 }
 0x5c9   : > { %v3972_v45 = vpop.f32.mrb[37].mxu0  ;;  %v12969_v8 = vadd.f32 %v11000_v44, %v540_v54 }
 0x5ca   : > { %v12974_v12 = vadd.f32 %v3972_v45, %v539_v57 }
 0x5cb   : > { %v4174_v15 = vmul.f32 %v12969_v8, %v12969_v8 }
 0x5cc   : > { %v11003_v46 = vpop.f32.mrb[38].mxu0  ;;  %v4173_v21 = vmul.f32 %v12974_v12, %v12974_v12 }
 0x5cd   : > { %v3982_v47 = vpop.f32.mrb[39].mxu0  ;;  %v12979_v14 = vadd.f32 %v11003_v46, %v542_v59  ;;  %v4190_v11 = vsel %vm15215_vm1, %v4174_v15, 0.0 }
 0x5ce   : > { %v12997_v9 = vadd.f32 %v3982_v47, %v541_v20  ;;  %v4185_v18 = vsel %vm15215_vm1, %v4173_v21, 0.0 }
 0x5cf   : > { %v4176_v61 = vmul.f32 %v12979_v14, %v12979_v14 }
 0x5d0   : > { %v4175_v4 = vmul.f32 %v12997_v9, %v12997_v9 }
 0x5d1   : > { %v4200_v3 = vsel %vm15215_vm1, %v4176_v61, 0.0 }
 0x5d2   : > { %v4195_v44 = vsel %vm15215_vm1, %v4175_v4, 0.0 }
 0x5d8   : > { %v11014_v49 = vpop.f32.mrb[32].mxu1 }
 0x5d9   : > { %v4057_v50 = vpop.f32.mrb[33].mxu1  ;;  %v12971_v56 = vadd.f32 %v11014_v49, %v544_v55 }
 0x5da   : > { %v12976_v63 = vadd.f32 %v4057_v50, %v543_v7 }
 0x5db   : > { %v4178_v19 = vmul.f32 %v12971_v56, %v12971_v56 }
 0x5dc   : > { %v11017_v52 = vpop.f32.mrb[34].mxu1  ;;  %v4177_v22 = vmul.f32 %v12976_v63, %v12976_v63 }
 0x5dd   : > { %v4067_v53 = vpop.f32.mrb[35].mxu1  ;;  %v12990_v23 = vadd.f32 %v11017_v52, %v546_v13  ;;  %v4191_v16 = vsel %vm15215_vm1, %v4178_v19, 0.0 }
 0x5de   : > { %v13001_v17 = vadd.f32 %v4067_v53, %v545_v62  ;;  %v4186_v24 = vsel %vm15215_vm1, %v4177_v22, 0.0  ;;  %v4192_v5 = vadd.f32 %v4191_v16, %v4190_v11 }
 0x5df   : > { %v4180_v25 = vmul.f32 %v12990_v23, %v12990_v23  ;;  %v4187_v30 = vadd.f32 %v4186_v24, %v4185_v18 }
 0x5e0   : > { %v4179_v31 = vmul.f32 %v13001_v17, %v13001_v17 }
 0x5e1   : > { %v4201_v35 = vsel %vm15215_vm1, %v4180_v25, 0.0 }
 0x5e2   : > { %v4202_v43 = vadd.f32 %v4201_v35, %v4200_v3  ;;  %v4196_v45 = vsel %vm15215_vm1, %v4179_v31, 0.0 }
 0x5e3   : > { %v4197_v50 = vadd.f32 %v4196_v45, %v4195_v44 }
 0x5e8   : > { %v11028_v10 = vpop.f32.mrb[40].mxu0 }
 0x5e9   : > { %v13003_v0 = vadd.f32 %v11028_v10, %v548_v58  ;;  %v4142_v28 = vpop.f32.mrb[41].mxu0 }
 0x5ea   : > { %v13009_v26 = vadd.f32 %v4142_v28, %v547_v60 }
 0x5eb   : > { %v4182_v1 = vmul.f32 %v13003_v0, %v13003_v0 }
 0x5ec   : > { %v4181_v6 = vmul.f32 %v13009_v26, %v13009_v26  ;;  %v11031_v29 = vpop.f32.mrb[42].mxu0 }
 0x5ed   : > { %v4193_v32 = vsel %vm15215_vm1, %v4182_v1, 0.0  ;;  %v13023_v33 = vadd.f32 %v11031_v29, %v550_v27  ;;  %v4152_v34 = vpop.f32.mrb[43].mxu0 }
 0x5ee   : > { %v4194_v36 = vadd.f32 %v4193_v32, %v4192_v5  ;;  %v4188_v37 = vsel %vm15215_vm1, %v4181_v6, 0.0  ;;  %v13027_v38 = vadd.f32 %v4152_v34, %v549_v2 }
 0x5ef   : > { %v4189_v39 = vadd.f32 %v4188_v37, %v4187_v30  ;;  %v4184_v40 = vmul.f32 %v13023_v33, %v13023_v33 }
 0x5f0   : > { %12340 = vrsqrt.f32 %v4194_v36  ;;  %v4183_v47 = vmul.f32 %v13027_v38, %v13027_v38  ;;  %vm4214_vm13 = vcmp.eq.f32.partialorder %v4194_v36, inf  ;;  %v4217_v13 = vand.u32 2147483648, %v4194_v36 }
 0x5f1   : > { %12342 = vrsqrt.f32 %v4189_v39  ;;  %v4203_v46 = vsel %vm15215_vm1, %v4184_v40, 0.0  ;;  %vm4207_vm14 = vcmp.eq.f32.partialorder %v4189_v39, inf  ;;  %v4210_v19 = vand.u32 2147483648, %v4189_v39 }
 0x5f2   : > { %v4204_v49 = vadd.f32 %v4203_v46, %v4202_v43  ;;  %v4198_v52 = vsel %vm15215_vm1, %v4183_v47, 0.0  ;;  %vm4216_vm15 = vcmp.eq.f32.partialorder %v4194_v36, 0.0  ;;  %vm4209_vm2 = vcmp.eq.f32.partialorder %v4189_v39, 0.0 }
 0x5f3   : > { %v4199_v53 = vadd.f32 %v4198_v52, %v4197_v50 }
 0x5f4   : > { %12344 = vrsqrt.f32 %v4204_v49  ;;  %vm4228_vm3 = vcmp.eq.f32.partialorder %v4204_v49, inf  ;;  %v4231_v16 = vand.u32 2147483648, %v4204_v49  ;;  %vm4230_vm5 = vcmp.eq.f32.partialorder %v4204_v49, 0.0 }
 0x5f5   : > { %12346 = vrsqrt.f32 %v4199_v53  ;;  %vm4221_vm4 = vcmp.eq.f32.partialorder %v4199_v53, inf  ;;  %v4224_v28 = vand.u32 2147483648, %v4199_v53  ;;  %vm4223_vm6 = vcmp.eq.f32.partialorder %v4199_v53, 0.0 }
 0x5fa   : > { %v12341_v54 = vpop.eup %12340 }
 0x5fb   : > { %v12343_v55 = vpop.eup %12342  ;;  %v4213_v57 = vmul.f32 %v12341_v54, %v4194_v36 }
 0x5fc   : > { %v4206_v7 = vmul.f32 %v12343_v55, %v4189_v39 }
 0x5fd   : > { %v4215_v59 = vsel %vm4214_vm13, %v4194_v36, %v4213_v57 }
 0x5fe   : > { %v4208_v15 = vsel %vm4207_vm14, %v4189_v39, %v4206_v7  ;;  %v12345_v20 = vpop.eup %12344  ;;  %v4218_v21 = vsel %vm4216_vm15, %v4217_v13, %v4215_v59 }
 0x5ff   : > { %v4211_v22 = vsel %vm4209_vm2, %v4210_v19, %v4208_v15  ;;  %v4227_v62 = vmul.f32 %v12345_v20, %v4204_v49  ;;  %v12347_v58 = vpop.eup %12346  ;;  %v4234_v11 = vsel %vm15215_vm1, %v4218_v21, 0.0  ;;  %v4276_v19 = vadd.f32 1e-06, %v4218_v21 }
 0x600   : > { %v4220_v61 = vmul.f32 %v12347_v58, %v4199_v53  ;;  %v4233_v10 = vsel %vm15215_vm1, %v4211_v22, 0.0  ;;  %v4275_v20 = vadd.f32 1e-06, %v4211_v22 }
 0x601   : > { %v4229_v60 = vsel %vm4228_vm3, %v4204_v49, %v4227_v62  ;;  %v4235_v27 = vadd.f32 %v4234_v11, %v4233_v10  ;;  %12348 = vrcp.f32 %v4276_v19  ;;  %v571_v19 = vld [vmem:[%s13057_s24 + $0x40] sm:$0xff] }
 0x602   : > { %v4222_v18 = vsel %vm4221_vm4, %v4199_v53, %v4220_v61  ;;  %v4232_v25 = vsel %vm4230_vm5, %v4231_v16, %v4229_v60  ;;  %12350 = vrcp.f32 %v4275_v20  ;;  %v572_v20 = vld [vmem:[%s13057_s24 + $0x48] sm:$0xff] }
 0x603   : > { %v4225_v24 = vsel %vm4223_vm6, %v4224_v28, %v4222_v18  ;;  %v4238_v5 = vsel %vm15215_vm1, %v4232_v25, 0.0  ;;  %v4278_v58 = vadd.f32 1e-06, %v4232_v25 }
 0x604   : > { %v4236_v1 = vsel %vm15215_vm1, %v4225_v24, 0.0  ;;  %v4277_v61 = vadd.f32 1e-06, %v4225_v24 }
 0x605   : > { %v4237_v2 = vadd.f32 %v4236_v1, %v4235_v27 }
 0x607   : > { %v4239_v3 = vadd.f32 %v4238_v5, %v4237_v2 }
 0x609   : > { %v4240_v4 = vrot.slane %v4239_v3, 4 }
 0x60b   : > { %v4241_v6 = vadd.f32 %v4240_v4, %v4239_v3  ;;  %v12349_v10 = vpop.eup %12348 }
 0x60c   : > { %v12351_v11 = vpop.eup %12350 }
 0x60d   : > { %v4242_v29 = vrot.slane %v4241_v6, 2 }
 0x60f   : > { %v4243_v30 = vadd.f32 %v4242_v29, %v4241_v6 }
 0x611   : > { %v4244_v31 = vrot.slane %v4243_v30, 1 }
 0x613   : > { %v4245_v32 = vadd.f32 %v4244_v31, %v4243_v30 }
 0x615   : > { %v4246_v34 = vmul.f32 0.03125, %v4245_v32 }
 0x617   : > { %v4247_v35 = vsub.f32 %v4211_v22, %v4246_v34  ;;  %v4248_v36 = vsub.f32 %v4218_v21, %v4246_v34  ;;  %v4249_v37 = vsub.f32 %v4225_v24, %v4246_v34  ;;  %v4250_v39 = vsub.f32 %v4232_v25, %v4246_v34 }
 0x619   : > { %v4251_v40 = vmul.f32 %v4247_v35, %v4247_v35  ;;  %v4252_v43 = vmul.f32 %v4248_v36, %v4248_v36  ;;  %v4253_v44 = vmul.f32 %v4249_v37, %v4249_v37  ;;  %v4254_v45 = vmul.f32 %v4250_v39, %v4250_v39 }
 0x61b   : > { %v4255_v46 = vsel %vm15215_vm1, %v4251_v40, 0.0  ;;  %v4256_v47 = vsel %vm15215_vm1, %v4252_v43, 0.0  ;;  %v4258_v50 = vsel %vm15215_vm1, %v4253_v44, 0.0  ;;  %v4260_v53 = vsel %vm15215_vm1, %v4254_v45, 0.0  ;;  %v563_v43 = vld [vmem:[%s13057_s24] sm:$0xff]  ;;  %v564_v44 = vld [vmem:[%s13057_s24 + $0x8] sm:$0xff] }
 0x61c   : > { %v4257_v49 = vadd.f32 %v4256_v47, %v4255_v46  ;;  %v13063_v46 = vpack.c.bf16 %v564_v44, %v563_v43 }
 0x61e   : > { %v4259_v52 = vadd.f32 %v4258_v50, %v4257_v49 }
 0x620   : > { %v4261_v54 = vadd.f32 %v4260_v53, %v4259_v52  ;;  %v4304_v52 = vld [vmem:[%s15053_s7 + $0x8] sm:$0xff]  ;;  %v565_v53 = vld [vmem:[%s13057_s24 + $0x10] sm:$0xff] }
 0x622   : > { %v4262_v55 = vrot.slane %v4261_v54, 4 }
 0x624   : > { %v4263_v57 = vadd.f32 %v4262_v55, %v4261_v54  ;;  %v566_v54 = vld [vmem:[%s13057_s24 + $0x18] sm:$0xff]  ;;  %v4305_v55 = vld [vmem:[%s15053_s7 + $0x10] sm:$0xff] }
 0x626   : > { %v4264_v7 = vrot.slane %v4263_v57, 2 }
 0x628   : > { %v4265_v59 = vadd.f32 %v4264_v7, %v4263_v57  ;;  %v567_v57 = vld [vmem:[%s13057_s24 + $0x20] sm:$0xff]  ;;  %v568_v7 = vld [vmem:[%s13057_s24 + $0x28] sm:$0xff] }
 0x62a   : > { %v4266_v13 = vrot.slane %v4265_v59, 1 }
 0x62c   : > { %v4267_v15 = vadd.f32 %v4266_v13, %v4265_v59  ;;  %v11894_v13 = vpack.c.bf16 %v566_v54, %v565_v53 }
 0x62e   : > { %v4268_v62 = vmul.f32 0.03125, %v4267_v15  ;;  %v4306_v15 = vld [vmem:[%s15053_s7 + $0x18] sm:$0xff] }
 0x630   : > { %v4269_v60 = vadd.f32 1e-06, %v4268_v62  ;;  %v11898_v62 = vpack.c.bf16 %v568_v7, %v567_v57 }
 0x632   : > { %12352 = vrsqrt.f32 %v4269_v60  ;;  %v570_v60 = vld [vmem:[%s13057_s24 + $0x38] sm:$0xff] }
 0x633   : > { %12354 = vrcp.f32 %v4278_v58  ;;  %v569_v58 = vld [vmem:[%s13057_s24 + $0x30] sm:$0xff] }
 0x634   : > { %12356 = vrcp.f32 %v4277_v61  ;;  %v11906_v61 = vpack.c.bf16 %v572_v20, %v571_v19 }
 0x63c   : > { %v12353_v16 = vpop.eup %12352 }
 0x63d   : > { %v12355_v28 = vpop.eup %12354  ;;  %v4273_v18 = vmul.f32 %v12353_v16, %v4249_v37  ;;  %v4271_v27 = vmul.f32 %v12353_v16, %v4247_v35  ;;  %v4272_v1 = vmul.f32 %v12353_v16, %v4248_v36  ;;  %v4274_v2 = vmul.f32 %v12353_v16, %v4250_v39 }
 0x63e   : > { %v12357_v21 = vpop.eup %12356  ;;  %v11902_v16 = vpack.c.bf16 %v570_v60, %v569_v58 }
 0x63f   : > { %v4289_v22 = vmul.f32 %v12357_v21, %v4273_v18  ;;  %v4287_v5 = vmul.f32 %v12351_v11, %v4271_v27  ;;  %v4288_v25 = vmul.f32 %v12349_v10, %v4272_v1  ;;  %v4290_v3 = vmul.f32 %v12355_v28, %v4274_v2  ;;  %v573_v10 = vld [vmem:[%s13057_s24 + $0x50] sm:$0xff]  ;;  %v574_v11 = vld [vmem:[%s13057_s24 + $0x58] sm:$0xff]  ;;  %v4574_v28 = vld [vmem:[%s15054_s8] sm:$0xff] }
 0x640   : > { %v11910_v18 = vpack.c.bf16 %v574_v11, %v573_v10  ;;  %v4576_v27 = vld [vmem:[%s15054_s8 + $0x10] sm:$0xff]  ;;  %v4577_v1 = vld [vmem:[%s15054_s8 + $0x18] sm:$0xff]  ;;  %v4845_v2 = vld [vmem:[%s15055_s9] sm:$0xff] }
 0x641   : > { %v4291_v24 = vmul.f32 %v4287_v5, %v12974_v12  ;;  %v4292_v4 = vmul.f32 %v4288_v25, %v12969_v8  ;;  %v4295_v6 = vmul.f32 %v4287_v5, %v12976_v63  ;;  %v4296_v29 = vmul.f32 %v4288_v25, %v12971_v56  ;;  %v4846_v21 = vld [vmem:[%s15055_s9 + $0x8] sm:$0xff] }
 0x642   : > { %v4293_v30 = vmul.f32 %v4289_v22, %v12997_v9  ;;  %v4294_v31 = vmul.f32 %v4290_v3, %v12979_v14  ;;  %v4297_v32 = vmul.f32 %v4289_v22, %v13001_v17  ;;  %v4298_v35 = vmul.f32 %v4290_v3, %v12990_v23 }
 0x643   : > { %v11866_v34 = vpack.c.bf16 %v4292_v4, %v4291_v24  ;;  %v11874_v36 = vpack.c.bf16 %v4296_v29, %v4295_v6  ;;  %v4299_v39 = vmul.f32 %v4287_v5, %v13009_v26  ;;  %v4300_v40 = vmul.f32 %v4288_v25, %v13003_v0  ;;  %v4848_v5 = vld [vmem:[%s15055_s9 + $0x18] sm:$0xff] }
 0x644   : > { %v11870_v37 = vpack.c.bf16 %v4294_v31, %v4293_v30  ;;  %v11878_v45 = vpack.c.bf16 %v4298_v35, %v4297_v32  ;;  %v4301_v47 = vmul.f32 %v4289_v22, %v13027_v38  ;;  %v4302_v50 = vmul.f32 %v4290_v3, %v13023_v33  ;;  %v4847_v22 = vld [vmem:[%s15055_s9 + $0x10] sm:$0xff] }
 0x645   : > { %11867 = vmatprep.subr.bf16.mxu1 %v11866_v34  ;;  %11875 = vmatprep.subr.bf16.mxu0 %v11874_v36  ;;  %v11882_v49 = vpack.c.bf16 %v4300_v40, %v4299_v39 }
 0x646   : > { %11869 = vmatpush3.bf16.msra.mxu1 %v11866_v34  ;;  %11877 = vmatpush3.bf16.msra.mxu0 %v11874_v36  ;;  %v11886_v59 = vpack.c.bf16 %v4302_v50, %v4301_v47 }
 0x647   : > { %11871 = vmatprep.subr.bf16.mxu1 %v11870_v37  ;;  %11879 = vmatprep.subr.bf16.mxu0 %v11878_v45 }
 0x64a   : > { %11873 = vmatpush3.bf16.msra.mxu1 %v11870_v37  ;;  %11881 = vmatpush3.bf16.msra.mxu0 %v11878_v45 }
 0x64b   : > { %11883 = vmatprep.subr.bf16.mxu1 %v11882_v49  ;;  %11891 = vmatprep.subr.bf16.mxu0 %v13063_v46 }
 0x64d   : > { %11041 = vmatmul.mubr.msk.f32.vlgmr.msra.gmra.mrb[36].mxu1 %vm711_vm0, %v4304_v52  ;;  %11055 = vmatmul.mubr.msk.f32.vlgmr.msra.gmra.mrb[44].mxu0 %vm711_vm0, %v4304_v52 }
 0x64e   : > { %11885 = vmatpush3.bf16.msra.mxu1 %v11882_v49  ;;  %11043 = vmatprep.mubr.msk.f32.mxu1 %vm711_vm0, %v4305_v55 }
 0x64f   : > { %11887 = vmatprep.subr.bf16.mxu1 %v11886_v59  ;;  %11057 = vmatprep.mubr.msk.f32.mxu0 %vm711_vm0, %v4305_v55 }
 0x650   : > { %11893 = vmatpush3.bf16.msra.mxu0 %v13063_v46 }
 0x651   : > { %11044 = vmatmul.mubr.msk.f32.gmra.mrb[38].mxu1 %vm711_vm0, %v4306_v15  ;;  %11895 = vmatprep.subr.bf16.mxu0 %v11894_v13 }
 0x652   : > { %11889 = vmatpush3.bf16.msra.mxu1 %v11886_v59  ;;  %11058 = vmatmul.mubr.msk.f32.gmra.mrb[46].mxu0 %vm711_vm0, %v4306_v15 }
 0x653   : > { %11068 = vmatprep.mubr.msk.f32.mxu1 %vm711_vm0, %v12953_v48  ;;  %11899 = vmatprep.subr.bf16.mxu1 %v11898_v62  ;;  %v4575_v48 = vld [vmem:[%s15054_s8 + $0x8] sm:$0xff] }
 0x654   : > { %11897 = vmatpush3.bf16.msra.mxu0 %v11894_v13  ;;  %11082 = vmatprep.mubr.msk.f32.mxu0 %vm711_vm0, %v4574_v28 }
 0x655   : > { %11069 = vmatmul.mubr.msk.f32.vlgmr.msra.gmra.mrb[40].mxu1 %vm711_vm0, %v4304_v52  ;;  %11907 = vmatprep.subr.bf16.mxu0 %v11906_v61 }
 0x656   : > { %11071 = vmatprep.mubr.msk.f32.mxu1 %vm711_vm0, %v4305_v55  ;;  %11901 = vmatpush3.bf16.msra.mxu1 %v11898_v62 }
 0x657   : > { %11903 = vmatprep.subr.bf16.mxu1 %v11902_v16  ;;  %11083 = vmatmul.mubr.msk.f32.vlgmr.msra.gmra.mrb[48].mxu0 %vm711_vm0, %v4575_v48 }
 0x658   : > { %11909 = vmatpush3.bf16.msra.mxu0 %v11906_v61  ;;  %11085 = vmatprep.mubr.msk.f32.mxu0 %vm711_vm0, %v4576_v27 }
 0x659   : > { %11072 = vmatmul.mubr.msk.f32.gmra.mrb[42].mxu1 %vm711_vm0, %v4306_v15  ;;  %11911 = vmatprep.subr.bf16.mxu0 %v11910_v18 }
 0x65a   : > { %11905 = vmatpush3.bf16.msra.mxu1 %v11902_v16  ;;  %11096 = vmatprep.mubr.msk.f32.mxu1 %vm711_vm0, %v4574_v28 }
 0x65b   : > { %11086 = vmatmul.mubr.msk.f32.gmra.mrb[50].mxu0 %vm711_vm0, %v4577_v1  ;;  %11915 = vmatprep.subr.bf16.mxu1 %v13063_v46 }
 0x65c   : > { %11913 = vmatpush3.bf16.msra.mxu0 %v11910_v18  ;;  %11110 = vmatprep.mubr.msk.f32.mxu0 %vm711_vm0, %v4574_v28 }
 0x65d   : > { %11097 = vmatmul.mubr.msk.f32.vlgmr.msra.gmra.mrb[44].mxu1 %vm711_vm0, %v4575_v48  ;;  %11923 = vmatprep.subr.bf16.mxu0 %v11898_v62 }
 0x65e   : > { %11099 = vmatprep.mubr.msk.f32.mxu1 %vm711_vm0, %v4576_v27  ;;  %11917 = vmatpush3.bf16.msra.mxu1 %v13063_v46 }
 0x65f   : > { %11111 = vmatmul.mubr.msk.f32.vlgmr.msra.gmra.mrb[52].mxu0 %vm711_vm0, %v4575_v48  ;;  %11919 = vmatprep.subr.bf16.mxu1 %v11894_v13 }
 0x660   : > { %11113 = vmatprep.mubr.msk.f32.mxu0 %vm711_vm0, %v4576_v27  ;;  %11925 = vmatpush3.bf16.msra.mxu0 %v11898_v62 }
 0x661   : > { %11100 = vmatmul.mubr.msk.f32.gmra.mrb[46].mxu1 %vm711_vm0, %v4577_v1  ;;  %11927 = vmatprep.subr.bf16.mxu0 %v11902_v16 }
 0x662   : > { %11921 = vmatpush3.bf16.msra.mxu1 %v11894_v13  ;;  %11124 = vmatprep.mubr.msk.f32.mxu1 %vm711_vm0, %v4845_v2 }
 0x663   : > { %11114 = vmatmul.mubr.msk.f32.gmra.mrb[54].mxu0 %vm711_vm0, %v4577_v1  ;;  %11931 = vmatprep.subr.bf16.mxu1 %v11906_v61 }
 0x664   : > { %11929 = vmatpush3.bf16.msra.mxu0 %v11902_v16  ;;  %11138 = vmatprep.mubr.msk.f32.mxu0 %vm711_vm0, %v4845_v2 }
 0x665   : > { %11125 = vmatmul.mubr.msk.f32.vlgmr.msra.gmra.mrb[48].mxu1 %vm711_vm0, %v4846_v21 }
 0x666   : > { %11933 = vmatpush3.bf16.msra.mxu1 %v11906_v61  ;;  %11127 = vmatprep.mubr.msk.f32.mxu1 %vm711_vm0, %v4847_v22 }
 0x667   : > { %11139 = vmatmul.mubr.msk.f32.vlgmr.msra.gmra.mrb[56].mxu0 %vm711_vm0, %v4846_v21  ;;  %11935 = vmatprep.subr.bf16.mxu1 %v11910_v18 }
 0x668   : > { %11141 = vmatprep.mubr.msk.f32.mxu0 %vm711_vm0, %v4847_v22 }
 0x669   : > { %11128 = vmatmul.mubr.msk.f32.gmra.mrb[50].mxu1 %vm711_vm0, %v4848_v5 }
 0x66a   : > { %11937 = vmatpush3.bf16.msra.mxu1 %v11910_v18  ;;  %11152 = vmatprep.mubr.msk.f32.mxu1 %vm711_vm0, %v4845_v2 }
 0x66b   : > { %11142 = vmatmul.mubr.msk.f32.gmra.mrb[58].mxu0 %vm711_vm0, %v4848_v5 }
 0x66d   : > { %11153 = vmatmul.mubr.msk.f32.vlgmr.msra.gmra.mrb[52].mxu1 %vm711_vm0, %v4846_v21 }
 0x66e   : > { %11155 = vmatprep.mubr.msk.f32.mxu1 %vm711_vm0, %v4847_v22 }
 0x671   : > { %11156 = vmatmul.mubr.msk.f32.gmra.mrb[54].mxu1 %vm711_vm0, %v4848_v5 }
 0x720   : > { %v11042_v25 = vpop.f32.mrb[36].mxu1  ;;  %v11056_v3 = vpop.f32.mrb[44].mxu0 }
 0x721   : > { %v4385_v24 = vpop.f32.mrb[37].mxu1  ;;  %5276 = vxpose.xlu1.b32.start.end [1/1] (short) (narrow) %v11056_v3, 16  ;;  %v4470_v4 = vpop.f32.mrb[45].mxu0 }
 0x722   : > { %5244 = vxpose.xlu0.b32.start.end [1/1] (short) (narrow) %v4470_v4, 16 }
 0x724   : > { %v11045_v6 = vpop.f32.mrb[38].mxu1 }
 0x725   : > { %v11059_v29 = vpop.f32.mrb[46].mxu0  ;;  %v4395_v30 = vpop.f32.mrb[39].mxu1 }
 0x726   : > { %v4480_v31 = vpop.f32.mrb[47].mxu0 }
 0x727   : > { %5340 = vxpose.xlu0.b32.start.end [1/1] (short) (narrow) %v11059_v29, 16 }
 0x728   : > { %v11070_v32 = vpop.f32.mrb[40].mxu1 }
 0x729   : > { %v4555_v34 = vpop.f32.mrb[41].mxu1 }
 0x72a   : > { %5696 = vxpose.xlu1.b32.start.end [1/1] (short) (narrow) %v4555_v34, 16  ;;  %v13149_v40 = vpop.f32.mrb[48].mxu0 }
 0x72b   : > { %v13151_v44 = vpop.f32.mrb[49].mxu0 }
 0x72c   : > { %v11073_v35 = vpop.f32.mrb[42].mxu1  ;;  %5308 = vxpose.xlu0.b32.start.end [1/1] (short) (narrow) %v4480_v31, 16 }
 0x72d   : > { %v4565_v36 = vpop.f32.mrb[43].mxu1 }
 0x72e   : > { %v13153_v45 = vpop.f32.mrb[50].mxu0 }
 0x72f   : > { %5760 = vxpose.xlu1.b32.start.end [1/1] (short) (narrow) %v4565_v36, 16  ;;  %v13155_v47 = vpop.f32.mrb[51].mxu0 }
 0x730   : > { %v11098_v37 = vpop.f32.mrb[44].mxu1 }
 0x731   : > { %v4741_v39 = vpop.f32.mrb[45].mxu1  ;;  %11163 = vmatprep.subr.mxu1 %v11098_v37  ;;  %5728 = vxpose.xlu0.b32.start.end [1/1] (short) (narrow) %v11070_v32, 16 }
 0x732   : > { %11158 = vmatprep.subr.mxu0 %v4741_v39  ;;  %11164 = vmatpush3.msra.mxu1 %v11098_v37  ;;  %v11112_v49 = vpop.f32.mrb[52].mxu0 }
 0x733   : > { %11159 = vmatpush3.msra.mxu0 %v4741_v39  ;;  %v4826_v50 = vpop.f32.mrb[53].mxu0 }
 0x734   : > { %5116 = vxpose.xlu1.b32.start.end [1/1] (short) (narrow) %v4385_v24, 16  ;;  %v11101_v43 = vpop.f32.mrb[46].mxu1 }
 0x735   : > { %11173 = vmatprep.subr.mxu1 %v11101_v43  ;;  %v4751_v46 = vpop.f32.mrb[47].mxu1 }
 0x736   : > { %11168 = vmatprep.subr.mxu0 %v4751_v46  ;;  %5792 = vxpose.xlu0.b32.start.end [1/1] (short) (narrow) %v11073_v35, 16  ;;  %v11115_v52 = vpop.f32.mrb[54].mxu0 }
 0x737   : > { %v4836_v53 = vpop.f32.mrb[55].mxu0 }
 0x738   : > { %v13157_v54 = vpop.f32.mrb[48].mxu1 }
 0x739   : > { %5180 = vxpose.xlu1.b32.start.end [1/1] (short) (narrow) %v4395_v30, 16  ;;  %v13161_v57 = vpop.f32.mrb[49].mxu1 }
 0x73a   : > { %v13159_v55 = vpop.f32.mrb[56].mxu0 }
 0x73b   : > { %5148 = vxpose.xlu0.b32.start.end [1/1] (short) (narrow) %v11042_v25, 16  ;;  %v13163_v7 = vpop.f32.mrb[57].mxu0 }
 0x73c   : > { %v13165_v59 = vpop.f32.mrb[50].mxu1 }
 0x73d   : > { %v13169_v15 = vpop.f32.mrb[51].mxu1 }
 0x73e   : > { %v13167_v13 = vpop.f32.mrb[58].mxu0 }
 0x73f   : > { %v13171_v19 = vpop.f32.mrb[59].mxu0 }
 0x740   : > { %5212 = vxpose.xlu0.b32.start.end [1/1] (short) (narrow) %v11045_v6, 16  ;;  %v13173_v20 = vpop.f32.mrb[52].mxu1 }
 0x741   : > { %v13175_v62 = vpop.f32.mrb[53].mxu1 }
 0x744   : > { %v13177_v60 = vpop.f32.mrb[54].mxu1 }
 0x745   : > { %v13180_v10 = vpop.f32.mrb[55].mxu1 }
 0x7a1   : > { %v5292_v58 = vpop.trf.xlu1 }
 0x7a2   : > { %v5260_v61 = vpop.trf.xlu0  ;;  %11165 = vmatprep.mubr.msk.f32.mxu1 %vm1777_vm10, %v5292_v58 }
 0x7a3   : > { %11160 = vmatprep.mubr.msk.f32.mxu0 %vm1777_vm10, %v5260_v61 }
 0x7a5   : > { %v5293_v11 = vpop.trf.xlu1 }
 0x7a6   : > { %v5261_v16 = vpop.trf.xlu0  ;;  %11166 = vmatmul.mubr.msk.f32.vlgmr.msra.gmra.mrb[56].mxu1 %vm1777_vm10, %v5293_v11 }
 0x7a7   : > { %11161 = vmatmul.mubr.msk.f32.vlgmr.msra.gmra.mrb[60].mxu0 %vm1777_vm10, %v5261_v16  ;;  %11174 = vmatpush3.msra.mxu1 %v11101_v43 }
 0x7a8   : > { %11169 = vmatpush3.msra.mxu0 %v4751_v46  ;;  %11183 = vmatprep.subr.mxu1 %v11112_v49 }
 0x7a9   : > { %11178 = vmatprep.subr.mxu0 %v4826_v50 }
 0x7aa   : > { %v5712_v28 = vpop.trf.xlu1  ;;  %v5356_v18 = vpop.trf.xlu0 }
 0x7ab   : > { %11175 = vmatprep.mubr.msk.f32.mxu1 %vm1777_vm10, %v5356_v18 }
 0x7ae   : > { %v5713_v48 = vpop.trf.xlu1  ;;  %v5357_v27 = vpop.trf.xlu0 }
 0x7af   : > { %11176 = vmatmul.mubr.msk.f32.vlgmr.msra.gmra.mrb[58].mxu1 %vm1777_vm10, %v5357_v27 }
 0x7b0   : > { %11184 = vmatpush3.msra.mxu1 %v11112_v49 }
 0x7b1   : > { %11193 = vmatprep.subr.mxu1 %v11115_v52 }
 0x7b2   : > { %v5776_v1 = vpop.trf.xlu1  ;;  %v5324_v2 = vpop.trf.xlu0 }
 0x7b3   : > { %11170 = vmatprep.mubr.msk.f32.mxu0 %vm1777_vm10, %v5324_v2 }
 0x7b6   : > { %v5777_v21 = vpop.trf.xlu1  ;;  %v5325_v22 = vpop.trf.xlu0 }
 0x7b7   : > { %11171 = vmatmul.mubr.msk.f32.vlgmr.msra.gmra.mrb[62].mxu0 %vm1777_vm10, %v5325_v22 }
 0x7b8   : > { %11179 = vmatpush3.msra.mxu0 %v4826_v50  ;;  %11180 = vmatprep.mubr.msk.f32.mxu0 %vm1777_vm10, %v5712_v28 }
 0x7b9   : > { %11188 = vmatprep.subr.mxu0 %v4836_v53 }
 0x7ba   : > { %v5132_v5 = vpop.trf.xlu1  ;;  %v5744_v25 = vpop.trf.xlu0 }
 0x7bb   : > { %11181 = vmatmul.mubr.msk.f32.vlgmr.msra.gmra.mrb[60].mxu0 %vm1777_vm10, %v5713_v48  ;;  %11185 = vmatprep.mubr.msk.f32.mxu1 %vm1777_vm10, %v5744_v25 }
 0x7bc   : > { %11189 = vmatpush3.msra.mxu0 %v4836_v53  ;;  %11190 = vmatprep.mubr.msk.f32.mxu0 %vm1777_vm10, %v5776_v1 }
 0x7bd   : > { %11198 = vmatprep.subr.mxu0 %v13151_v44 }
 0x7be   : > { %v5133_v3 = vpop.trf.xlu1  ;;  %v5745_v24 = vpop.trf.xlu0 }
 0x7bf   : > { %11186 = vmatmul.mubr.msk.f32.vlgmr.msra.gmra.mrb[56].mxu1 %vm1777_vm10, %v5745_v24  ;;  %11191 = vmatmul.mubr.msk.f32.vlgmr.msra.gmra.mrb[62].mxu0 %vm1777_vm10, %v5777_v21 }
 0x7c0   : > { %11194 = vmatpush3.msra.mxu1 %v11115_v52  ;;  %11199 = vmatpush3.msra.mxu0 %v13151_v44 }
 0x7c1   : > { %11203 = vmatprep.subr.mxu1 %v13149_v40  ;;  %11208 = vmatprep.subr.mxu0 %v13155_v47 }
 0x7c2   : > { %v5196_v4 = vpop.trf.xlu1  ;;  %v5808_v6 = vpop.trf.xlu0  ;;  %11200 = vmatprep.mubr.msk.f32.mxu0 %vm1777_vm10, %v5132_v5 }
 0x7c3   : > { %11195 = vmatprep.mubr.msk.f32.mxu1 %vm1777_vm10, %v5808_v6  ;;  %11201 = vmatmul.mubr.msk.f32.vlgmr.msra.gmra.mrb[60].mxu0 %vm1777_vm10, %v5133_v3 }
 0x7c4   : > { %11209 = vmatpush3.msra.mxu0 %v13155_v47  ;;  %11210 = vmatprep.mubr.msk.f32.mxu0 %vm1777_vm10, %v5196_v4 }
 0x7c5   : > { %11938 = vmatprep.subr.bf16.mxu0 %v12465_v41 }
 0x7c6   : > { %v5197_v29 = vpop.trf.xlu1  ;;  %v5809_v30 = vpop.trf.xlu0 }
 0x7c7   : > { %11196 = vmatmul.mubr.msk.f32.vlgmr.msra.gmra.mrb[58].mxu1 %vm1777_vm10, %v5809_v30  ;;  %11211 = vmatmul.mubr.msk.f32.vlgmr.msra.gmra.mrb[62].mxu0 %vm1777_vm10, %v5197_v29 }
 0x7c8   : > { %11204 = vmatpush3.msra.mxu1 %v13149_v40  ;;  %11222 = vmatprep.mubr.msk.f32.mxu0 %vm12466_vm11, %v12467_v42 }
 0x7c9   : > { %11213 = vmatprep.subr.mxu1 %v13153_v45 }
 0x7ca   : > { %v5164_v31 = vpop.trf.xlu0 }
 0x7cb   : > { %11205 = vmatprep.mubr.msk.f32.mxu1 %vm1777_vm10, %v5164_v31 }
 0x7ce   : > { %v5165_v32 = vpop.trf.xlu0 }
 0x7cf   : > { %11206 = vmatmul.mubr.msk.f32.vlgmr.msra.gmra.mrb[56].mxu1 %vm1777_vm10, %v5165_v32 }
 0x7d0   : > { %11214 = vmatpush3.msra.mxu1 %v13153_v45 }
 0x7d1   : > { %11942 = vmatprep.subr.bf16.mxu1 %v12465_v41 }
 0x7d2   : > { %v5228_v34 = vpop.trf.xlu0 }
 0x7d3   : > { %11215 = vmatprep.mubr.msk.f32.mxu1 %vm1777_vm10, %v5228_v34 }
 0x7d6   : > { %v5229_v35 = vpop.trf.xlu0 }
 0x7d7   : > { %11216 = vmatmul.mubr.msk.f32.vlgmr.msra.gmra.mrb[58].mxu1 %vm1777_vm10, %v5229_v35 }
 0x7d8   : > { %11229 = vmatprep.mubr.msk.f32.mxu1 %vm12466_vm11, %v12467_v42 }
 0x896   : > { %v11202_v36 = vpop.f32.mrb[60].mxu0 }
 0x897   : > { %v6481_v37 = vmul.f32 0.20412415, %v11202_v36  ;;  %v6220_v39 = vpop.f32.mrb[61].mxu0 }
 0x898   : > { %v6480_v58 = vmul.f32 0.20412415, %v6220_v39 }
 0x899   : > { %v6491_v40 = vsel %vm15215_vm1, %v6481_v37, -inf }
 0x89a   : > { %6492 = vmax.xlane.f32.xlu0 %v6491_v40  ;;  %v11212_v43 = vpop.f32.mrb[62].mxu0  ;;  %v6488_v48 = vsel %vm15215_vm1, %v6480_v58, -inf }
 0x89b   : > { %v6382_v44 = vpop.f32.mrb[63].mxu0  ;;  %v6485_v18 = vmul.f32 0.20412415, %v11212_v43 }
 0x89c   : > { %v6484_v45 = vmul.f32 0.20412415, %v6382_v44 }
 0x89d   : > { %v6503_v2 = vsel %vm15215_vm1, %v6485_v18, -inf }
 0x89e   : > { %v6500_v46 = vsel %vm15215_vm1, %v6484_v45, -inf }
 0x89f   : > { %6501 = vmax.xlane.f32.xlu0 %v6500_v46 }
 0x8a2   : > { %v11207_v47 = vpop.f32.mrb[56].mxu1 }
 0x8a3   : > { %v6483_v49 = vmul.f32 0.20412415, %v11207_v47  ;;  %v6301_v50 = vpop.f32.mrb[57].mxu1 }
 0x8a4   : > { %v6482_v52 = vmul.f32 0.20412415, %v6301_v50 }
 0x8a5   : > { %v6497_v53 = vsel %vm15215_vm1, %v6483_v49, -inf }
 0x8a6   : > { %6498 = vmax.xlane.f32.xlu1 %v6497_v53  ;;  %v6494_v61 = vsel %vm15215_vm1, %v6482_v52, -inf }
 0x8aa   : > { %6495 = vmax.xlane.f32.xlu1 %v6494_v61  ;;  %v11217_v11 = vpop.f32.mrb[58].mxu1 }
 0x8ab   : > { %v6463_v16 = vpop.f32.mrb[59].mxu1  ;;  %v6487_v1 = vmul.f32 0.20412415, %v11217_v11 }
 0x8ac   : > { %v6486_v28 = vmul.f32 0.20412415, %v6463_v16 }
 0x8ad   : > { %v6509_v21 = vsel %vm15215_vm1, %v6487_v1, -inf }
 0x8ae   : > { %6489 = vmax.xlane.f32.xlu1 %v6488_v48  ;;  %v6506_v27 = vsel %vm15215_vm1, %v6486_v28, -inf }
 0x8af   : > { %6507 = vmax.xlane.f32.xlu0 %v6506_v27 }
 0x8b2   : > { %6504 = vmax.xlane.f32.xlu1 %v6503_v2 }
 0x8b6   : > { %6510 = vmax.xlane.f32.xlu1 %v6509_v21 }
 0x927   : > { %v6493_v22 = vpop.xlane.xlu0 %6492 }
 0x928   : > { %v6513_v5 = vsub.f32 %v6481_v37, %v6493_v22 }
 0x92a   : > { %v6522_v24 = vmul.f32 1.442695, %v6513_v5 }
 0x92c   : > { %v6502_v6 = vpop.xlane.xlu0 %6501 }
 0x92d   : > { %v6516_v31 = vsub.f32 %v6484_v45, %v6502_v6 }
 0x92f   : > { %v6528_v39 = vmul.f32 1.442695, %v6516_v31 }
 0x933   : > { %v6499_v25 = vpop.xlane.xlu1 %6498 }
 0x934   : > { %v6515_v3 = vsub.f32 %v6483_v49, %v6499_v25 }
 0x936   : > { %v6526_v4 = vmul.f32 1.442695, %v6515_v3 }
 0x937   : > { %v6496_v29 = vpop.xlane.xlu1 %6495 }
 0x938   : > { %12358 = vpow2.f32 %v6526_v4  ;;  %v6514_v30 = vsub.f32 %v6482_v52, %v6496_v29 }
 0x939   : > { %12360 = vpow2.f32 %v6522_v24 }
 0x93a   : > { %v6524_v32 = vmul.f32 1.442695, %v6514_v30 }
 0x93b   : > { %v6490_v34 = vpop.xlane.xlu1 %6489 }
 0x93c   : > { %12362 = vpow2.f32 %v6524_v32  ;;  %v6512_v35 = vsub.f32 %v6480_v58, %v6490_v34  ;;  %v6508_v36 = vpop.xlane.xlu0 %6507 }
 0x93d   : > { %v6518_v43 = vsub.f32 %v6486_v28, %v6508_v36 }
 0x93e   : > { %v6520_v40 = vmul.f32 1.442695, %v6512_v35 }
 0x93f   : > { %v6505_v44 = vpop.xlane.xlu1 %6504  ;;  %v6532_v47 = vmul.f32 1.442695, %v6518_v43 }
 0x940   : > { %12364 = vpow2.f32 %v6520_v40  ;;  %v6517_v37 = vsub.f32 %v6485_v18, %v6505_v44 }
 0x941   : > { %12366 = vpow2.f32 %v6528_v39 }
 0x942   : > { %v12359_v46 = vpop.eup %12358  ;;  %v6530_v49 = vmul.f32 1.442695, %v6517_v37 }
 0x943   : > { %v6511_v50 = vpop.xlane.xlu1 %6510  ;;  %v6545_v52 = vsel %vm15215_vm1, %v12359_v46, 0.0  ;;  %v12361_v53 = vpop.eup %12360 }
 0x944   : > { %12368 = vpow2.f32 %v6530_v49  ;;  %v6519_v45 = vsub.f32 %v6487_v1, %v6511_v50  ;;  %6546 = vadd.xlane.f32.xlu1 %v6545_v52  ;;  %v6539_v11 = vsel %vm15215_vm1, %v12361_v53, 0.0 }
 0x945   : > { %12370 = vpow2.f32 %v6532_v47 }
 0x946   : > { %v12363_v61 = vpop.eup %12362  ;;  %v6534_v58 = vmul.f32 1.442695, %v6519_v45 }
 0x947   : > { %v6542_v16 = vsel %vm15215_vm1, %v12363_v61, 0.0 }
 0x948   : > { %12372 = vpow2.f32 %v6534_v58  ;;  %6540 = vadd.xlane.f32.xlu1 %v6539_v11  ;;  %6543 = vadd.xlane.f32.xlu0 %v6542_v16 }
 0x94a   : > { %v12365_v28 = vpop.eup %12364 }
 0x94b   : > { %v6536_v18 = vsel %vm15215_vm1, %v12365_v28, 0.0  ;;  %v12367_v48 = vpop.eup %12366 }
 0x94c   : > { %6537 = vadd.xlane.f32.xlu0 %v6536_v18  ;;  %v6548_v1 = vsel %vm15215_vm1, %v12367_v48, 0.0 }
 0x94e   : > { %v12369_v27 = vpop.eup %12368 }
 0x94f   : > { %v6551_v2 = vsel %vm15215_vm1, %v12369_v27, 0.0  ;;  %v12371_v21 = vpop.eup %12370 }
 0x950   : > { %6552 = vadd.xlane.f32.xlu1 %v6551_v2  ;;  %6549 = vadd.xlane.f32.xlu0 %v6548_v1  ;;  %v6554_v25 = vsel %vm15215_vm1, %v12371_v21, 0.0 }
 0x952   : > { %v12373_v22 = vpop.eup %12372 }
 0x953   : > { %v6557_v5 = vsel %vm15215_vm1, %v12373_v22, 0.0 }
 0x954   : > { %6558 = vadd.xlane.f32.xlu1 %v6557_v5  ;;  %6555 = vadd.xlane.f32.xlu0 %v6554_v25 }
 0x9d1   : > { %v6547_v3 = vpop.xlane.xlu1 %6546 }
 0x9d2   : > { %12374 = vrcp.f32 %v6547_v3 }
 0x9d5   : > { %v6541_v24 = vpop.xlane.xlu1 %6540  ;;  %v6544_v4 = vpop.xlane.xlu0 %6543 }
 0x9d6   : > { %12376 = vrcp.f32 %v6544_v4 }
 0x9d7   : > { %12378 = vrcp.f32 %v6541_v24 }
 0x9d9   : > { %v6538_v6 = vpop.xlane.xlu0 %6537 }
 0x9da   : > { %12380 = vrcp.f32 %v6538_v6 }
 0x9dc   : > { %v12375_v31 = vpop.eup %12374 }
 0x9dd   : > { %v6553_v29 = vpop.xlane.xlu1 %6552  ;;  %v6550_v30 = vpop.xlane.xlu0 %6549  ;;  %v6579_v39 = vmul.f32 %v12375_v31, %v12359_v46 }
 0x9de   : > { %12382 = vrcp.f32 %v6553_v29 }
 0x9df   : > { %12384 = vrcp.f32 %v6550_v30 }
 0x9e0   : > { %v12377_v32 = vpop.eup %12376 }
 0x9e1   : > { %v6559_v34 = vpop.xlane.xlu1 %6558  ;;  %v6556_v35 = vpop.xlane.xlu0 %6555  ;;  %v6578_v40 = vmul.f32 %v12377_v32, %v12363_v61 }
 0x9e2   : > { %v12379_v36 = vpop.eup %12378  ;;  %12386 = vrcp.f32 %v6559_v34 }
 0x9e3   : > { %12388 = vrcp.f32 %v6556_v35  ;;  %v11943_v44 = vpack.c.bf16 %v6579_v39, %v6578_v40  ;;  %v6577_v37 = vmul.f32 %v12379_v36, %v12361_v53 }
 0x9e4   : > { %v12381_v43 = vpop.eup %12380 }
 0x9e5   : > { %v6576_v47 = vmul.f32 %v12381_v43, %v12365_v28  ;;  %11945 = vmatpush3.bf16.xpose.msk.msra.mxu1 %vm12844_vm12, %v11943_v44 }
 0x9e6   : > { %11950 = vmatprep.subr.bf16.mxu1 %v12465_v41 }
 0x9e7   : > { %v11939_v49 = vpack.c.bf16 %v6577_v37, %v6576_v47  ;;  %v13347_v37 = vld [vmem:[%s15057_s11 + $0x30] sm:$0xff] }
 0x9e8   : > { %v12383_v50 = vpop.eup %12382 }
 0x9e9   : > { %v12385_v52 = vpop.eup %12384  ;;  %11941 = vmatpush3.bf16.xpose.msk.msra.mxu0 %vm12844_vm12, %v11939_v49  ;;  %v6581_v46 = vmul.f32 %v12383_v50, %v12369_v27 }
 0x9ea   : > { %11946 = vmatprep.subr.bf16.mxu0 %v12465_v41  ;;  %v6580_v45 = vmul.f32 %v12385_v52, %v12367_v48  ;;  %v7487_v48 = vld [vmem:[%s15056_s10 + $0x18] sm:$0xff] }
 0x9ec   : > { %v12387_v61 = vpop.eup %12386  ;;  %11230 = vmatmul.mubr.msk.f32.vlgmr.msra.gmra.mrb[60].mxu1 %vm15215_vm1, %v13157_v54  ;;  %v11947_v16 = vpack.c.bf16 %v6581_v46, %v6580_v45 }
 0x9ed   : > { %v12389_v58 = vpop.eup %12388  ;;  %v6583_v11 = vmul.f32 %v12387_v61, %v12373_v22  ;;  %11243 = vmatprep.mubr.msk.f32.mxu1 %vm12466_vm11, %v12467_v42 }
 0x9ee   : > { %v6582_v53 = vmul.f32 %v12389_v58, %v12371_v21 }
 0x9f0   : > { %11223 = vmatmul.mubr.msk.f32.vlgmr.msra.gmra.mrb[64].mxu0 %vm15215_vm1, %v13161_v57  ;;  %v11951_v28 = vpack.c.bf16 %v6583_v11, %v6582_v53 }
 0x9f1   : > { %11949 = vmatpush3.bf16.xpose.msk.msra.mxu0 %vm12844_vm12, %v11947_v16  ;;  %11236 = vmatprep.mubr.msk.f32.mxu0 %vm12466_vm11, %v12467_v42 }
 0x9f2   : > { %11953 = vmatpush3.bf16.xpose.msk.msra.mxu1 %vm12844_vm12, %v11951_v28  ;;  %11954 = vmatprep.subr.bf16.mxu0 %v12465_v41 }
 0x9f3   : > { %11958 = vmatprep.subr.bf16.mxu1 %v12465_v41 }
 0x9f8   : > { %11237 = vmatmul.mubr.msk.f32.vlgmr.msra.gmra.mrb[66].mxu0 %vm15215_vm1, %v13169_v15 }
 0x9f9   : > { %11244 = vmatmul.mubr.msk.f32.vlgmr.msra.gmra.mrb[62].mxu1 %vm15215_vm1, %v13165_v59  ;;  %11957 = vmatpush3.bf16.xpose.msk.msra.mxu0 %vm12844_vm12, %v11939_v49 }
 0x9fa   : > { %11961 = vmatpush3.bf16.xpose.msk.msra.mxu1 %vm12844_vm12, %v11943_v44  ;;  %11250 = vmatprep.mubr.msk.f32.mxu0 %vm12466_vm11, %v12467_v42 }
 0x9fb   : > { %11257 = vmatprep.mubr.msk.f32.mxu1 %vm12466_vm11, %v12467_v42  ;;  %11962 = vmatprep.subr.bf16.mxu0 %v12465_v41 }
 0x9fc   : > { %11966 = vmatprep.subr.bf16.mxu1 %v12465_v41 }
 0xa00   : > { %11251 = vmatmul.mubr.msk.f32.vlgmr.msra.gmra.mrb[68].mxu0 %vm15215_vm1, %v13163_v7 }
 0xa01   : > { %11258 = vmatmul.mubr.msk.f32.vlgmr.msra.gmra.mrb[64].mxu1 %vm15215_vm1, %v13159_v55  ;;  %11965 = vmatpush3.bf16.xpose.msk.msra.mxu0 %vm12844_vm12, %v11947_v16 }
 0xa02   : > { %11969 = vmatpush3.bf16.xpose.msk.msra.mxu1 %vm12844_vm12, %v11951_v28  ;;  %11264 = vmatprep.mubr.msk.f32.mxu0 %vm12466_vm11, %v12467_v42 }
 0xa03   : > { %11271 = vmatprep.mubr.msk.f32.mxu1 %vm12466_vm11, %v12467_v42  ;;  %11970 = vmatprep.subr.bf16.mxu0 %v12465_v41 }
 0xa04   : > { %11974 = vmatprep.subr.bf16.mxu1 %v12465_v41 }
 0xa08   : > { %11265 = vmatmul.mubr.msk.f32.vlgmr.msra.gmra.mrb[70].mxu0 %vm15215_vm1, %v13171_v19 }
 0xa09   : > { %11272 = vmatmul.mubr.msk.f32.vlgmr.msra.gmra.mrb[66].mxu1 %vm15215_vm1, %v13167_v13  ;;  %11973 = vmatpush3.bf16.xpose.msk.msra.mxu0 %vm12844_vm12, %v11939_v49 }
 0xa0a   : > { %11977 = vmatpush3.bf16.xpose.msk.msra.mxu1 %vm12844_vm12, %v11943_v44  ;;  %11278 = vmatprep.mubr.msk.f32.mxu0 %vm12466_vm11, %v12467_v42  ;;  %v13340_v44 = vld [vmem:[%s15057_s11] sm:$0xff] }
 0xa0b   : > { %11285 = vmatprep.mubr.msk.f32.mxu1 %vm12466_vm11, %v12467_v42  ;;  %11978 = vmatprep.subr.bf16.mxu0 %v12465_v41 }
 0xa0c   : > { %11982 = vmatprep.subr.bf16.mxu1 %v12465_v41  ;;  %v7484_v41 = vld [vmem:[%s15056_s10] sm:$0xff] }
 0xa10   : > { %11279 = vmatmul.mubr.msk.f32.vlgmr.msra.gmra.mrb[72].mxu0 %vm15215_vm1, %v13175_v62  ;;  %v7486_v62 = vld [vmem:[%s15056_s10 + $0x10] sm:$0xff] }
 0xa11   : > { %11286 = vmatmul.mubr.msk.f32.vlgmr.msra.gmra.mrb[68].mxu1 %vm15215_vm1, %v13173_v20  ;;  %11981 = vmatpush3.bf16.xpose.msk.msra.mxu0 %vm12844_vm12, %v11947_v16  ;;  %v7485_v20 = vld [vmem:[%s15056_s10 + $0x8] sm:$0xff] }
 0xa12   : > { %11985 = vmatpush3.bf16.xpose.msk.msra.mxu1 %vm12844_vm12, %v11951_v28  ;;  %11292 = vmatprep.mubr.msk.f32.mxu0 %vm12466_vm11, %v12467_v42 }
 0xa13   : > { %11299 = vmatprep.mubr.msk.f32.mxu1 %vm12466_vm11, %v12467_v42 }
 0xa18   : > { %11293 = vmatmul.mubr.msk.f32.vlgmr.msra.gmra.mrb[74].mxu0 %vm15215_vm1, %v13180_v10 }
 0xa19   : > { %11300 = vmatmul.mubr.msk.f32.vlgmr.msra.gmra.mrb[70].mxu1 %vm15215_vm1, %v13177_v60  ;;  %11310 = vmatprep.mubr.msk.f32.mxu0 %vm711_vm0, %v7484_v41 }
 0xa1a   : > { %11324 = vmatprep.mubr.msk.f32.mxu1 %vm711_vm0, %v7484_v41 }
 0xabf   : > { %v6738_v51 = vpop.f32.mrb[60].mxu1 }
 0xac0   : > { %v11231_v54 = vpop.f32.mrb[61].mxu1 }
 0xac3   : > { %v6659_v55 = vpop.f32.mrb[64].mxu0 }
 0xac4   : > { %v11986_v57 = vpack.c.bf16 %v6738_v51, %v6659_v55  ;;  %v11224_v7 = vpop.f32.mrb[65].mxu0 }
 0xac6   : > { %11987 = vmatprep.subr.bf16.mxu0 %v11986_v57 }
 0xac7   : > { %11989 = vmatpush3.bf16.msra.mxu0 %v11986_v57 }
 0xacb   : > { %v6817_v42 = vpop.f32.mrb[66].mxu0 }
 0xacc   : > { %v6896_v59 = vpop.f32.mrb[62].mxu1  ;;  %v11238_v13 = vpop.f32.mrb[67].mxu0 }
 0xacd   : > { %v11990_v15 = vpack.c.bf16 %v6896_v59, %v6817_v42  ;;  %v11245_v19 = vpop.f32.mrb[63].mxu1 }
 0xacf   : > { %11991 = vmatprep.subr.bf16.mxu0 %v11990_v15 }
 0xad0   : > { %11993 = vmatpush3.bf16.msra.mxu0 %v11990_v15 }
 0xad3   : > { %11311 = vmatmul.mubr.msk.f32.vlgmr.msra.gmra.mrb[76].mxu0 %vm711_vm0, %v7485_v20  ;;  %v6969_v60 = vpop.f32.mrb[68].mxu0 }
 0xad4   : > { %v7042_v10 = vpop.f32.mrb[64].mxu1  ;;  %v11252_v18 = vpop.f32.mrb[69].mxu0  ;;  %11313 = vmatprep.mubr.msk.f32.mxu0 %vm711_vm0, %v7486_v62 }
 0xad5   : > { %v11994_v27 = vpack.c.bf16 %v7042_v10, %v6969_v60  ;;  %v11259_v2 = vpop.f32.mrb[65].mxu1 }
 0xad7   : > { %11314 = vmatmul.mubr.msk.f32.gmra.mrb[78].mxu0 %vm711_vm0, %v7487_v48  ;;  %11995 = vmatprep.subr.bf16.mxu1 %v11994_v27 }
 0xad8   : > { %11997 = vmatpush3.bf16.msra.mxu1 %v11994_v27  ;;  %11338 = vmatprep.mubr.msk.f32.mxu0 %vm711_vm0, %v7484_v41 }
 0xadb   : > { %v7115_v1 = vpop.f32.mrb[70].mxu0 }
 0xadc   : > { %v7188_v21 = vpop.f32.mrb[66].mxu1  ;;  %v11266_v22 = vpop.f32.mrb[71].mxu0 }
 0xadd   : > { %v11998_v5 = vpack.c.bf16 %v7188_v21, %v7115_v1  ;;  %v11273_v25 = vpop.f32.mrb[67].mxu1 }
 0xadf   : > { %11999 = vmatprep.subr.bf16.mxu1 %v11998_v5 }
 0xae0   : > { %12001 = vmatpush3.bf16.msra.mxu1 %v11998_v5 }
 0xae3   : > { %11325 = vmatmul.mubr.msk.f32.vlgmr.msra.gmra.mrb[72].mxu1 %vm711_vm0, %v7485_v20  ;;  %v7261_v3 = vpop.f32.mrb[72].mxu0 }
 0xae4   : > { %v7334_v24 = vpop.f32.mrb[68].mxu1  ;;  %v11280_v4 = vpop.f32.mrb[73].mxu0  ;;  %11327 = vmatprep.mubr.msk.f32.mxu1 %vm711_vm0, %v7486_v62 }
 0xae5   : > { %v12002_v6 = vpack.c.bf16 %v7334_v24, %v7261_v3  ;;  %v11287_v29 = vpop.f32.mrb[69].mxu1 }
 0xae7   : > { %11328 = vmatmul.mubr.msk.f32.gmra.mrb[74].mxu1 %vm711_vm0, %v7487_v48  ;;  %12003 = vmatprep.subr.bf16.mxu0 %v12002_v6 }
 0xae8   : > { %12005 = vmatpush3.bf16.msra.mxu0 %v12002_v6  ;;  %11361 = vmatprep.mubr.msk.f32.mxu1 %vm711_vm0, %v13347_v37 }
 0xaeb   : > { %v7407_v30 = vpop.f32.mrb[74].mxu0 }
 0xaec   : > { %v7480_v31 = vpop.f32.mrb[70].mxu1  ;;  %v11294_v32 = vpop.f32.mrb[75].mxu0 }
 0xaed   : > { %v12006_v34 = vpack.c.bf16 %v7480_v31, %v7407_v30  ;;  %v11301_v35 = vpop.f32.mrb[71].mxu1 }
 0xaef   : > { %12007 = vmatprep.subr.bf16.mxu0 %v12006_v34 }
 0xaf0   : > { %12009 = vmatpush3.bf16.msra.mxu0 %v12006_v34 }
 0xaf3   : > { %11339 = vmatmul.mubr.msk.f32.vlgmr.msra.gmra.mrb[80].mxu0 %vm711_vm0, %v7485_v20 }
 0xaf4   : > { %11341 = vmatprep.mubr.msk.f32.mxu0 %vm711_vm0, %v7486_v62 }
 0xaf7   : > { %11342 = vmatmul.mubr.msk.f32.gmra.mrb[82].mxu0 %vm711_vm0, %v7487_v48 }
 0xaf8   : > { %11352 = vmatprep.mubr.msk.f32.mxu0 %vm711_vm0, %v13340_v44 }
 0xba6   : > { %v11312_v36 = vpop.f32.mrb[76].mxu0 }
 0xba7   : > { %v7566_v39 = vpop.f32.mrb[77].mxu0  ;;  %v13358_v61 = vadd.f32 %v11312_v36, %v12969_v8 }
 0xba8   : > { %v13361_v58 = vadd.f32 %v7566_v39, %v12974_v12 }
 0xba9   : > { %15220 = vst [vmem:[#allocation4_spill] sm:$0xff] %v13358_v61 }
 0xbaa   : > { %v11315_v40 = vpop.f32.mrb[78].mxu0  ;;  %15221 = vst [vmem:[#allocation5_spill] sm:$0xff] %v13361_v58 }
 0xbab   : > { %v7576_v43 = vpop.f32.mrb[79].mxu0  ;;  %v13375_v8 = vadd.f32 %v11315_v40, %v12979_v14 }
 0xbac   : > { %v13392_v7 = vadd.f32 %v7576_v43, %v12997_v9 }
 0xbad   : > { %15223 = vst [vmem:[#allocation7_spill] sm:$0xff] %v13375_v8  ;;  %v7770_v42 = vmul.f32 %v13375_v8, %v13375_v8 }
 0xbae   : > { %15227 = vst [vmem:[#allocation11_spill] sm:$0xff] %v13392_v7  ;;  %v7769_v27 = vmul.f32 %v13392_v7, %v13392_v7 }
 0xbaf   : > { %v7794_v21 = vsel %vm15215_vm1, %v7770_v42, 0.0 }
 0xbb0   : > { %v7789_v25 = vsel %vm15215_vm1, %v7769_v27, 0.0 }
 0xbb6   : > { %v11326_v47 = vpop.f32.mrb[72].mxu1 }
 0xbb7   : > { %v7651_v49 = vpop.f32.mrb[73].mxu1  ;;  %v13352_v46 = vadd.f32 %v11326_v47, %v12971_v56  ;;  %v7768_v56 = vmul.f32 %v13358_v61, %v13358_v61 }
 0xbb8   : > { %v13355_v45 = vadd.f32 %v7651_v49, %v12976_v63  ;;  %v7767_v63 = vmul.f32 %v13361_v58, %v13361_v58 }
 0xbb9   : > { %15218 = vst [vmem:[#allocation2_spill] sm:$0xff] %v13352_v46  ;;  %v7772_v11 = vmul.f32 %v13352_v46, %v13352_v46  ;;  %v7784_v14 = vsel %vm15215_vm1, %v7768_v56, 0.0 }
 0xbba   : > { %v11329_v50 = vpop.f32.mrb[74].mxu1  ;;  %15219 = vst [vmem:[#allocation3_spill] sm:$0xff] %v13355_v45  ;;  %v7771_v53 = vmul.f32 %v13355_v45, %v13355_v45 }
 0xbbb   : > { %v7661_v52 = vpop.f32.mrb[75].mxu1  ;;  %v13368_v16 = vadd.f32 %v11329_v50, %v12990_v23  ;;  %v7785_v28 = vsel %vm15215_vm1, %v7772_v11, 0.0 }
 0xbbc   : > { %v13379_v41 = vadd.f32 %v7661_v52, %v13001_v17  ;;  %v7780_v54 = vsel %vm15215_vm1, %v7771_v53, 0.0  ;;  %v7786_v59 = vadd.f32 %v7785_v28, %v7784_v14 }
 0xbbd   : > { %15222 = vst [vmem:[#allocation6_spill] sm:$0xff] %v13368_v16  ;;  %v7774_v55 = vmul.f32 %v13368_v16, %v13368_v16 }
 0xbbe   : > { %15224 = vst [vmem:[#allocation8_spill] sm:$0xff] %v13379_v41  ;;  %v7773_v19 = vmul.f32 %v13379_v41, %v13379_v41 }
 0xbbf   : > { %v7795_v60 = vsel %vm15215_vm1, %v7774_v55, 0.0 }
 0xbc0   : > { %v7790_v22 = vsel %vm15215_vm1, %v7773_v19, 0.0 }
 0xbc1   : > { %v7791_v24 = vadd.f32 %v7790_v22, %v7789_v25 }
 0xbc6   : > { %v11340_v12 = vpop.f32.mrb[80].mxu0 }
 0xbc7   : > { %v13382_v51 = vadd.f32 %v11340_v12, %v13003_v0  ;;  %v7736_v23 = vpop.f32.mrb[81].mxu0  ;;  %v7779_v0 = vsel %vm15215_vm1, %v7767_v63, 0.0 }
 0xbc8   : > { %v13388_v57 = vadd.f32 %v7736_v23, %v13009_v26  ;;  %v7781_v26 = vadd.f32 %v7780_v54, %v7779_v0 }
 0xbc9   : > { %15225 = vst [vmem:[#allocation9_spill] sm:$0xff] %v13382_v51  ;;  %v7776_v17 = vmul.f32 %v13382_v51, %v13382_v51 }
 0xbca   : > { %15226 = vst [vmem:[#allocation10_spill] sm:$0xff] %v13388_v57  ;;  %v7775_v13 = vmul.f32 %v13388_v57, %v13388_v57  ;;  %v11343_v15 = vpop.f32.mrb[82].mxu0 }
 0xbcb   : > { %v7787_v9 = vsel %vm15215_vm1, %v7776_v17, 0.0  ;;  %v13405_v20 = vadd.f32 %v11343_v15, %v13023_v33  ;;  %v7746_v62 = vpop.f32.mrb[83].mxu0  ;;  %v7796_v33 = vadd.f32 %v7795_v60, %v7794_v21 }
 0xbcc   : > { %v7788_v10 = vadd.f32 %v7787_v9, %v7786_v59  ;;  %v7782_v18 = vsel %vm15215_vm1, %v7775_v13, 0.0  ;;  %v13410_v48 = vadd.f32 %v7746_v62, %v13027_v38 }
 0xbcd   : > { %15228 = vst [vmem:[#allocation12_spill] sm:$0xff] %v13405_v20  ;;  %v7783_v2 = vadd.f32 %v7782_v18, %v7781_v26  ;;  %v7778_v1 = vmul.f32 %v13405_v20, %v13405_v20 }
 0xbce   : > { %15229 = vst [vmem:[#allocation13_spill] sm:$0xff] %v13410_v48  ;;  %12390 = vrsqrt.f32 %v7788_v10  ;;  %v7777_v38 = vmul.f32 %v13410_v48, %v13410_v48  ;;  %vm7808_vm7 = vcmp.eq.f32.partialorder %v7788_v10, inf  ;;  %v7811_v35 = vand.u32 2147483648, %v7788_v10 }
 0xbcf   : > { %12392 = vrsqrt.f32 %v7783_v2  ;;  %v7797_v5 = vsel %vm15215_vm1, %v7778_v1, 0.0  ;;  %vm7801_vm8 = vcmp.eq.f32.partialorder %v7783_v2, inf  ;;  %v7804_v39 = vand.u32 2147483648, %v7783_v2 }
 0xbd0   : > { %v7798_v3 = vadd.f32 %v7797_v5, %v7796_v33  ;;  %v7792_v4 = vsel %vm15215_vm1, %v7777_v38, 0.0  ;;  %vm7810_vm9 = vcmp.eq.f32.partialorder %v7788_v10, 0.0  ;;  %vm7803_vm10 = vcmp.eq.f32.partialorder %v7783_v2, 0.0 }
 0xbd1   : > { %v7793_v6 = vadd.f32 %v7792_v4, %v7791_v24 }
 0xbd2   : > { %12394 = vrsqrt.f32 %v7798_v3  ;;  %vm7822_vm11 = vcmp.eq.f32.partialorder %v7798_v3, inf  ;;  %v7825_v63 = vand.u32 2147483648, %v7798_v3  ;;  %vm7824_vm13 = vcmp.eq.f32.partialorder %v7798_v3, 0.0 }
 0xbd3   : > { %12396 = vrsqrt.f32 %v7793_v6  ;;  %vm7815_vm12 = vcmp.eq.f32.partialorder %v7793_v6, inf  ;;  %v7818_v12 = vand.u32 2147483648, %v7793_v6  ;;  %vm7817_vm14 = vcmp.eq.f32.partialorder %v7793_v6, 0.0 }
 0xbd8   : > { %v12391_v29 = vpop.eup %12390 }
 0xbd9   : > { %v12393_v30 = vpop.eup %12392  ;;  %v7807_v31 = vmul.f32 %v12391_v29, %v7788_v10 }
 0xbda   : > { %v7800_v32 = vmul.f32 %v12393_v30, %v7783_v2 }
 0xbdb   : > { %v7809_v34 = vsel %vm7808_vm7, %v7788_v10, %v7807_v31 }
 0xbdc   : > { %v7802_v36 = vsel %vm7801_vm8, %v7783_v2, %v7800_v32  ;;  %v12395_v40 = vpop.eup %12394  ;;  %v7812_v49 = vsel %vm7810_vm9, %v7811_v35, %v7809_v34 }
 0xbdd   : > { %v7821_v43 = vmul.f32 %v12395_v40, %v7798_v3  ;;  %v7805_v47 = vsel %vm7803_vm10, %v7804_v39, %v7802_v36  ;;  %v12397_v50 = vpop.eup %12396  ;;  %v7828_v56 = vsel %vm15215_vm1, %v7812_v49, 0.0  ;;  %v7870_v35 = vadd.f32 1e-06, %v7812_v49 }
 0xbde   : > { %v7814_v11 = vmul.f32 %v12397_v50, %v7793_v6  ;;  %v7827_v53 = vsel %vm15215_vm1, %v7805_v47, 0.0  ;;  %v7869_v36 = vadd.f32 1e-06, %v7805_v47 }
 0xbdf   : > { %v7823_v52 = vsel %vm7822_vm11, %v7798_v3, %v7821_v43  ;;  %v7829_v55 = vadd.f32 %v7828_v56, %v7827_v53  ;;  %12398 = vrcp.f32 %v7870_v35  ;;  %v7912_v35 = vld [vmem:[%s15057_s11 + $0x78] sm:$0xff] }
 0xbe0   : > { %v7816_v28 = vsel %vm7815_vm12, %v7793_v6, %v7814_v11  ;;  %v7826_v54 = vsel %vm7824_vm13, %v7825_v63, %v7823_v52  ;;  %12400 = vrcp.f32 %v7869_v36 }
 0xbe1   : > { %v7819_v23 = vsel %vm7817_vm14, %v7818_v12, %v7816_v28  ;;  %v7832_v0 = vsel %vm15215_vm1, %v7826_v54, 0.0  ;;  %v7872_v40 = vadd.f32 1e-06, %v7826_v54 }
 0xbe2   : > { %v7830_v14 = vsel %vm15215_vm1, %v7819_v23, 0.0  ;;  %v7871_v50 = vadd.f32 1e-06, %v7819_v23 }
 0xbe3   : > { %v7831_v17 = vadd.f32 %v7830_v14, %v7829_v55 }
 0xbe5   : > { %v7833_v42 = vadd.f32 %v7832_v0, %v7831_v17 }
 0xbe7   : > { %v7834_v59 = vrot.slane %v7833_v42, 4 }
 0xbe9   : > { %v7835_v13 = vadd.f32 %v7834_v59, %v7833_v42  ;;  %v12399_v52 = vpop.eup %12398 }
 0xbea   : > { %v12401_v11 = vpop.eup %12400 }
 0xbeb   : > { %v7836_v15 = vrot.slane %v7835_v13, 2 }
 0xbed   : > { %v7837_v26 = vadd.f32 %v7836_v15, %v7835_v13 }
 0xbef   : > { %v7838_v19 = vrot.slane %v7837_v26, 1 }
 0xbf1   : > { %v7839_v9 = vadd.f32 %v7838_v19, %v7837_v26 }
 0xbf3   : > { %v7840_v62 = vmul.f32 0.03125, %v7839_v9 }
 0xbf5   : > { %v7841_v60 = vsub.f32 %v7805_v47, %v7840_v62  ;;  %v7842_v10 = vsub.f32 %v7812_v49, %v7840_v62  ;;  %v7843_v18 = vsub.f32 %v7819_v23, %v7840_v62  ;;  %v7844_v27 = vsub.f32 %v7826_v54, %v7840_v62 }
 0xbf7   : > { %v7845_v2 = vmul.f32 %v7841_v60, %v7841_v60  ;;  %v7846_v1 = vmul.f32 %v7842_v10, %v7842_v10  ;;  %v7847_v21 = vmul.f32 %v7843_v18, %v7843_v18  ;;  %v7848_v33 = vmul.f32 %v7844_v27, %v7844_v27 }
 0xbf9   : > { %v7849_v22 = vsel %vm15215_vm1, %v7845_v2, 0.0  ;;  %v7850_v5 = vsel %vm15215_vm1, %v7846_v1, 0.0  ;;  %v7852_v25 = vsel %vm15215_vm1, %v7847_v21, 0.0  ;;  %v7854_v24 = vsel %vm15215_vm1, %v7848_v33, 0.0  ;;  %v7898_v21 = vld [vmem:[%s15057_s11 + $0x8] sm:$0xff]  ;;  %v7904_v33 = vld [vmem:[%s15057_s11 + $0x38] sm:$0xff] }
 0xbfa   : > { %v7851_v38 = vadd.f32 %v7850_v5, %v7849_v22 }
 0xbfc   : > { %v7853_v3 = vadd.f32 %v7852_v25, %v7851_v38  ;;  %v7899_v38 = vld [vmem:[%s15057_s11 + $0x10] sm:$0xff]  ;;  %v7905_v25 = vld [vmem:[%s15057_s11 + $0x40] sm:$0xff] }
 0xbfe   : > { %v7855_v4 = vadd.f32 %v7854_v24, %v7853_v3  ;;  %v7900_v3 = vld [vmem:[%s15057_s11 + $0x18] sm:$0xff]  ;;  %v7906_v24 = vld [vmem:[%s15057_s11 + $0x48] sm:$0xff] }
 0xc00   : > { %v7856_v6 = vrot.slane %v7855_v4, 4 }
 0xc02   : > { %v7857_v29 = vadd.f32 %v7856_v6, %v7855_v4  ;;  %v7901_v4 = vld [vmem:[%s15057_s11 + $0x20] sm:$0xff]  ;;  %v7907_v6 = vld [vmem:[%s15057_s11 + $0x50] sm:$0xff] }
 0xc04   : > { %v7858_v30 = vrot.slane %v7857_v29, 2 }
 0xc06   : > { %v7859_v31 = vadd.f32 %v7858_v30, %v7857_v29  ;;  %v7902_v29 = vld [vmem:[%s15057_s11 + $0x28] sm:$0xff]  ;;  %v7908_v30 = vld [vmem:[%s15057_s11 + $0x58] sm:$0xff] }
 0xc08   : > { %v7860_v32 = vrot.slane %v7859_v31, 1 }
 0xc0a   : > { %v7861_v34 = vadd.f32 %v7860_v32, %v7859_v31  ;;  %v7909_v31 = vld [vmem:[%s15057_s11 + $0x60] sm:$0xff]  ;;  %v7910_v32 = vld [vmem:[%s15057_s11 + $0x68] sm:$0xff] }
 0xc0c   : > { %v7862_v39 = vmul.f32 0.03125, %v7861_v34  ;;  %v7911_v34 = vld [vmem:[%s15057_s11 + $0x70] sm:$0xff] }
 0xc0e   : > { %v7863_v43 = vadd.f32 1e-06, %v7862_v39 }
 0xc10   : > { %12402 = vrsqrt.f32 %v7863_v43 }
 0xc11   : > { %12404 = vrcp.f32 %v7872_v40 }
 0xc12   : > { %12406 = vrcp.f32 %v7871_v50 }
 0xc1a   : > { %v12403_v53 = vpop.eup %12402 }
 0xc1b   : > { %v12405_v56 = vpop.eup %12404  ;;  %v7867_v63 = vmul.f32 %v12403_v53, %v7843_v18  ;;  %v7865_v12 = vmul.f32 %v12403_v53, %v7841_v60  ;;  %v7866_v28 = vmul.f32 %v12403_v53, %v7842_v10  ;;  %v7868_v55 = vmul.f32 %v12403_v53, %v7844_v27 }
 0xc1c   : > { %v12407_v14 = vpop.eup %12406 }
 0xc1d   : > { %v7883_v49 = vmul.f32 %v12407_v14, %v7867_v63  ;;  %v7881_v47 = vmul.f32 %v12401_v11, %v7865_v12  ;;  %v7882_v17 = vmul.f32 %v12399_v52, %v7866_v28  ;;  %v7884_v54 = vmul.f32 %v12405_v56, %v7868_v55 }
 0xc1f   : > { %v7885_v23 = vmul.f32 %v7881_v47, %v13361_v58  ;;  %v7886_v0 = vmul.f32 %v7882_v17, %v13358_v61  ;;  %v7887_v42 = vmul.f32 %v7883_v49, %v13392_v7  ;;  %v7888_v59 = vmul.f32 %v7884_v54, %v13375_v8  ;;  %v8404_v8 = vld [vmem:[%s15058_s12 + $0x40] sm:$0xff]  ;;  %v8406_v58 = vld [vmem:[%s15058_s12 + $0x50] sm:$0xff] }
 0xc20   : > { %v7889_v15 = vmul.f32 %v7881_v47, %v13355_v45  ;;  %v7890_v26 = vmul.f32 %v7882_v17, %v13352_v46  ;;  %v7893_v9 = vmul.f32 %v7881_v47, %v13388_v57  ;;  %v7894_v62 = vmul.f32 %v7882_v17, %v13382_v51 }
 0xc21   : > { %v12010_v13 = vpack.c.bf16 %v7886_v0, %v7885_v23  ;;  %v12014_v19 = vpack.c.bf16 %v7888_v59, %v7887_v42  ;;  %v7895_v60 = vmul.f32 %v7883_v49, %v13410_v48  ;;  %v7891_v10 = vmul.f32 %v7883_v49, %v13379_v41 }
 0xc22   : > { %v12018_v18 = vpack.c.bf16 %v7890_v26, %v7889_v15  ;;  %v12026_v27 = vpack.c.bf16 %v7894_v62, %v7893_v9  ;;  %v7892_v2 = vmul.f32 %v7884_v54, %v13368_v16  ;;  %v7896_v1 = vmul.f32 %v7884_v54, %v13405_v20  ;;  %v13694_v20 = vld [vmem:[%s15058_s12 + $0x28] sm:$0xff]  ;;  %v8403_v16 = vld [vmem:[%s15058_s12 + $0x38] sm:$0xff] }
 0xc23   : > { %12011 = vmatprep.subr.bf16.mxu0 %v12010_v13  ;;  %12226 = vmatprep.subr.bf16.mxu1 %v12010_v13 }
 0xc24   : > { %12013 = vmatpush3.bf16.msra.mxu0 %v12010_v13  ;;  %12228 = vmatpush3.bf16.msra.mxu1 %v12010_v13  ;;  %v12022_v22 = vpack.c.bf16 %v7892_v2, %v7891_v10  ;;  %v12030_v5 = vpack.c.bf16 %v7896_v1, %v7895_v60 }
 0xc25   : > { %12015 = vmatprep.subr.bf16.mxu0 %v12014_v19  ;;  %12227 = vmatprep.subr.bf16.mxu1 %v12014_v19 }
 0xc28   : > { %12017 = vmatpush3.bf16.msra.mxu0 %v12014_v19  ;;  %12229 = vmatpush3.bf16.msra.mxu1 %v12014_v19 }
 0xc29   : > { %12019 = vmatprep.subr.bf16.mxu0 %v12018_v18  ;;  %12027 = vmatprep.subr.bf16.mxu1 %v12026_v27 }
 0xc2b   : > { %11353 = vmatmul.mubr.msk.f32.vlgmr.msra.gmra.mrb[84].mxu0 %vm711_vm0, %v7898_v21  ;;  %11362 = vmatmul.mubr.msk.f32.vlgmr.msra.gmra.mrb[76].mxu1 %vm711_vm0, %v7904_v33 }
 0xc2c   : > { %12021 = vmatpush3.bf16.msra.mxu0 %v12018_v18  ;;  %12029 = vmatpush3.bf16.msra.mxu1 %v12026_v27 }
 0xc2d   : > { %12023 = vmatprep.subr.bf16.mxu0 %v12022_v22  ;;  %12031 = vmatprep.subr.bf16.mxu1 %v12030_v5 }
 0xc2e   : > { %11355 = vmatprep.mubr.msk.f32.mxu0 %vm711_vm0, %v7899_v38  ;;  %11364 = vmatprep.mubr.msk.f32.mxu1 %vm711_vm0, %v7905_v25 }
 0xc2f   : > { %11356 = vmatmul.mubr.msk.f32.gmra.mrb[86].mxu0 %vm711_vm0, %v7900_v3  ;;  %11365 = vmatmul.mubr.msk.f32.gmra.mrb[78].mxu1 %vm711_vm0, %v7906_v24 }
 0xc30   : > { %12025 = vmatpush3.bf16.msra.mxu0 %v12022_v22  ;;  %12033 = vmatpush3.bf16.msra.mxu1 %v12030_v5 }
 0xc31   : > { %11358 = vmatprep.mubr.msk.f32.mxu0 %vm711_vm0, %v7901_v4  ;;  %11367 = vmatprep.mubr.msk.f32.mxu1 %vm711_vm0, %v7907_v6 }
 0xc33   : > { %11359 = vmatmul.mubr.msk.f32.gmra.mrb[88].mxu0 %vm711_vm0, %v7902_v29  ;;  %11368 = vmatmul.mubr.msk.f32.gmra.mrb[80].mxu1 %vm711_vm0, %v7908_v30 }
 0xc34   : > { %11384 = vmatprep.mubr.msk.f32.mxu0 %vm711_vm0, %v13340_v44  ;;  %11370 = vmatprep.mubr.msk.f32.mxu1 %vm711_vm0, %v7909_v31 }
 0xc37   : > { %11385 = vmatmul.mubr.msk.f32.vlgmr.msra.gmra.mrb[90].mxu0 %vm711_vm0, %v7898_v21  ;;  %11371 = vmatmul.mubr.msk.f32.gmra.mrb[82].mxu1 %vm711_vm0, %v7910_v32 }
 0xc38   : > { %11387 = vmatprep.mubr.msk.f32.mxu0 %vm711_vm0, %v7899_v38  ;;  %11373 = vmatprep.mubr.msk.f32.mxu1 %vm711_vm0, %v7911_v34 }
 0xc3b   : > { %11388 = vmatmul.mubr.msk.f32.gmra.mrb[92].mxu0 %vm711_vm0, %v7900_v3  ;;  %11374 = vmatmul.mubr.msk.f32.gmra.mrb[84].mxu1 %vm711_vm0, %v7912_v35 }
 0xc3c   : > { %11390 = vmatprep.mubr.msk.f32.mxu0 %vm711_vm0, %v7901_v4  ;;  %11416 = vmatprep.mubr.msk.f32.mxu1 %vm711_vm0, %v13340_v44  ;;  %v13538_v44 = vld [vmem:[%s15058_s12] sm:$0xff] }
 0xc3f   : > { %11391 = vmatmul.mubr.msk.f32.gmra.mrb[94].mxu0 %vm711_vm0, %v7902_v29  ;;  %11417 = vmatmul.mubr.msk.f32.vlgmr.msra.gmra.mrb[86].mxu1 %vm711_vm0, %v7898_v21 }
 0xc40   : > { %11393 = vmatprep.mubr.msk.f32.mxu0 %vm711_vm0, %v13347_v37  ;;  %11419 = vmatprep.mubr.msk.f32.mxu1 %vm711_vm0, %v7899_v38 }
 0xc43   : > { %11394 = vmatmul.mubr.msk.f32.gmra.mrb[96].mxu0 %vm711_vm0, %v7904_v33  ;;  %11420 = vmatmul.mubr.msk.f32.gmra.mrb[88].mxu1 %vm711_vm0, %v7900_v3 }
 0xc44   : > { %11396 = vmatprep.mubr.msk.f32.mxu0 %vm711_vm0, %v7905_v25  ;;  %11422 = vmatprep.mubr.msk.f32.mxu1 %vm711_vm0, %v7901_v4 }
 0xc47   : > { %11397 = vmatmul.mubr.msk.f32.gmra.mrb[98].mxu0 %vm711_vm0, %v7906_v24  ;;  %11423 = vmatmul.mubr.msk.f32.gmra.mrb[90].mxu1 %vm711_vm0, %v7902_v29 }
 0xc48   : > { %11399 = vmatprep.mubr.msk.f32.mxu0 %vm711_vm0, %v7907_v6  ;;  %11425 = vmatprep.mubr.msk.f32.mxu1 %vm711_vm0, %v13347_v37 }
 0xc4b   : > { %11400 = vmatmul.mubr.msk.f32.gmra.mrb[100].mxu0 %vm711_vm0, %v7908_v30  ;;  %11426 = vmatmul.mubr.msk.f32.gmra.mrb[92].mxu1 %vm711_vm0, %v7904_v33 }
 0xc4c   : > { %11402 = vmatprep.mubr.msk.f32.mxu0 %vm711_vm0, %v7909_v31  ;;  %11428 = vmatprep.mubr.msk.f32.mxu1 %vm711_vm0, %v7905_v25 }
 0xc4f   : > { %11403 = vmatmul.mubr.msk.f32.gmra.mrb[102].mxu0 %vm711_vm0, %v7910_v32  ;;  %11429 = vmatmul.mubr.msk.f32.gmra.mrb[94].mxu1 %vm711_vm0, %v7906_v24 }
 0xc50   : > { %11405 = vmatprep.mubr.msk.f32.mxu0 %vm711_vm0, %v7911_v34  ;;  %11431 = vmatprep.mubr.msk.f32.mxu1 %vm711_vm0, %v7907_v6 }
 0xc53   : > { %11406 = vmatmul.mubr.msk.f32.gmra.mrb[104].mxu0 %vm711_vm0, %v7912_v35  ;;  %11432 = vmatmul.mubr.msk.f32.gmra.mrb[96].mxu1 %vm711_vm0, %v7908_v30 }
 0xc54   : > { %11434 = vmatprep.mubr.msk.f32.mxu1 %vm711_vm0, %v7909_v31  ;;  %11472 = vmatprep.mubr.f32.mxu0 %v13538_v44 }
 0xc57   : > { %11435 = vmatmul.mubr.msk.f32.gmra.mrb[98].mxu1 %vm711_vm0, %v7910_v32 }
 0xc58   : > { %11437 = vmatprep.mubr.msk.f32.mxu1 %vm711_vm0, %v7911_v34 }
 0xc5b   : > { %11438 = vmatmul.mubr.msk.f32.gmra.mrb[100].mxu1 %vm711_vm0, %v7912_v35 }
 0xc5c   : > { %11528 = vmatprep.mubr.f32.mxu1 %v13538_v44 }
 0xcfe   : > { %v13542_v37 = vpop.f32.mrb[84].mxu0  ;;  %v13544_v36 = vpop.f32.mrb[76].mxu1 }
 0xcff   : > { %15230 = vst [vmem:[#allocation14_spill] sm:$0xff] %v13542_v37  ;;  %15231 = vst [vmem:[#allocation15_spill] sm:$0xff] %v13544_v36  ;;  %v13546_v39 = vpop.f32.mrb[85].mxu0  ;;  %v13548_v40 = vpop.f32.mrb[77].mxu1 }
 0xd00   : > { %15232 = vst [vmem:[#allocation16_spill] sm:$0xff] %v13546_v39  ;;  %15233 = vst [vmem:[#allocation17_spill] sm:$0xff] %v13548_v40  ;;  %v12034_v43 = vpack.c.bf16 %v13542_v37, %v13546_v39  ;;  %v12046_v50 = vpack.c.bf16 %v13544_v36, %v13548_v40 }
 0xd02   : > { %v13554_v52 = vpop.f32.mrb[86].mxu0  ;;  %12035 = vmatprep.subr.bf16.mxu0 %v12034_v43  ;;  %v13556_v11 = vpop.f32.mrb[78].mxu1 }
 0xd03   : > { %15234 = vst [vmem:[#allocation18_spill] sm:$0xff] %v13554_v52  ;;  %15235 = vst [vmem:[#allocation19_spill] sm:$0xff] %v13556_v11  ;;  %v13558_v53 = vpop.f32.mrb[87].mxu0  ;;  %12037 = vmatpush3.bf16.msra.mxu0 %v12034_v43  ;;  %v13560_v56 = vpop.f32.mrb[79].mxu1  ;;  %v13647_v43 = vld [vmem:[%s15058_s12 + $0x8] sm:$0xff] }
 0xd04   : > { %15236 = vst [vmem:[#allocation20_spill] sm:$0xff] %v13558_v53  ;;  %15237 = vst [vmem:[#allocation21_spill] sm:$0xff] %v13560_v56  ;;  %v12038_v63 = vpack.c.bf16 %v13554_v52, %v13558_v53  ;;  %v12050_v12 = vpack.c.bf16 %v13556_v11, %v13560_v56 }
 0xd06   : > { %v13566_v28 = vpop.f32.mrb[88].mxu0  ;;  %12039 = vmatprep.subr.bf16.mxu0 %v12038_v63  ;;  %v13568_v55 = vpop.f32.mrb[80].mxu1 }
 0xd07   : > { %15238 = vst [vmem:[#allocation22_spill] sm:$0xff] %v13566_v28  ;;  %15239 = vst [vmem:[#allocation23_spill] sm:$0xff] %v13568_v55  ;;  %v13570_v14 = vpop.f32.mrb[89].mxu0  ;;  %12041 = vmatpush3.bf16.msra.mxu0 %v12038_v63  ;;  %v13572_v49 = vpop.f32.mrb[81].mxu1 }
 0xd08   : > { %15240 = vst [vmem:[#allocation24_spill] sm:$0xff] %v13570_v14  ;;  %15241 = vst [vmem:[#allocation25_spill] sm:$0xff] %v13572_v49  ;;  %v12042_v47 = vpack.c.bf16 %v13566_v28, %v13570_v14  ;;  %v12054_v17 = vpack.c.bf16 %v13568_v55, %v13572_v49 }
 0xd0a   : > { %v13578_v54 = vpop.f32.mrb[90].mxu0  ;;  %12043 = vmatprep.subr.bf16.mxu0 %v12042_v47  ;;  %v13580_v23 = vpop.f32.mrb[82].mxu1 }
 0xd0b   : > { %15242 = vst [vmem:[#allocation26_spill] sm:$0xff] %v13578_v54  ;;  %15243 = vst [vmem:[#allocation27_spill] sm:$0xff] %v13580_v23  ;;  %v13582_v0 = vpop.f32.mrb[91].mxu0  ;;  %12045 = vmatpush3.bf16.msra.mxu0 %v12042_v47  ;;  %v13584_v42 = vpop.f32.mrb[83].mxu1  ;;  %v13658_v47 = vld [vmem:[%s15058_s12 + $0x10] sm:$0xff] }
 0xd0c   : > { %15244 = vst [vmem:[#allocation28_spill] sm:$0xff] %v13582_v0  ;;  %15245 = vst [vmem:[#allocation29_spill] sm:$0xff] %v13584_v42  ;;  %12047 = vmatprep.subr.bf16.mxu0 %v12046_v50  ;;  %v12066_v59 = vpack.c.bf16 %v13578_v54, %v13582_v0  ;;  %v12058_v13 = vpack.c.bf16 %v13580_v23, %v13584_v42 }
 0xd0e   : > { %v13590_v15 = vpop.f32.mrb[92].mxu0  ;;  %12067 = vmatprep.subr.bf16.mxu1 %v12066_v59  ;;  %v13592_v26 = vpop.f32.mrb[84].mxu1 }
 0xd0f   : > { %15246 = vst [vmem:[#allocation30_spill] sm:$0xff] %v13590_v15  ;;  %15247 = vst [vmem:[#allocation31_spill] sm:$0xff] %v13592_v26  ;;  %v13594_v19 = vpop.f32.mrb[93].mxu0  ;;  %12049 = vmatpush3.bf16.msra.mxu0 %v12046_v50  ;;  %12069 = vmatpush3.bf16.msra.mxu1 %v12066_v59  ;;  %v13596_v9 = vpop.f32.mrb[85].mxu1 }
 0xd10   : > { %15248 = vst [vmem:[#allocation32_spill] sm:$0xff] %v13594_v19  ;;  %15249 = vst [vmem:[#allocation33_spill] sm:$0xff] %v13596_v9  ;;  %12051 = vmatprep.subr.bf16.mxu0 %v12050_v12  ;;  %v12070_v62 = vpack.c.bf16 %v13590_v15, %v13594_v19  ;;  %v12062_v60 = vpack.c.bf16 %v13592_v26, %v13596_v9 }
 0xd12   : > { %v13602_v10 = vpop.f32.mrb[94].mxu0  ;;  %12071 = vmatprep.subr.bf16.mxu1 %v12070_v62  ;;  %v13604_v18 = vpop.f32.mrb[86].mxu1 }
 0xd13   : > { %15250 = vst [vmem:[#allocation34_spill] sm:$0xff] %v13602_v10  ;;  %15251 = vst [vmem:[#allocation35_spill] sm:$0xff] %v13604_v18  ;;  %v13606_v27 = vpop.f32.mrb[95].mxu0  ;;  %12053 = vmatpush3.bf16.msra.mxu0 %v12050_v12  ;;  %12073 = vmatpush3.bf16.msra.mxu1 %v12070_v62  ;;  %v13608_v2 = vpop.f32.mrb[87].mxu1  ;;  %v13670_v62 = vld [vmem:[%s15058_s12 + $0x18] sm:$0xff] }
 0xd14   : > { %15252 = vst [vmem:[#allocation36_spill] sm:$0xff] %v13606_v27  ;;  %15253 = vst [vmem:[#allocation37_spill] sm:$0xff] %v13608_v2  ;;  %12055 = vmatprep.subr.bf16.mxu0 %v12054_v17  ;;  %v12074_v1 = vpack.c.bf16 %v13602_v10, %v13606_v27  ;;  %v12098_v21 = vpack.c.bf16 %v13604_v18, %v13608_v2 }
 0xd16   : > { %v13614_v33 = vpop.f32.mrb[96].mxu0  ;;  %12075 = vmatprep.subr.bf16.mxu1 %v12074_v1  ;;  %v13616_v22 = vpop.f32.mrb[88].mxu1 }
 0xd17   : > { %15254 = vst [vmem:[#allocation38_spill] sm:$0xff] %v13614_v33  ;;  %15255 = vst [vmem:[#allocation39_spill] sm:$0xff] %v13616_v22  ;;  %v13618_v5 = vpop.f32.mrb[97].mxu0  ;;  %12057 = vmatpush3.bf16.msra.mxu0 %v12054_v17  ;;  %12077 = vmatpush3.bf16.msra.mxu1 %v12074_v1  ;;  %v13620_v38 = vpop.f32.mrb[89].mxu1 }
 0xd18   : > { %15256 = vst [vmem:[#allocation40_spill] sm:$0xff] %v13618_v5  ;;  %15257 = vst [vmem:[#allocation41_spill] sm:$0xff] %v13620_v38  ;;  %12059 = vmatprep.subr.bf16.mxu0 %v12058_v13  ;;  %v12078_v25 = vpack.c.bf16 %v13614_v33, %v13618_v5  ;;  %v12102_v3 = vpack.c.bf16 %v13616_v22, %v13620_v38 }
 0xd1a   : > { %v13626_v24 = vpop.f32.mrb[98].mxu0  ;;  %12079 = vmatprep.subr.bf16.mxu1 %v12078_v25  ;;  %v13628_v4 = vpop.f32.mrb[90].mxu1 }
 0xd1b   : > { %15258 = vst [vmem:[#allocation42_spill] sm:$0xff] %v13626_v24  ;;  %15259 = vst [vmem:[#allocation43_spill] sm:$0xff] %v13628_v4  ;;  %v13630_v6 = vpop.f32.mrb[99].mxu0  ;;  %12061 = vmatpush3.bf16.msra.mxu0 %v12058_v13  ;;  %12081 = vmatpush3.bf16.msra.mxu1 %v12078_v25  ;;  %v13632_v29 = vpop.f32.mrb[91].mxu1 }
 0xd1c   : > { %15260 = vst [vmem:[#allocation44_spill] sm:$0xff] %v13630_v6  ;;  %15261 = vst [vmem:[#allocation45_spill] sm:$0xff] %v13632_v29  ;;  %12063 = vmatprep.subr.bf16.mxu0 %v12062_v60  ;;  %v12082_v30 = vpack.c.bf16 %v13626_v24, %v13630_v6  ;;  %v12106_v31 = vpack.c.bf16 %v13628_v4, %v13632_v29 }
 0xd1e   : > { %v13638_v32 = vpop.f32.mrb[100].mxu0  ;;  %12083 = vmatprep.subr.bf16.mxu1 %v12082_v30  ;;  %v13640_v34 = vpop.f32.mrb[92].mxu1 }
 0xd1f   : > { %15262 = vst [vmem:[#allocation46_spill] sm:$0xff] %v13638_v32  ;;  %15263 = vst [vmem:[#allocation47_spill] sm:$0xff] %v13640_v34  ;;  %v13642_v35 = vpop.f32.mrb[101].mxu0  ;;  %12065 = vmatpush3.bf16.msra.mxu0 %v12062_v60  ;;  %12085 = vmatpush3.bf16.msra.mxu1 %v12082_v30  ;;  %v13649_v50 = vpop.f32.mrb[93].mxu1 }
 0xd20   : > { %15264 = vst [vmem:[#allocation48_spill] sm:$0xff] %v13642_v35  ;;  %15265 = vst [vmem:[#allocation49_spill] sm:$0xff] %v13649_v50  ;;  %12099 = vmatprep.subr.bf16.mxu0 %v12098_v21  ;;  %v12086_v63 = vpack.c.bf16 %v13638_v32, %v13642_v35  ;;  %v12110_v12 = vpack.c.bf16 %v13640_v34, %v13649_v50 }
 0xd22   : > { %v13660_v17 = vpop.f32.mrb[102].mxu0  ;;  %11473 = vmatmul.mubr.f32.vlgmr.msra.gmra.mrb[106].mxu0 %v13647_v43  ;;  %12087 = vmatprep.subr.bf16.mxu1 %v12086_v63  ;;  %v13663_v59 = vpop.f32.mrb[94].mxu1 }
 0xd23   : > { %15266 = vst [vmem:[#allocation50_spill] sm:$0xff] %v13660_v17  ;;  %15267 = vst [vmem:[#allocation51_spill] sm:$0xff] %v13663_v59  ;;  %v13665_v13 = vpop.f32.mrb[103].mxu0  ;;  %12089 = vmatpush3.bf16.msra.mxu1 %v12086_v63  ;;  %12101 = vmatpush3.bf16.msra.mxu0 %v12098_v21  ;;  %v13672_v60 = vpop.f32.mrb[95].mxu1  ;;  %v13682_v21 = vld [vmem:[%s15058_s12 + $0x20] sm:$0xff] }
 0xd24   : > { %15268 = vst [vmem:[#allocation52_spill] sm:$0xff] %v13665_v13  ;;  %15269 = vst [vmem:[#allocation53_spill] sm:$0xff] %v13672_v60  ;;  %11475 = vmatprep.mubr.f32.mxu0 %v13658_v47  ;;  %12103 = vmatprep.subr.bf16.mxu0 %v12102_v3  ;;  %v12090_v1 = vpack.c.bf16 %v13660_v17, %v13665_v13  ;;  %v12114_v25 = vpack.c.bf16 %v13663_v59, %v13672_v60 }
 0xd26   : > { %v13684_v30 = vpop.f32.mrb[104].mxu0  ;;  %11476 = vmatmul.mubr.f32.gmra.mrb[108].mxu0 %v13670_v62  ;;  %12091 = vmatprep.subr.bf16.mxu1 %v12090_v1  ;;  %v13687_v63 = vpop.f32.mrb[96].mxu1 }
 0xd27   : > { %15270 = vst [vmem:[#allocation54_spill] sm:$0xff] %v13684_v30  ;;  %15271 = vst [vmem:[#allocation55_spill] sm:$0xff] %v13687_v63  ;;  %v13689_v48 = vpop.f32.mrb[105].mxu0  ;;  %12093 = vmatpush3.bf16.msra.mxu1 %v12090_v1  ;;  %12105 = vmatpush3.bf16.msra.mxu0 %v12102_v3  ;;  %v13696_v57 = vpop.f32.mrb[97].mxu1  ;;  %v8402_v3 = vld [vmem:[%s15058_s12 + $0x30] sm:$0xff] }
 0xd28   : > { %15272 = vst [vmem:[#allocation56_spill] sm:$0xff] %v13689_v48  ;;  %15273 = vst [vmem:[#allocation57_spill] sm:$0xff] %v13696_v57  ;;  %11478 = vmatprep.mubr.f32.mxu0 %v13682_v21  ;;  %12107 = vmatprep.subr.bf16.mxu0 %v12106_v31  ;;  %v12094_v51 = vpack.c.bf16 %v13684_v30, %v13689_v48  ;;  %v12118_v41 = vpack.c.bf16 %v13687_v63, %v13696_v57 }
 0xd2a   : > { %11479 = vmatmul.mubr.f32.gmra.mrb[110].mxu0 %v13694_v20  ;;  %12095 = vmatprep.subr.bf16.mxu1 %v12094_v51  ;;  %v13707_v1 = vpop.f32.mrb[98].mxu1 }
 0xd2b   : > { %15274 = vst [vmem:[#allocation58_spill] sm:$0xff] %v13707_v1  ;;  %12097 = vmatpush3.bf16.msra.mxu1 %v12094_v51  ;;  %12109 = vmatpush3.bf16.msra.mxu0 %v12106_v31  ;;  %v13712_v7 = vpop.f32.mrb[99].mxu1  ;;  %v8405_v31 = vld [vmem:[%s15058_s12 + $0x48] sm:$0xff] }
 0xd2c   : > { %15275 = vst [vmem:[#allocation59_spill] sm:$0xff] %v13712_v7  ;;  %11481 = vmatprep.mubr.f32.mxu0 %v8402_v3  ;;  %12111 = vmatprep.subr.bf16.mxu0 %v12110_v12  ;;  %v12122_v45 = vpack.c.bf16 %v13707_v1, %v13712_v7  ;;  %v8408_v7 = vld [vmem:[%s15058_s12 + $0x60] sm:$0xff] }
 0xd2e   : > { %11482 = vmatmul.mubr.f32.gmra.mrb[112].mxu0 %v8403_v16  ;;  %11529 = vmatmul.mubr.f32.vlgmr.msra.gmra.mrb[102].mxu1 %v13647_v43  ;;  %v13720_v51 = vpop.f32.mrb[100].mxu1 }
 0xd2f   : > { %15276 = vst [vmem:[#allocation60_spill] sm:$0xff] %v13720_v51  ;;  %12113 = vmatpush3.bf16.msra.mxu0 %v12110_v12  ;;  %11484 = vmatprep.mubr.f32.mxu0 %v8404_v8  ;;  %v13725_v46 = vpop.f32.mrb[101].mxu1  ;;  %v8407_v12 = vld [vmem:[%s15058_s12 + $0x58] sm:$0xff] }
 0xd30   : > { %15277 = vst [vmem:[#allocation61_spill] sm:$0xff] %v13725_v46  ;;  %11531 = vmatprep.mubr.f32.mxu1 %v13658_v47  ;;  %12115 = vmatprep.subr.bf16.mxu0 %v12114_v25  ;;  %v12126_v61 = vpack.c.bf16 %v13720_v51, %v13725_v46  ;;  %v8410_v46 = vld [vmem:[%s15058_s12 + $0x70] sm:$0xff]  ;;  %v8411_v51 = vld [vmem:[%s15058_s12 + $0x78] sm:$0xff] }
 0xd32   : > { %11485 = vmatmul.mubr.f32.gmra.mrb[114].mxu0 %v8405_v31  ;;  %11532 = vmatmul.mubr.f32.gmra.mrb[104].mxu1 %v13670_v62 }
 0xd33   : > { %12117 = vmatpush3.bf16.msra.mxu0 %v12114_v25  ;;  %11487 = vmatprep.mubr.f32.mxu0 %v8406_v58  ;;  %v8409_v25 = vld [vmem:[%s15058_s12 + $0x68] sm:$0xff] }
 0xd34   : > { %11534 = vmatprep.mubr.f32.mxu1 %v13682_v21  ;;  %12119 = vmatprep.subr.bf16.mxu0 %v12118_v41 }
 0xd36   : > { %11488 = vmatmul.mubr.f32.gmra.mrb[116].mxu0 %v8407_v12  ;;  %11535 = vmatmul.mubr.f32.gmra.mrb[106].mxu1 %v13694_v20 }
 0xd37   : > { %12121 = vmatpush3.bf16.msra.mxu0 %v12118_v41  ;;  %11490 = vmatprep.mubr.f32.mxu0 %v8408_v7  ;;  %v13764_v41 = vmul.f32 0.2, %v13548_v40 }
 0xd38   : > { %11537 = vmatprep.mubr.f32.mxu1 %v8402_v3  ;;  %12123 = vmatprep.subr.bf16.mxu0 %v12122_v45 }
 0xd39   : > { %15280 = vst [vmem:[#allocation64_spill] sm:$0xff] %v13764_v41  ;;  %v13829_v41 = vmul.f32 0.2, %v13602_v10 }
 0xd3a   : > { %11491 = vmatmul.mubr.f32.gmra.mrb[118].mxu0 %v8409_v25  ;;  %11538 = vmatmul.mubr.f32.gmra.mrb[108].mxu1 %v8403_v16 }
 0xd3b   : > { %12125 = vmatpush3.bf16.msra.mxu0 %v12122_v45  ;;  %11493 = vmatprep.mubr.f32.mxu0 %v8410_v46  ;;  %v13758_v45 = vmul.f32 0.2, %v13542_v37  ;;  %15300 = vst [vmem:[#allocation84_spill] sm:$0xff] %v13829_v41  ;;  %v13850_v41 = vmul.f32 0.2, %v13616_v22 }
 0xd3c   : > { %11540 = vmatprep.mubr.f32.mxu1 %v8404_v8  ;;  %12127 = vmatprep.subr.bf16.mxu0 %v12126_v61 }
 0xd3d   : > { %15278 = vst [vmem:[#allocation62_spill] sm:$0xff] %v13758_v45  ;;  %15307 = vst [vmem:[#allocation91_spill] sm:$0xff] %v13850_v41  ;;  %v13868_v41 = vmul.f32 0.2, %v13630_v6 }
 0xd3e   : > { %11494 = vmatmul.mubr.f32.gmra.mrb[120].mxu0 %v8411_v51  ;;  %11541 = vmatmul.mubr.f32.gmra.mrb[110].mxu1 %v8405_v31 }
 0xd3f   : > { %12129 = vmatpush3.bf16.msra.mxu0 %v12126_v61  ;;  %11543 = vmatprep.mubr.f32.mxu1 %v8406_v58  ;;  %v13761_v61 = vmul.f32 0.2, %v13546_v39  ;;  %15311 = vst [vmem:[#allocation95_spill] sm:$0xff] %v13868_v41 }
 0xd40   : > { %11584 = vmatprep.mubr.f32.mxu0 %v13538_v44  ;;  %v13785_v44 = vmul.f32 0.2, %v13568_v55 }
 0xd41   : > { %15279 = vst [vmem:[#allocation63_spill] sm:$0xff] %v13761_v61 }
 0xd42   : > { %11544 = vmatmul.mubr.f32.gmra.mrb[112].mxu1 %v8407_v12  ;;  %11585 = vmatmul.mubr.f32.vlgmr.msra.gmra.mrb[122].mxu0 %v13647_v43  ;;  %15287 = vst [vmem:[#allocation71_spill] sm:$0xff] %v13785_v44  ;;  %v13788_v43 = vmul.f32 0.2, %v13578_v54  ;;  %v13812_v44 = vmul.f32 0.2, %v13584_v42 }
 0xd43   : > { %11546 = vmatprep.mubr.f32.mxu1 %v8408_v7  ;;  %11587 = vmatprep.mubr.f32.mxu0 %v13658_v47  ;;  %v13791_v47 = vmul.f32 0.2, %v13570_v14 }
 0xd44   : > { %15288 = vst [vmem:[#allocation72_spill] sm:$0xff] %v13788_v43  ;;  %15295 = vst [vmem:[#allocation79_spill] sm:$0xff] %v13812_v44  ;;  %v13832_v44 = vmul.f32 0.2, %v13604_v18 }
 0xd45   : > { %15289 = vst [vmem:[#allocation73_spill] sm:$0xff] %v13791_v47  ;;  %v13837_v47 = vmul.f32 0.2, %v13614_v33 }
 0xd46   : > { %11547 = vmatmul.mubr.f32.gmra.mrb[114].mxu1 %v8409_v25  ;;  %11588 = vmatmul.mubr.f32.gmra.mrb[124].mxu0 %v13670_v62  ;;  %v13794_v62 = vmul.f32 0.2, %v13572_v49  ;;  %15301 = vst [vmem:[#allocation85_spill] sm:$0xff] %v13832_v44 }
 0xd47   : > { %11549 = vmatprep.mubr.f32.mxu1 %v8410_v46  ;;  %11590 = vmatprep.mubr.f32.mxu0 %v13682_v21  ;;  %15303 = vst [vmem:[#allocation87_spill] sm:$0xff] %v13837_v47  ;;  %v13858_v47 = vmul.f32 0.2, %v13620_v38 }
 0xd48   : > { %15290 = vst [vmem:[#allocation74_spill] sm:$0xff] %v13794_v62 }
 0xd49   : > { %15309 = vst [vmem:[#allocation93_spill] sm:$0xff] %v13858_v47 }
 0xd4a   : > { %11550 = vmatmul.mubr.f32.gmra.mrb[116].mxu1 %v8411_v51  ;;  %11591 = vmatmul.mubr.f32.gmra.mrb[126].mxu0 %v13694_v20  ;;  %v13767_v20 = vmul.f32 0.2, %v13544_v36 }
 0xd4b   : > { %11593 = vmatprep.mubr.f32.mxu0 %v8402_v3  ;;  %v13799_v3 = vmul.f32 0.2, %v13582_v0 }
 0xd4c   : > { %15281 = vst [vmem:[#allocation65_spill] sm:$0xff] %v13767_v20  ;;  %v13826_v20 = vmul.f32 0.2, %v13606_v27 }
 0xd4d   : > { %15291 = vst [vmem:[#allocation75_spill] sm:$0xff] %v13799_v3  ;;  %v13883_v3 = vmul.f32 0.2, %v13640_v34 }
 0xd4e   : > { %11594 = vmatmul.mubr.f32.gmra.mrb[128].mxu0 %v8403_v16  ;;  %v13770_v16 = vmul.f32 0.2, %v13558_v53  ;;  %15299 = vst [vmem:[#allocation83_spill] sm:$0xff] %v13826_v20  ;;  %v13847_v20 = vmul.f32 0.2, %v13618_v5 }
 0xd4f   : > { %11596 = vmatprep.mubr.f32.mxu0 %v8404_v8  ;;  %v13779_v8 = vmul.f32 0.2, %v13566_v28  ;;  %15315 = vst [vmem:[#allocation99_spill] sm:$0xff] %v13883_v3  ;;  %v13901_v3 = vmul.f32 0.2, %v13660_v17 }
 0xd50   : > { %15282 = vst [vmem:[#allocation66_spill] sm:$0xff] %v13770_v16  ;;  %15306 = vst [vmem:[#allocation90_spill] sm:$0xff] %v13847_v20  ;;  %v13871_v16 = vmul.f32 0.2, %v13632_v29 }
 0xd51   : > { %15285 = vst [vmem:[#allocation69_spill] sm:$0xff] %v13779_v8  ;;  %15319 = vst [vmem:[#allocation103_spill] sm:$0xff] %v13901_v3 }
 0xd52   : > { %11597 = vmatmul.mubr.f32.gmra.mrb[130].mxu0 %v8405_v31  ;;  %15312 = vst [vmem:[#allocation96_spill] sm:$0xff] %v13871_v16  ;;  %v13890_v16 = vmul.f32 0.2, %v13642_v35 }
 0xd53   : > { %11599 = vmatprep.mubr.f32.mxu0 %v8406_v58  ;;  %v13773_v58 = vmul.f32 0.2, %v13554_v52 }
 0xd54   : > { %15317 = vst [vmem:[#allocation101_spill] sm:$0xff] %v13890_v16 }
 0xd55   : > { %15283 = vst [vmem:[#allocation67_spill] sm:$0xff] %v13773_v58 }
 0xd56   : > { %11600 = vmatmul.mubr.f32.gmra.mrb[132].mxu0 %v8407_v12 }
 0xd57   : > { %11602 = vmatprep.mubr.f32.mxu0 %v8408_v7  ;;  %v13782_v7 = vmul.f32 0.2, %v13560_v56 }
 0xd59   : > { %15286 = vst [vmem:[#allocation70_spill] sm:$0xff] %v13782_v7  ;;  %v13820_v7 = vmul.f32 0.2, %v13596_v9 }
 0xd5a   : > { %11603 = vmatmul.mubr.f32.gmra.mrb[134].mxu0 %v8409_v25  ;;  %v13809_v25 = vmul.f32 0.2, %v13590_v15 }
 0xd5b   : > { %11605 = vmatprep.mubr.f32.mxu0 %v8410_v46  ;;  %v13776_v46 = vmul.f32 0.2, %v13556_v11  ;;  %15297 = vst [vmem:[#allocation81_spill] sm:$0xff] %v13820_v7 }
 0xd5c   : > { %15294 = vst [vmem:[#allocation78_spill] sm:$0xff] %v13809_v25  ;;  %v13840_v25 = vmul.f32 0.2, %v13608_v2 }
 0xd5d   : > { %15284 = vst [vmem:[#allocation68_spill] sm:$0xff] %v13776_v46  ;;  %v13817_v46 = vmul.f32 0.2, %v13594_v19 }
 0xd5e   : > { %11606 = vmatmul.mubr.f32.gmra.mrb[136].mxu0 %v8411_v51  ;;  %v13802_v51 = vmul.f32 0.2, %v13580_v23  ;;  %15304 = vst [vmem:[#allocation88_spill] sm:$0xff] %v13840_v25  ;;  %v13861_v25 = vmul.f32 0.2, %v13628_v4 }
 0xd5f   : > { %15296 = vst [vmem:[#allocation80_spill] sm:$0xff] %v13817_v46  ;;  %v13855_v46 = vmul.f32 0.2, %v13626_v24 }
 0xd60   : > { %15292 = vst [vmem:[#allocation76_spill] sm:$0xff] %v13802_v51  ;;  %v13823_v51 = vmul.f32 0.2, %v13592_v26  ;;  %15310 = vst [vmem:[#allocation94_spill] sm:$0xff] %v13861_v25  ;;  %v13880_v25 = vmul.f32 0.2, %v13638_v32 }
 0xd61   : > { %15308 = vst [vmem:[#allocation92_spill] sm:$0xff] %v13855_v46 }
 0xd62   : > { %15298 = vst [vmem:[#allocation82_spill] sm:$0xff] %v13823_v51  ;;  %15314 = vst [vmem:[#allocation98_spill] sm:$0xff] %v13880_v25 }
 0xdf5   : > { %v13796_v21 = vpop.f32.mrb[106].mxu0 }
 0xdf6   : > { %v8848_v31 = vmul.f32 %v13796_v21, %v13542_v37  ;;  %v13806_v12 = vpop.f32.mrb[107].mxu0  ;;  %v8976_v58 = vmul.f32 %v13796_v21, %v13796_v21 }
 0xdf7   : > { %15293 = vst [vmem:[#allocation77_spill] sm:$0xff] %v13806_v12  ;;  %v8847_v62 = vmul.f32 %v13806_v12, %v13546_v39  ;;  %v8975_v20 = vmul.f32 %v13806_v12, %v13806_v12 }
 0xdf8   : > { %v8900_v45 = vsel %vm15215_vm1, %v8848_v31, 0.0 }
 0xdf9   : > { %v13834_v8 = vpop.f32.mrb[108].mxu0  ;;  %v8895_v37 = vsel %vm15215_vm1, %v8847_v62, 0.0  ;;  %v9023_v16 = vsel %vm15215_vm1, %v8975_v20, 0.0 }
 0xdfa   : > { %15302 = vst [vmem:[#allocation86_spill] sm:$0xff] %v13834_v8  ;;  %v8850_v51 = vmul.f32 %v13834_v8, %v13554_v52  ;;  %v13844_v7 = vpop.f32.mrb[109].mxu0  ;;  %v8978_v46 = vmul.f32 %v13834_v8, %v13834_v8 }
 0xdfb   : > { %15305 = vst [vmem:[#allocation89_spill] sm:$0xff] %v13844_v7  ;;  %v8849_v44 = vmul.f32 %v13844_v7, %v13558_v53  ;;  %v8977_v47 = vmul.f32 %v13844_v7, %v13844_v7  ;;  %v13893_v53 = vmul.f32 0.2, %v13649_v50 }
 0xdfc   : > { %v8910_v39 = vsel %vm15215_vm1, %v8850_v51, 0.0 }
 0xdfd   : > { %v13877_v43 = vpop.f32.mrb[110].mxu0  ;;  %15318 = vst [vmem:[#allocation102_spill] sm:$0xff] %v13893_v53  ;;  %v9038_v53 = vsel %vm15215_vm1, %v8978_v46, 0.0  ;;  %v8905_v31 = vsel %vm15215_vm1, %v8849_v44, 0.0  ;;  %v9033_v1 = vsel %vm15215_vm1, %v8977_v47, 0.0 }
 0xdfe   : > { %15313 = vst [vmem:[#allocation97_spill] sm:$0xff] %v13877_v43  ;;  %v8852_v41 = vmul.f32 %v13877_v43, %v13566_v28  ;;  %v13887_v52 = vpop.f32.mrb[111].mxu0  ;;  %v8980_v61 = vmul.f32 %v13877_v43, %v13877_v43  ;;  %v9028_v28 = vsel %vm15215_vm1, %v8976_v58, 0.0 }
 0xdff   : > { %15316 = vst [vmem:[#allocation100_spill] sm:$0xff] %v13887_v52  ;;  %v8851_v25 = vmul.f32 %v13887_v52, %v13570_v14  ;;  %v8979_v14 = vmul.f32 %v13887_v52, %v13887_v52 }
 0xe00   : > { %v13917_v58 = vsel %vm15215_vm1, %v8852_v41, 0.0  ;;  %v13930_v51 = vsel %vm15215_vm1, %v8980_v61, 0.0 }
 0xe01   : > { %v13912_v57 = vpop.f32.mrb[112].mxu0  ;;  %v13914_v3 = vpop.f32.mrb[102].mxu1  ;;  %v13946_v7 = vsel %vm15215_vm1, %v8979_v14, 0.0 }
 0xe02   : > { %15320 = vst [vmem:[#allocation104_spill] sm:$0xff] %v13912_v57  ;;  %v8854_v20 = vmul.f32 %v13912_v57, %v13544_v36  ;;  %v8864_v46 = vmul.f32 %v13914_v3, %v13578_v54  ;;  %v8992_v44 = vmul.f32 %v13914_v3, %v13914_v3  ;;  %v13925_v47 = vpop.f32.mrb[113].mxu0  ;;  %v13927_v62 = vpop.f32.mrb[103].mxu1  ;;  %v13939_v54 = vsel %vm15215_vm1, %v8851_v25, 0.0 }
 0xe03   : > { %15321 = vst [vmem:[#allocation105_spill] sm:$0xff] %v13925_v47  ;;  %15322 = vst [vmem:[#allocation106_spill] sm:$0xff] %v13927_v62  ;;  %v8853_v41 = vmul.f32 %v13925_v47, %v13548_v40  ;;  %v8863_v52 = vmul.f32 %v13927_v62, %v13582_v0  ;;  %v8991_v36 = vmul.f32 %v13927_v62, %v13927_v62 }
 0xe04   : > { %v8982_v43 = vmul.f32 %v13912_v57, %v13912_v57  ;;  %v8901_v63 = vsel %vm15215_vm1, %v8864_v46, 0.0  ;;  %v9029_v61 = vsel %vm15215_vm1, %v8992_v44, 0.0  ;;  %v8981_v0 = vmul.f32 %v13925_v47, %v13925_v47 }
 0xe05   : > { %v13948_v40 = vadd.f32 %v8901_v63, %v8900_v45  ;;  %v13950_v60 = vadd.f32 %v9029_v61, %v9028_v28  ;;  %v13954_v8 = vpop.f32.mrb[114].mxu0  ;;  %v13956_v25 = vpop.f32.mrb[104].mxu1  ;;  %v13959_v57 = vsel %vm15215_vm1, %v8854_v20, 0.0  ;;  %v8896_v46 = vsel %vm15215_vm1, %v8863_v52, 0.0 }
 0xe06   : > { %15323 = vst [vmem:[#allocation107_spill] sm:$0xff] %v13954_v8  ;;  %15324 = vst [vmem:[#allocation108_spill] sm:$0xff] %v13956_v25  ;;  %v9024_v44 = vsel %vm15215_vm1, %v8991_v36, 0.0  ;;  %v8856_v14 = vmul.f32 %v13954_v8, %v13556_v11  ;;  %v13965_v63 = vpop.f32.mrb[115].mxu0  ;;  %v13967_v28 = vpop.f32.mrb[105].mxu1  ;;  %v13969_v45 = vadd.f32 %v8896_v46, %v8895_v37  ;;  %v8866_v47 = vmul.f32 %v13956_v25, %v13590_v15  ;;  %v9503_v36 = vld [vmem:[%s15059_s13] sm:$0xff] }
 0xe07   : > { %15325 = vst [vmem:[#allocation109_spill] sm:$0xff] %v13965_v63  ;;  %15326 = vst [vmem:[#allocation110_spill] sm:$0xff] %v13967_v28  ;;  %v13971_v61 = vadd.f32 %v9024_v44, %v9023_v16  ;;  %v8994_v20 = vmul.f32 %v13956_v25, %v13956_v25  ;;  %v13981_v52 = vsel %vm15215_vm1, %v8982_v43, 0.0  ;;  %v13984_v11 = vsel %vm15215_vm1, %v8853_v41, 0.0  ;;  %11640 = vmatprep.mubr.f32.mxu1 %v9503_v36 }
 0xe08   : > { %v8984_v37 = vmul.f32 %v13954_v8, %v13954_v8  ;;  %v8855_v16 = vmul.f32 %v13965_v63, %v13560_v56  ;;  %11678 = vmatprep.mubr.f32.mxu0 %v9503_v36  ;;  %v8911_v46 = vsel %vm15215_vm1, %v8866_v47, 0.0  ;;  %v8865_v15 = vmul.f32 %v13967_v28, %v13594_v19 }
 0xe09   : > { %v9039_v44 = vsel %vm15215_vm1, %v8994_v20, 0.0  ;;  %v8993_v43 = vmul.f32 %v13967_v28, %v13967_v28  ;;  %v13996_v41 = vpop.f32.mrb[116].mxu0  ;;  %v13998_v25 = vpop.f32.mrb[106].mxu1  ;;  %v9053_v8 = vsel %vm15215_vm1, %v8981_v0, 0.0  ;;  %v14002_v56 = vsel %vm15215_vm1, %v8856_v14, 0.0 }
 0xe0a   : > { %15327 = vst [vmem:[#allocation111_spill] sm:$0xff] %v13996_v41  ;;  %15328 = vst [vmem:[#allocation112_spill] sm:$0xff] %v13998_v25  ;;  %v14004_v36 = vadd.f32 %v8911_v46, %v8910_v39  ;;  %v14006_v47 = vadd.f32 %v9039_v44, %v9038_v53  ;;  %v14008_v20 = vpop.f32.mrb[117].mxu0  ;;  %v14010_v50 = vpop.f32.mrb[107].mxu1  ;;  %v8983_v19 = vmul.f32 %v13965_v63, %v13965_v63  ;;  %v8906_v28 = vsel %vm15215_vm1, %v8865_v15, 0.0 }
 0xe0b   : > { %15329 = vst [vmem:[#allocation113_spill] sm:$0xff] %v14008_v20  ;;  %15330 = vst [vmem:[#allocation114_spill] sm:$0xff] %v14010_v50  ;;  %v9034_v62 = vsel %vm15215_vm1, %v8993_v43, 0.0  ;;  %v8858_v0 = vmul.f32 %v13996_v41, %v13568_v55  ;;  %v14018_v14 = vadd.f32 %v8906_v28, %v8905_v31  ;;  %v8868_v53 = vmul.f32 %v13998_v25, %v13602_v10 }
 0xe0c   : > { %v14020_v39 = vadd.f32 %v9034_v62, %v9033_v1  ;;  %v8996_v46 = vmul.f32 %v13998_v25, %v13998_v25  ;;  %v14027_v44 = vsel %vm15215_vm1, %v8984_v37, 0.0  ;;  %v14030_v15 = vsel %vm15215_vm1, %v8855_v16, 0.0 }
 0xe0d   : > { %v8986_v43 = vmul.f32 %v13996_v41, %v13996_v41  ;;  %v8857_v31 = vmul.f32 %v14008_v20, %v13572_v49  ;;  %v14036_v1 = vpop.f32.mrb[118].mxu0  ;;  %v14038_v62 = vpop.f32.mrb[108].mxu1  ;;  %v8921_v28 = vsel %vm15215_vm1, %v8868_v53, 0.0  ;;  %v8867_v37 = vmul.f32 %v14010_v50, %v13606_v27 }
 0xe0e   : > { %15331 = vst [vmem:[#allocation115_spill] sm:$0xff] %v14036_v1  ;;  %15332 = vst [vmem:[#allocation116_spill] sm:$0xff] %v14038_v62  ;;  %v9049_v55 = vsel %vm15215_vm1, %v8996_v46, 0.0  ;;  %v8995_v16 = vmul.f32 %v14010_v50, %v14010_v50  ;;  %v14046_v10 = vpop.f32.mrb[119].mxu0  ;;  %v14048_v41 = vpop.f32.mrb[109].mxu1  ;;  %v9063_v49 = vsel %vm15215_vm1, %v8983_v19, 0.0  ;;  %v14055_v25 = vadd.f32 %v8921_v28, %v13917_v58 }
 0xe0f   : > { %15333 = vst [vmem:[#allocation117_spill] sm:$0xff] %v14046_v10  ;;  %15334 = vst [vmem:[#allocation118_spill] sm:$0xff] %v14048_v41  ;;  %v14052_v63 = vsel %vm15215_vm1, %v8858_v0, 0.0  ;;  %v14058_v53 = vadd.f32 %v9049_v55, %v13930_v51  ;;  %v8985_v46 = vmul.f32 %v14008_v20, %v14008_v20  ;;  %v8916_v27 = vsel %vm15215_vm1, %v8867_v37, 0.0 }
 0xe10   : > { %v9044_v50 = vsel %vm15215_vm1, %v8995_v16, 0.0  ;;  %v8860_v12 = vmul.f32 %v14036_v1, %v13580_v23  ;;  %v14067_v19 = vadd.f32 %v8916_v27, %v13939_v54  ;;  %v8870_v55 = vmul.f32 %v14038_v62, %v13614_v33 }
 0xe11   : > { %v14070_v0 = vadd.f32 %v9044_v50, %v13946_v7  ;;  %v8998_v58 = vmul.f32 %v14038_v62, %v14038_v62  ;;  %v14076_v51 = vpop.f32.mrb[120].mxu0  ;;  %v14078_v28 = vpop.f32.mrb[110].mxu1  ;;  %v9078_v37 = vsel %vm15215_vm1, %v8986_v43, 0.0  ;;  %v8988_v16 = vmul.f32 %v14036_v1, %v14036_v1 }
 0xe12   : > { %15335 = vst [vmem:[#allocation119_spill] sm:$0xff] %v14076_v51  ;;  %15336 = vst [vmem:[#allocation120_spill] sm:$0xff] %v14078_v28  ;;  %v8859_v54 = vmul.f32 %v14046_v10, %v13584_v42  ;;  %v8987_v27 = vmul.f32 %v14046_v10, %v14046_v10  ;;  %v14087_v50 = vpop.f32.mrb[121].mxu0  ;;  %v14089_v7 = vpop.f32.mrb[111].mxu1  ;;  %v8931_v23 = vsel %vm15215_vm1, %v8870_v55, 0.0  ;;  %v8869_v43 = vmul.f32 %v14048_v41, %v13618_v5 }
 0xe13   : > { %15337 = vst [vmem:[#allocation121_spill] sm:$0xff] %v14087_v50  ;;  %15338 = vst [vmem:[#allocation122_spill] sm:$0xff] %v14089_v7  ;;  %v9059_v33 = vsel %vm15215_vm1, %v8998_v58, 0.0  ;;  %v8997_v1 = vmul.f32 %v14048_v41, %v14048_v41  ;;  %v8945_v20 = vsel %vm15215_vm1, %v8857_v31, 0.0  ;;  %v9073_v42 = vsel %vm15215_vm1, %v8985_v46, 0.0 }
 0xe14   : > { %v14100_v10 = vadd.f32 %v8931_v23, %v13959_v57  ;;  %v14103_v62 = vadd.f32 %v9059_v33, %v13981_v52  ;;  %v14106_v55 = vsel %vm15215_vm1, %v8860_v12, 0.0  ;;  %v8926_v58 = vsel %vm15215_vm1, %v8869_v43, 0.0 }
 0xe15   : > { %v9054_v5 = vsel %vm15215_vm1, %v8997_v1, 0.0  ;;  %v8862_v41 = vmul.f32 %v14076_v51, %v13592_v26  ;;  %v14112_v34 = vpop.f32.mrb[112].mxu1  ;;  %v14114_v31 = vpop.f32.mrb[122].mxu0  ;;  %v14117_v57 = vadd.f32 %v8926_v58, %v13984_v11  ;;  %v8872_v33 = vmul.f32 %v14078_v28, %v13626_v24 }
 0xe16   : > { %15339 = vst [vmem:[#allocation123_spill] sm:$0xff] %v14112_v34  ;;  %v14119_v23 = vadd.f32 %v9054_v5, %v9053_v8  ;;  %v9000_v12 = vmul.f32 %v14078_v28, %v14078_v28  ;;  %v14125_v52 = vpop.f32.mrb[113].mxu1  ;;  %v14127_v1 = vpop.f32.mrb[123].mxu0  ;;  %v14130_v46 = vsel %vm15215_vm1, %v8988_v16, 0.0  ;;  %v14133_v43 = vsel %vm15215_vm1, %v8859_v54, 0.0 }
 0xe17   : > { %15340 = vst [vmem:[#allocation124_spill] sm:$0xff] %v14125_v52  ;;  %v14136_v11 = vsel %vm15215_vm1, %v8987_v27, 0.0  ;;  %v14140_v5 = vmul.f32 %v14087_v50, %v13596_v9  ;;  %v8941_v8 = vsel %vm15215_vm1, %v8872_v33, 0.0  ;;  %v8871_v26 = vmul.f32 %v14089_v7, %v13630_v6 }
 0xe18   : > { %v9069_v58 = vsel %vm15215_vm1, %v9000_v12, 0.0  ;;  %v8999_v16 = vmul.f32 %v14089_v7, %v14089_v7  ;;  %v14149_v54 = vsel %vm15215_vm1, %v8862_v41, 0.0  ;;  %v8990_v27 = vmul.f32 %v14076_v51, %v14076_v51 }
 0xe19   : > { %v14154_v24 = vadd.f32 %v8941_v8, %v14002_v56  ;;  %v14157_v9 = vadd.f32 %v9069_v58, %v14027_v44  ;;  %v14159_v33 = vpop.f32.mrb[114].mxu1  ;;  %v14161_v12 = vpop.f32.mrb[124].mxu0  ;;  %v8936_v6 = vsel %vm15215_vm1, %v8871_v26, 0.0  ;;  %v8874_v41 = vmul.f32 %v14112_v34, %v13638_v32 }
 0xe1a   : > { %15342 = vst [vmem:[#allocation126_spill] sm:$0xff] %v14159_v33  ;;  %v9064_v7 = vsel %vm15215_vm1, %v8999_v16, 0.0  ;;  %v9002_v51 = vmul.f32 %v14112_v34, %v14112_v34  ;;  %v14169_v28 = vpop.f32.mrb[115].mxu1  ;;  %v14171_v56 = vpop.f32.mrb[125].mxu0  ;;  %v14174_v44 = vadd.f32 %v8936_v6, %v14030_v15  ;;  %v8880_v26 = vmul.f32 %v14114_v31, %v13604_v18 }
 0xe1b   : > { %15341 = vst [vmem:[#allocation125_spill] sm:$0xff] %v14157_v9  ;;  %15343 = vst [vmem:[#allocation127_spill] sm:$0xff] %v14169_v28  ;;  %v14176_v8 = vadd.f32 %v9064_v7, %v9063_v49  ;;  %v9008_v58 = vmul.f32 %v14114_v31, %v14114_v31  ;;  %v8951_v16 = vsel %vm15215_vm1, %v8874_v41, 0.0  ;;  %v8873_v34 = vmul.f32 %v14125_v52, %v13642_v35 }
 0xe1c   : > { %v9079_v32 = vsel %vm15215_vm1, %v9002_v51, 0.0  ;;  %v9001_v9 = vmul.f32 %v14125_v52, %v14125_v52  ;;  %v14189_v6 = vadd.f32 %v8951_v16, %v14052_v63  ;;  %v8903_v15 = vsel %vm15215_vm1, %v8880_v26, 0.0 }
 0xe1d   : > { %15344 = vst [vmem:[#allocation128_spill] sm:$0xff] %v14176_v8  ;;  %v14191_v49 = vadd.f32 %v9079_v32, %v9078_v37  ;;  %v9031_v7 = vsel %vm15215_vm1, %v9008_v58, 0.0  ;;  %v14195_v8 = vpop.f32.mrb[116].mxu1  ;;  %v14197_v41 = vpop.f32.mrb[126].mxu0  ;;  %v14200_v51 = vadd.f32 %v8903_v15, %v13948_v40  ;;  %v8946_v52 = vsel %vm15215_vm1, %v8873_v34, 0.0 }
 0xe1e   : > { %15345 = vst [vmem:[#allocation129_spill] sm:$0xff] %v14195_v8  ;;  %v9032_v35 = vadd.f32 %v9031_v7, %v13950_v60  ;;  %v9074_v63 = vsel %vm15215_vm1, %v9001_v9, 0.0  ;;  %v14205_v16 = vpop.f32.mrb[117].mxu1  ;;  %v14207_v32 = vpop.f32.mrb[127].mxu0  ;;  %v14209_v37 = vadd.f32 %v8946_v52, %v8945_v20  ;;  %v8879_v58 = vmul.f32 %v14127_v1, %v13608_v2  ;;  %v15371_v2 = vld [vmem:[#allocation97_spill] sm:$0xff] }
 0xe1f   : > { %15346 = vst [vmem:[#allocation130_spill] sm:$0xff] %v14205_v16  ;;  %v14211_v26 = vadd.f32 %v9074_v63, %v9073_v42  ;;  %v9007_v40 = vmul.f32 %v14127_v1, %v14127_v1  ;;  %v9098_v60 = vsel %vm15215_vm1, %v8990_v27, 0.0  ;;  %v8876_v9 = vmul.f32 %v14159_v33, %v13660_v17 }
 0xe20   : > { %15347 = vst [vmem:[#allocation131_spill] sm:$0xff] %v14209_v37  ;;  %v9104_v15 = vadd.f32 1e-06, %v9032_v35  ;;  %v9004_v34 = vmul.f32 %v14159_v33, %v14159_v33  ;;  %v8898_v20 = vsel %vm15215_vm1, %v8879_v58, 0.0  ;;  %v8882_v52 = vmul.f32 %v14161_v12, %v13616_v22 }
 0xe21   : > { %15348 = vst [vmem:[#allocation132_spill] sm:$0xff] %v14211_v26  ;;  %v9026_v42 = vsel %vm15215_vm1, %v9007_v40, 0.0  ;;  %v9010_v7 = vmul.f32 %v14161_v12, %v14161_v12  ;;  %v14228_v63 = vpop.f32.mrb[128].mxu0  ;;  %v14231_v35 = vadd.f32 %v8898_v20, %v13969_v45  ;;  %v8961_v17 = vsel %vm15215_vm1, %v8876_v9, 0.0 }
 0xe22   : > { %12408 = vrcp.f32 %v9104_v15  ;;  %v9027_v27 = vadd.f32 %v9026_v42, %v13971_v61  ;;  %v14235_v33 = vpop.f32.mrb[129].mxu0  ;;  %v14238_v58 = vadd.f32 %v8961_v17, %v14106_v55  ;;  %v9089_v40 = vsel %vm15215_vm1, %v9004_v34, 0.0 }
 0xe23   : > { %v8913_v26 = vsel %vm15215_vm1, %v8882_v52, 0.0  ;;  %v9041_v37 = vsel %vm15215_vm1, %v9010_v7, 0.0  ;;  %v8989_v15 = vmul.f32 %v14087_v50, %v14087_v50  ;;  %v14246_v20 = vadd.f32 %v9089_v40, %v14130_v46 }
 0xe24   : > { %v9103_v45 = vadd.f32 1e-06, %v9027_v27  ;;  %v14249_v61 = vadd.f32 %v8913_v26, %v14004_v36  ;;  %v9042_v9 = vadd.f32 %v9041_v37, %v14006_v47  ;;  %v8875_v17 = vmul.f32 %v14169_v28, %v13665_v13 }
 0xe25   : > { %v9003_v55 = vmul.f32 %v14169_v28, %v14169_v28  ;;  %v8881_v34 = vmul.f32 %v14171_v56, %v13620_v38  ;;  %v14258_v42 = vpop.f32.mrb[130].mxu0  ;;  %v8965_v46 = vsel %vm15215_vm1, %v14140_v5, 0.0  ;;  %v9009_v36 = vmul.f32 %v14171_v56, %v14171_v56 }
 0xe26   : > { %12410 = vrcp.f32 %v9103_v45  ;;  %v8878_v47 = vmul.f32 %v14195_v8, %v13684_v30  ;;  %v14266_v37 = vpop.f32.mrb[131].mxu0  ;;  %v9106_v26 = vadd.f32 1e-06, %v9042_v9  ;;  %v8956_v52 = vsel %vm15215_vm1, %v8875_v17, 0.0 }
 0xe27   : > { %v9084_v7 = vsel %vm15215_vm1, %v9003_v55, 0.0  ;;  %v8908_v27 = vsel %vm15215_vm1, %v8881_v34, 0.0  ;;  %v14272_v40 = vadd.f32 %v8956_v52, %v14133_v43  ;;  %v9036_v50 = vsel %vm15215_vm1, %v9009_v36, 0.0 }
 0xe28   : > { %v14275_v5 = vadd.f32 %v9084_v7, %v14136_v11  ;;  %v14278_v45 = vadd.f32 %v8908_v27, %v14018_v14  ;;  %12412 = vrcp.f32 %v9106_v26  ;;  %v9037_v9 = vadd.f32 %v9036_v50, %v14020_v39 }
 0xe29   : > { %v8971_v17 = vsel %vm15215_vm1, %v8878_v47, 0.0  ;;  %v9006_v55 = vmul.f32 %v14195_v8, %v14195_v8  ;;  %v14285_v34 = vpop.f32.mrb[132].mxu0  ;;  %v9093_v43 = vsel %vm15215_vm1, %v8989_v15, 0.0  ;;  %v8884_v14 = vmul.f32 %v14197_v41, %v13628_v4  ;;  %v15379_v4 = vld [vmem:[#allocation100_spill] sm:$0xff] }
 0xe2a   : > { %v14289_v11 = vadd.f32 %v8971_v17, %v14149_v54  ;;  %v9012_v36 = vmul.f32 %v14197_v41, %v14197_v41  ;;  %v14295_v26 = vpop.f32.mrb[133].mxu0  ;;  %v9105_v39 = vadd.f32 1e-06, %v9037_v9  ;;  %v8877_v47 = vmul.f32 %v14205_v16, %v13689_v48 }
 0xe2b   : > { %v9099_v50 = vsel %vm15215_vm1, %v9006_v55, 0.0  ;;  %v9005_v15 = vmul.f32 %v14205_v16, %v14205_v16  ;;  %v8923_v7 = vsel %vm15215_vm1, %v8884_v14, 0.0  ;;  %v8883_v17 = vmul.f32 %v14207_v32, %v13632_v29 }
 0xe2c   : > { %v12409_v52 = vpop.eup %12408  ;;  %v14302_v54 = vadd.f32 %v9099_v50, %v9098_v60  ;;  %v9051_v27 = vsel %vm15215_vm1, %v9012_v36, 0.0  ;;  %12414 = vrcp.f32 %v9105_v39  ;;  %v14310_v55 = vadd.f32 %v8923_v7, %v14055_v25 }
 0xe2d   : > { %v9152_v9 = vmul.f32 %v12409_v52, %v14200_v51  ;;  %v9052_v8 = vadd.f32 %v9051_v27, %v14058_v53  ;;  %v14313_v28 = vpop.f32.mrb[134].mxu0  ;;  %v8966_v60 = vsel %vm15215_vm1, %v8877_v47, 0.0  ;;  %v9094_v50 = vsel %vm15215_vm1, %v9005_v15, 0.0 }
 0xe2e   : > { %v8918_v14 = vsel %vm15215_vm1, %v8883_v17, 0.0  ;;  %v9011_v36 = vmul.f32 %v14207_v32, %v14207_v32  ;;  %v14320_v16 = vpop.f32.mrb[135].mxu0  ;;  %v14331_v7 = vadd.f32 %v8966_v60, %v8965_v46  ;;  %v14333_v15 = vadd.f32 %v9094_v50, %v9093_v43  ;;  %v15354_v43 = vld [vmem:[#allocation47_spill] sm:$0xff] }
 0xe2f   : > { %v14323_v39 = vmul.f32 %v13796_v21, %v9152_v9  ;;  %v14326_v25 = vmul.f32 %v13914_v3, %v9152_v9  ;;  %v14329_v53 = vmul.f32 %v14114_v31, %v9152_v9  ;;  %v9108_v52 = vadd.f32 1e-06, %v9052_v8 }
 0xe30   : > { %v12411_v47 = vpop.eup %12410  ;;  %15351 = vst [vmem:[#allocation135_spill] sm:$0xff] %v14331_v7  ;;  %15352 = vst [vmem:[#allocation136_spill] sm:$0xff] %v14333_v15  ;;  %v14336_v27 = vadd.f32 %v8918_v14, %v14067_v19  ;;  %v14339_v17 = vmul.f32 0.2, %v13663_v59  ;;  %v9046_v31 = vsel %vm15215_vm1, %v9011_v36, 0.0  ;;  %v8886_v9 = vmul.f32 %v14228_v63, %v15354_v43  ;;  %v15357_v36 = vld [vmem:[#allocation106_spill] sm:$0xff] }
 0xe31   : > { %15349 = vst [vmem:[#allocation133_spill] sm:$0xff] %v14326_v25  ;;  %15350 = vst [vmem:[#allocation134_spill] sm:$0xff] %v14329_v53  ;;  %v9151_v3 = vmul.f32 %v12411_v47, %v14231_v35  ;;  %12416 = vrcp.f32 %v9108_v52  ;;  %v14345_v8 = vpop.f32.mrb[136].mxu0  ;;  %v9047_v46 = vadd.f32 %v9046_v31, %v14070_v0  ;;  %v9014_v19 = vmul.f32 %v14228_v63, %v14228_v63  ;;  %v15356_v47 = vld [vmem:[#allocation77_spill] sm:$0xff]  ;;  %v15361_v7 = vld [vmem:[#allocation108_spill] sm:$0xff] }
 0xe32   : > { %15353 = vst [vmem:[#allocation137_spill] sm:$0xff] %v14339_v17  ;;  %v14352_v60 = vpop.f32.mrb[137].mxu0  ;;  %v14355_v50 = vmul.f32 0.2, %v13665_v13  ;;  %v12413_v14 = vpop.eup %12412  ;;  %v15359_v31 = vld [vmem:[#allocation49_spill] sm:$0xff]  ;;  %v8933_v25 = vsel %vm15215_vm1, %v8886_v9, 0.0 }
 0xe33   : > { %v14358_v52 = vmul.f32 %v9151_v3, %v15356_v47  ;;  %v14361_v21 = vmul.f32 %v9151_v3, %v15357_v36  ;;  %v14364_v0 = vmul.f32 %v9151_v3, %v14127_v1  ;;  %v8885_v17 = vmul.f32 %v14235_v33, %v15359_v31  ;;  %v15360_v3 = vld [vmem:[#allocation86_spill] sm:$0xff]  ;;  %v15416_v31 = vld [vmem:[#allocation113_spill] sm:$0xff] }
 0xe34   : > { %15355 = vst [vmem:[#allocation138_spill] sm:$0xff] %v14355_v50  ;;  %v9154_v53 = vmul.f32 %v12413_v14, %v14249_v61  ;;  %v9107_v18 = vadd.f32 1e-06, %v9047_v46  ;;  %v9061_v50 = vsel %vm15215_vm1, %v9014_v19, 0.0  ;;  %v14374_v13 = vadd.f32 %v8933_v25, %v14100_v10 }
 0xe35   : > { %15358 = vst [vmem:[#allocation77_spill] sm:$0xff] %v14364_v0  ;;  %v9062_v36 = vadd.f32 %v9061_v50, %v14103_v62  ;;  %v8928_v1 = vsel %vm15215_vm1, %v8885_v17, 0.0  ;;  %v9013_v10 = vmul.f32 %v14235_v33, %v14235_v33  ;;  %v15363_v62 = vld [vmem:[#allocation53_spill] sm:$0xff]  ;;  %v14406_v50 = vmul.f32 0.2, %v13684_v30 }
 0xe36   : > { %v14379_v15 = vmul.f32 %v15360_v3, %v9154_v53  ;;  %v14382_v14 = vmul.f32 %v15361_v7, %v9154_v53  ;;  %v14385_v46 = vmul.f32 %v14161_v12, %v9154_v53  ;;  %12418 = vrcp.f32 %v9107_v18  ;;  %v12415_v9 = vpop.eup %12414  ;;  %v15367_v3 = vld [vmem:[#allocation110_spill] sm:$0xff] }
 0xe37   : > { %v9110_v19 = vadd.f32 1e-06, %v9062_v36  ;;  %v14388_v47 = vadd.f32 %v8928_v1, %v14117_v57  ;;  %v14393_v25 = vmul.f32 0.2, %v15363_v62  ;;  %v9153_v7 = vmul.f32 %v12415_v9, %v14278_v45  ;;  %15365 = vst [vmem:[#allocation108_spill] sm:$0xff] %v14406_v50  ;;  %v15366_v36 = vld [vmem:[#allocation89_spill] sm:$0xff] }
 0xe38   : > { %15362 = vst [vmem:[#allocation106_spill] sm:$0xff] %v14385_v46  ;;  %v8888_v12 = vmul.f32 %v14258_v42, %v13663_v59  ;;  %v9016_v18 = vmul.f32 %v14258_v42, %v14258_v42  ;;  %v9056_v57 = vsel %vm15215_vm1, %v9013_v10, 0.0  ;;  %v8887_v53 = vmul.f32 %v14266_v37, %v15363_v62 }
 0xe39   : > { %15364 = vst [vmem:[#allocation86_spill] sm:$0xff] %v14393_v25  ;;  %12420 = vrcp.f32 %v9110_v19  ;;  %v14409_v1 = vmul.f32 %v9153_v7, %v15366_v36  ;;  %v14412_v9 = vmul.f32 %v9153_v7, %v15367_v3  ;;  %v14415_v17 = vmul.f32 %v9153_v7, %v14171_v56  ;;  %v15372_v36 = vld [vmem:[#allocation112_spill] sm:$0xff] }
 0xe3a   : > { %v9057_v25 = vadd.f32 %v9056_v57, %v14119_v23  ;;  %v8943_v10 = vsel %vm15215_vm1, %v8888_v12, 0.0  ;;  %v9071_v46 = vsel %vm15215_vm1, %v9016_v18, 0.0  ;;  %v8938_v22 = vsel %vm15215_vm1, %v8887_v53, 0.0  ;;  %v15369_v23 = vld [vmem:[#allocation125_spill] sm:$0xff]  ;;  %v15370_v57 = vld [vmem:[#allocation55_spill] sm:$0xff] }
 0xe3b   : > { %15368 = vst [vmem:[#allocation89_spill] sm:$0xff] %v14415_v17  ;;  %v12417_v19 = vpop.eup %12416  ;;  %v9015_v50 = vmul.f32 %v14266_v37, %v14266_v37  ;;  %v14427_v56 = vadd.f32 %v8943_v10, %v14154_v24  ;;  %v9072_v7 = vadd.f32 %v9071_v46, %v15369_v23  ;;  %v14431_v12 = vadd.f32 %v8938_v22, %v14174_v44  ;;  %v15374_v46 = vld [vmem:[#allocation128_spill] sm:$0xff] }
 0xe3c   : > { %v9156_v3 = vmul.f32 %v12417_v19, %v14310_v55  ;;  %v9109_v0 = vadd.f32 1e-06, %v9057_v25  ;;  %v8890_v53 = vmul.f32 %v14285_v34, %v15370_v57  ;;  %v14447_v22 = vmul.f32 0.2, %v13689_v48 }
 0xe3d   : > { %v9066_v18 = vsel %vm15215_vm1, %v9015_v50, 0.0  ;;  %v9112_v24 = vadd.f32 1e-06, %v9072_v7  ;;  %v14450_v44 = vmul.f32 0.2, %v15370_v57  ;;  %vm9312_vm0 = vcmp.ge.f32.partialorder %v14200_v51, 0.0 }
 0xe3e   : > { %v14437_v30 = vmul.f32 %v15371_v2, %v9156_v3  ;;  %v14440_v17 = vmul.f32 %v15372_v36, %v9156_v3  ;;  %v14443_v25 = vmul.f32 %v14197_v41, %v9156_v3  ;;  %12422 = vrcp.f32 %v9109_v0  ;;  %15375 = vst [vmem:[#allocation125_spill] sm:$0xff] %v14447_v22  ;;  %v15377_v36 = vld [vmem:[#allocation57_spill] sm:$0xff]  ;;  %v15378_v2 = vld [vmem:[#allocation58_spill] sm:$0xff]  ;;  %v15427_v57 = vld [vmem:[#allocation72_spill] sm:$0xff] }
 0xe3f   : > { %v9067_v19 = vadd.f32 %v9066_v18, %v15374_v46  ;;  %15376 = vst [vmem:[#allocation97_spill] sm:$0xff] %v14450_v44  ;;  %v8953_v10 = vsel %vm15215_vm1, %v8890_v53, 0.0  ;;  %v9018_v41 = vmul.f32 %v14285_v34, %v14285_v34  ;;  %v8889_v0 = vmul.f32 %v14295_v26, %v15377_v36 }
 0xe40   : > { %15373 = vst [vmem:[#allocation110_spill] sm:$0xff] %v14443_v25  ;;  %v12419_v50 = vpop.eup %12418  ;;  %12424 = vrcp.f32 %v9112_v24  ;;  %v14461_v7 = vadd.f32 %v8953_v10, %v14189_v6  ;;  %v9017_v53 = vmul.f32 %v14295_v26, %v14295_v26  ;;  %v8892_v44 = vmul.f32 %v14313_v28, %v15378_v2 }
 0xe41   : > { %v9155_v3 = vmul.f32 %v12419_v50, %v14336_v27  ;;  %v9111_v23 = vadd.f32 1e-06, %v9067_v19  ;;  %v9081_v18 = vsel %vm15215_vm1, %v9018_v41, 0.0  ;;  %v8948_v46 = vsel %vm15215_vm1, %v8889_v0, 0.0  ;;  %v15380_v50 = vld [vmem:[#allocation114_spill] sm:$0xff]  ;;  %v15382_v41 = vld [vmem:[#allocation131_spill] sm:$0xff] }
 0xe42   : > { %v9082_v10 = vadd.f32 %v9081_v18, %v14191_v49  ;;  %v14481_v0 = vadd.f32 %v8948_v46, %v15382_v41  ;;  %v14484_v22 = vmul.f32 0.2, %v15377_v36  ;;  %v8963_v48 = vsel %vm15215_vm1, %v8892_v44, 0.0  ;;  %v15385_v49 = vld [vmem:[#allocation116_spill] sm:$0xff] }
 0xe43   : > { %v12421_v25 = vpop.eup %12420  ;;  %v14470_v38 = vmul.f32 %v9155_v3, %v15379_v4  ;;  %v14473_v24 = vmul.f32 %v9155_v3, %v15380_v50  ;;  %v14476_v6 = vmul.f32 %v9155_v3, %v14207_v32  ;;  %12426 = vrcp.f32 %v9111_v23  ;;  %v15384_v3 = vld [vmem:[#allocation104_spill] sm:$0xff] }
 0xe44   : > { %v9158_v19 = vmul.f32 %v12421_v25, %v14374_v13  ;;  %15383 = vst [vmem:[#allocation128_spill] sm:$0xff] %v14484_v22  ;;  %v9076_v50 = vsel %vm15215_vm1, %v9017_v53, 0.0  ;;  %v9020_v32 = vmul.f32 %v14313_v28, %v14313_v28  ;;  %v9114_v46 = vadd.f32 1e-06, %v9082_v10  ;;  %v15388_v41 = vld [vmem:[#allocation132_spill] sm:$0xff] }
 0xe45   : > { %15381 = vst [vmem:[#allocation112_spill] sm:$0xff] %v14476_v6  ;;  %v9077_v22 = vadd.f32 %v9076_v50, %v15388_v41  ;;  %v14503_v4 = vadd.f32 %v8963_v48, %v14238_v58  ;;  %v14507_v53 = vmul.f32 0.2, %v15378_v2  ;;  %v9019_v48 = vmul.f32 %v14320_v16, %v14320_v16 }
 0xe46   : > { %v14493_v25 = vmul.f32 %v15384_v3, %v9158_v19  ;;  %v14496_v23 = vmul.f32 %v15385_v49, %v9158_v19  ;;  %v14499_v18 = vmul.f32 %v14228_v63, %v9158_v19  ;;  %v9091_v44 = vsel %vm15215_vm1, %v9020_v32, 0.0  ;;  %v15390_v63 = vld [vmem:[#allocation59_spill] sm:$0xff]  ;;  %v15393_v3 = vld [vmem:[#allocation105_spill] sm:$0xff] }
 0xe47   : > { %15389 = vst [vmem:[#allocation100_spill] sm:$0xff] %v14507_v53  ;;  %12428 = vrcp.f32 %v9114_v46  ;;  %v9092_v49 = vadd.f32 %v9091_v44, %v14246_v20  ;;  %v8891_v19 = vmul.f32 %v14320_v16, %v15390_v63  ;;  %v9113_v50 = vadd.f32 1e-06, %v9077_v22  ;;  %v15392_v53 = vld [vmem:[#allocation60_spill] sm:$0xff]  ;;  %v15394_v22 = vld [vmem:[#allocation118_spill] sm:$0xff] }
 0xe48   : > { %15386 = vst [vmem:[#allocation57_spill] sm:$0xff] %v14496_v23  ;;  %15387 = vst [vmem:[#allocation58_spill] sm:$0xff] %v14499_v18  ;;  %v12423_v6 = vpop.eup %12422  ;;  %v14518_v58 = vmul.f32 0.2, %v15390_v63  ;;  %v8894_v46 = vmul.f32 %v14345_v8, %v15392_v53  ;;  %v9022_v20 = vmul.f32 %v14345_v8, %v14345_v8  ;;  %vm9311_vm15 = vcmp.ge.f32.partialorder %v14231_v35, 0.0 }
 0xe49   : > { %v9157_v10 = vmul.f32 %v12423_v6, %v14388_v47  ;;  %v9116_v32 = vadd.f32 1e-06, %v9092_v49  ;;  %v8958_v41 = vsel %vm15215_vm1, %v8891_v19, 0.0  ;;  %12430 = vrcp.f32 %v9113_v50 }
 0xe4a   : > { %15391 = vst [vmem:[#allocation114_spill] sm:$0xff] %v14518_v58  ;;  %v12425_v44 = vpop.eup %12424  ;;  %v14536_v19 = vadd.f32 %v8958_v41, %v14272_v40  ;;  %v9086_v58 = vsel %vm15215_vm1, %v9019_v48, 0.0  ;;  %vm9314_vm2 = vcmp.ge.f32.partialorder %v14249_v61, 0.0  ;;  %vm9313_vm3 = vcmp.ge.f32.partialorder %v14278_v45, 0.0  ;;  %v15509_v61 = vld [vmem:[#allocation110_spill] sm:$0xff] }
 0xe4b   : > { %v14526_v18 = vmul.f32 %v9157_v10, %v15393_v3  ;;  %v14529_v6 = vmul.f32 %v9157_v10, %v15394_v22  ;;  %v14532_v43 = vmul.f32 %v9157_v10, %v14235_v33  ;;  %v9160_v49 = vmul.f32 %v12425_v44, %v14427_v56  ;;  %v15396_v10 = vld [vmem:[#allocation107_spill] sm:$0xff]  ;;  %v15397_v44 = vld [vmem:[#allocation120_spill] sm:$0xff] }
 0xe4c   : > { %12432 = vrcp.f32 %v9116_v32  ;;  %v9087_v23 = vadd.f32 %v9086_v58, %v14275_v5  ;;  %v8973_v22 = vsel %vm15215_vm1, %v8894_v46, 0.0  ;;  %v9101_v33 = vsel %vm15215_vm1, %v9022_v20, 0.0  ;;  %v15400_v20 = vld [vmem:[#allocation109_spill] sm:$0xff]  ;;  %v15506_v45 = vld [vmem:[#allocation112_spill] sm:$0xff] }
 0xe4d   : > { %15395 = vst [vmem:[#allocation131_spill] sm:$0xff] %v14532_v43  ;;  %v12427_v29 = vpop.eup %12426  ;;  %v14545_v50 = vmul.f32 %v15396_v10, %v9160_v49  ;;  %v14548_v32 = vmul.f32 %v15397_v44, %v9160_v49  ;;  %v14551_v40 = vmul.f32 %v14258_v42, %v9160_v49  ;;  %v14556_v5 = vadd.f32 %v8973_v22, %v14289_v11  ;;  %v15401_v44 = vld [vmem:[#allocation122_spill] sm:$0xff]  ;;  %v15403_v11 = vld [vmem:[#allocation61_spill] sm:$0xff] }
 0xe4e   : > { %v9159_v48 = vmul.f32 %v12427_v29, %v14431_v12  ;;  %v9115_v41 = vadd.f32 1e-06, %v9087_v23  ;;  %v9102_v58 = vadd.f32 %v9101_v33, %v14302_v54  ;;  %v8893_v23 = vmul.f32 %v14352_v60, %v15403_v11  ;;  %v15404_v33 = vld [vmem:[#allocation16_spill] sm:$0xff]  ;;  %v15414_v43 = vld [vmem:[#allocation133_spill] sm:$0xff] }
 0xe4f   : > { %15398 = vst [vmem:[#allocation104_spill] sm:$0xff] %v14548_v32  ;;  %15399 = vst [vmem:[#allocation116_spill] sm:$0xff] %v14551_v40  ;;  %v9021_v22 = vmul.f32 %v14352_v60, %v14352_v60  ;;  %v15407_v40 = vld [vmem:[#allocation135_spill] sm:$0xff]  ;;  %vm9316_vm4 = vcmp.ge.f32.partialorder %v14310_v55, 0.0  ;;  %vm9315_vm5 = vcmp.ge.f32.partialorder %v14336_v27, 0.0  ;;  %vm9318_vm6 = vcmp.ge.f32.partialorder %v14374_v13, 0.0 }
 0xe50   : > { %v14562_v10 = vmul.f32 %v9159_v48, %v15400_v20  ;;  %v14565_v3 = vmul.f32 %v9159_v48, %v15401_v44  ;;  %v14568_v42 = vmul.f32 %v9159_v48, %v14266_v37  ;;  %12434 = vrcp.f32 %v9115_v41  ;;  %v15405_v37 = vld [vmem:[#allocation14_spill] sm:$0xff]  ;;  %v14903_v27 = vld [vmem:[%s15059_s13 + $0x8] sm:$0xff] }
 0xe51   : > { %v9118_v29 = vadd.f32 1e-06, %v9102_v58  ;;  %v12429_v54 = vpop.eup %12428  ;;  %v9215_v20 = vsub.f32 %v15404_v33, %v14358_v52  ;;  %v9216_v48 = vsub.f32 %v15405_v37, %v14323_v39  ;;  %v8968_v41 = vsel %vm15215_vm1, %v8893_v23, 0.0  ;;  %v15406_v58 = vld [vmem:[#allocation28_spill] sm:$0xff]  ;;  %v15410_v23 = vld [vmem:[#allocation123_spill] sm:$0xff] }
 0xe52   : > { %15402 = vst [vmem:[#allocation132_spill] sm:$0xff] %v14568_v42  ;;  %v9162_v44 = vmul.f32 %v12429_v54, %v14461_v7  ;;  %v9231_v46 = vsub.f32 %v15406_v58, %v14361_v21  ;;  %v14586_v59 = vadd.f32 %v8968_v41, %v15407_v40  ;;  %v9096_v49 = vsel %vm15215_vm1, %v9021_v22, 0.0  ;;  %v15413_v40 = vld [vmem:[#allocation136_spill] sm:$0xff] }
 0xe53   : > { %12436 = vrcp.f32 %v9118_v29  ;;  %v9359_v52 = vsel %vm9311_vm15, %v15404_v33, %v9215_v20  ;;  %v9360_v39 = vsel %vm9312_vm0, %v15405_v37, %v9216_v48  ;;  %v12431_v54 = vpop.eup %12430  ;;  %v15408_v29 = vld [vmem:[#allocation111_spill] sm:$0xff]  ;;  %v9097_v22 = vadd.f32 %v9096_v49, %v15413_v40  ;;  %v15417_v40 = vld [vmem:[#allocation124_spill] sm:$0xff]  ;;  %v15421_v48 = vld [vmem:[#allocation126_spill] sm:$0xff] }
 0xe54   : > { %v14596_v42 = vmul.f32 %v15408_v29, %v9162_v44  ;;  %v14599_v62 = vmul.f32 %v15410_v23, %v9162_v44  ;;  %v14602_v21 = vmul.f32 %v14285_v34, %v9162_v44  ;;  %v9161_v33 = vmul.f32 %v12431_v54, %v14481_v0  ;;  %v15415_v34 = vld [vmem:[#allocation26_spill] sm:$0xff]  ;;  %v15420_v54 = vld [vmem:[#allocation115_spill] sm:$0xff] }
 0xe55   : > { %v9407_v20 = vmul.f32 0.8, %v9359_v52  ;;  %v9408_v37 = vmul.f32 0.8, %v9360_v39  ;;  %v9117_v23 = vadd.f32 1e-06, %v9097_v22  ;;  %v9232_v44 = vsub.f32 %v15415_v34, %v15414_v43 }
 0xe56   : > { %15409 = vst [vmem:[#allocation59_spill] sm:$0xff] %v14596_v42  ;;  %15411 = vst [vmem:[#allocation60_spill] sm:$0xff] %v14599_v62  ;;  %v12433_v41 = vpop.eup %12432  ;;  %v14614_v49 = vmul.f32 %v9161_v33, %v15416_v31  ;;  %v14617_v62 = vmul.f32 %v9161_v33, %v15417_v40  ;;  %v14620_v42 = vmul.f32 %v9161_v33, %v14295_v26  ;;  %v15419_v52 = vld [vmem:[#allocation63_spill] sm:$0xff]  ;;  %v15422_v31 = vld [vmem:[#allocation62_spill] sm:$0xff]  ;;  %vm9317_vm7 = vcmp.ge.f32.partialorder %v14388_v47, 0.0 }
 0xe57   : > { %15412 = vst [vmem:[#allocation105_spill] sm:$0xff] %v14602_v21  ;;  %v9164_v29 = vmul.f32 %v12433_v41, %v14503_v4  ;;  %v9455_v39 = vadd.f32 %v9407_v20, %v15419_v52  ;;  %12438 = vrcp.f32 %v9117_v23  ;;  %v9456_v40 = vadd.f32 %v9408_v37, %v15422_v31  ;;  %v15423_v37 = vld [vmem:[#allocation20_spill] sm:$0xff]  ;;  %v15426_v43 = vld [vmem:[#allocation75_spill] sm:$0xff] }
 0xe58   : > { %15418 = vst [vmem:[#allocation118_spill] sm:$0xff] %v14620_v42  ;;  %v9375_v26 = vsel %vm9311_vm15, %v15406_v58, %v9231_v46  ;;  %v9376_v33 = vsel %vm9312_vm0, %v15415_v34, %v9232_v44  ;;  %v9217_v23 = vsub.f32 %v15423_v37, %v14409_v1  ;;  %v15424_v58 = vld [vmem:[#allocation18_spill] sm:$0xff]  ;;  %v15425_v34 = vld [vmem:[#allocation32_spill] sm:$0xff]  ;;  %vm9319_vm8 = vcmp.ge.f32.partialorder %v14431_v12, 0.0 }
 0xe59   : > { %v14624_v32 = vmul.f32 %v15420_v54, %v9164_v29  ;;  %v14627_v41 = vmul.f32 %v15421_v48, %v9164_v29  ;;  %v14630_v22 = vmul.f32 %v14313_v28, %v9164_v29  ;;  %v9423_v48 = vmul.f32 0.8, %v9375_v26  ;;  %v15428_v1 = vld [vmem:[#allocation30_spill] sm:$0xff]  ;;  %v15438_v28 = vld [vmem:[#allocation36_spill] sm:$0xff] }
 0xe5a   : > { %v12435_v20 = vpop.eup %12434  ;;  %v9424_v29 = vmul.f32 0.8, %v9376_v33  ;;  %v12130_v46 = vpack.c.bf16 %v9456_v40, %v9455_v39  ;;  %v9218_v54 = vsub.f32 %v15424_v58, %v14379_v15  ;;  %v9233_v44 = vsub.f32 %v15425_v34, %v14412_v9  ;;  %v15430_v40 = vld [vmem:[#allocation127_spill] sm:$0xff]  ;;  %v15529_v12 = vld [vmem:[#allocation102_spill] sm:$0xff] }
 0xe5b   : > { %v9163_v52 = vmul.f32 %v12435_v20, %v14536_v19  ;;  %v9471_v21 = vadd.f32 %v9423_v48, %v15426_v43  ;;  %v9361_v26 = vsel %vm9313_vm3, %v15423_v37, %v9217_v23  ;;  %v9234_v33 = vsub.f32 %v15428_v1, %v14382_v14  ;;  %v15429_v20 = vld [vmem:[#allocation117_spill] sm:$0xff]  ;;  %v15431_v23 = vld [vmem:[#allocation119_spill] sm:$0xff] }
 0xe5c   : > { %v9472_v42 = vadd.f32 %v9424_v29, %v15427_v57  ;;  %12131 = vmatprep.subr.bf16.mxu1 %v12130_v46  ;;  %v9362_v48 = vsel %vm9314_vm2, %v15424_v58, %v9218_v54  ;;  %v9409_v29 = vmul.f32 0.8, %v9361_v26  ;;  %v9377_v14 = vsel %vm9313_vm3, %v15425_v34, %v9233_v44 }
 0xe5d   : > { %v12437_v31 = vpop.eup %12436  ;;  %v14660_v39 = vmul.f32 %v9163_v52, %v15429_v20  ;;  %v14663_v15 = vmul.f32 %v9163_v52, %v15430_v40  ;;  %v14666_v9 = vmul.f32 %v9163_v52, %v14320_v16  ;;  %12133 = vmatpush3.bf16.msra.mxu1 %v12130_v46  ;;  %v15432_v52 = vld [vmem:[#allocation129_spill] sm:$0xff]  ;;  %v15433_v46 = vld [vmem:[#allocation66_spill] sm:$0xff]  ;;  %v9378_v54 = vsel %vm9314_vm2, %v15428_v1, %v9234_v33 }
 0xe5e   : > { %v9166_v43 = vmul.f32 %v12437_v31, %v14556_v5  ;;  %v12162_v57 = vpack.c.bf16 %v9472_v42, %v9471_v21  ;;  %v9410_v21 = vmul.f32 0.8, %v9362_v48  ;;  %v9457_v58 = vadd.f32 %v9409_v29, %v15433_v46  ;;  %v15435_v40 = vld [vmem:[#allocation22_spill] sm:$0xff]  ;;  %v15436_v48 = vld [vmem:[#allocation67_spill] sm:$0xff]  ;;  %v15437_v29 = vld [vmem:[#allocation80_spill] sm:$0xff] }
 0xe5f   : > { %v9259_v37 = vsub.f32 %v15390_v63, %v14666_v9  ;;  %v9425_v34 = vmul.f32 0.8, %v9377_v14  ;;  %v9426_v26 = vmul.f32 0.8, %v9378_v54  ;;  %v9235_v1 = vsub.f32 %v15438_v28, %v14473_v24  ;;  %v15439_v33 = vld [vmem:[#allocation34_spill] sm:$0xff] }
 0xe60   : > { %v14678_v16 = vmul.f32 %v15431_v23, %v9166_v43  ;;  %v14681_v31 = vmul.f32 %v15432_v52, %v9166_v43  ;;  %v14684_v42 = vmul.f32 %v14345_v8, %v9166_v43  ;;  %12163 = vmatprep.subr.bf16.mxu0 %v12162_v57  ;;  %v15434_v8 = vld [vmem:[#allocation24_spill] sm:$0xff]  ;;  %v9220_v43 = vsub.f32 %v15435_v40, %v14437_v30  ;;  %v15440_v54 = vld [vmem:[#allocation78_spill] sm:$0xff] }
 0xe61   : > { %12165 = vmatpush3.bf16.msra.mxu0 %v12162_v57  ;;  %v9219_v20 = vsub.f32 %v15434_v8, %v14470_v38  ;;  %v12439_v23 = vpop.eup %12438  ;;  %v9458_v52 = vadd.f32 %v9410_v21, %v15436_v48  ;;  %v9473_v46 = vadd.f32 %v9425_v34, %v15437_v29  ;;  %v9236_v14 = vsub.f32 %v15439_v33, %v14440_v17 }
 0xe62   : > { %v9262_v44 = vsub.f32 %v15392_v53, %v14684_v42  ;;  %v9165_v57 = vmul.f32 %v12439_v23, %v14586_v59  ;;  %v9474_v38 = vadd.f32 %v9426_v26, %v15440_v54  ;;  %v9364_v21 = vsel %vm9316_vm4, %v15435_v40, %v9220_v43  ;;  %v15441_v23 = vld [vmem:[#allocation121_spill] sm:$0xff]  ;;  %v15442_v26 = vld [vmem:[#allocation130_spill] sm:$0xff] }
 0xe63   : > { %v9363_v30 = vsel %vm9315_vm5, %v15434_v8, %v9219_v20  ;;  %vm9320_vm9 = vcmp.ge.f32.partialorder %v14427_v56, 0.0  ;;  %v12134_v24 = vpack.c.bf16 %v9458_v52, %v9457_v58  ;;  %v9412_v48 = vmul.f32 0.8, %v9364_v21  ;;  %v15443_v40 = vld [vmem:[#allocation73_spill] sm:$0xff] }
 0xe64   : > { %v9411_v34 = vmul.f32 0.8, %v9363_v30  ;;  %v9379_v17 = vsel %vm9315_vm5, %v15438_v28, %v9235_v1  ;;  %v14718_v29 = vmul.f32 %v9165_v57, %v15441_v23  ;;  %v14721_v54 = vmul.f32 %v9165_v57, %v15442_v26  ;;  %v15444_v58 = vld [vmem:[#allocation69_spill] sm:$0xff]  ;;  %v15450_v26 = vld [vmem:[#allocation38_spill] sm:$0xff] }
 0xe65   : > { %v14724_v8 = vmul.f32 %v9165_v57, %v14352_v60  ;;  %v12166_v20 = vpack.c.bf16 %v9474_v38, %v9473_v46  ;;  %12135 = vmatprep.subr.bf16.mxu1 %v12134_v24  ;;  %v9460_v52 = vadd.f32 %v9412_v48, %v15444_v58  ;;  %v9380_v30 = vsel %vm9316_vm4, %v15439_v33, %v9236_v14  ;;  %v15445_v60 = vld [vmem:[#allocation17_spill] sm:$0xff]  ;;  %v15446_v46 = vld [vmem:[#allocation15_spill] sm:$0xff]  ;;  %v15448_v33 = vld [vmem:[#allocation40_spill] sm:$0xff] }
 0xe66   : > { %v9459_v43 = vadd.f32 %v9411_v34, %v15443_v40  ;;  %v9427_v28 = vmul.f32 0.8, %v9379_v17  ;;  %12137 = vmatpush3.bf16.msra.mxu1 %v12134_v24  ;;  %v9428_v21 = vmul.f32 0.8, %v9380_v30  ;;  %v9221_v57 = vsub.f32 %v15445_v60, %v14526_v18  ;;  %v15447_v48 = vld [vmem:[#allocation83_spill] sm:$0xff]  ;;  %v15449_v17 = vld [vmem:[#allocation57_spill] sm:$0xff] }
 0xe67   : > { %v9261_v1 = vsub.f32 %v15403_v11, %v14724_v8  ;;  %12167 = vmatprep.subr.bf16.mxu0 %v12166_v20  ;;  %v9222_v38 = vsub.f32 %v15446_v46, %v14493_v25  ;;  %vm9321_vm10 = vcmp.ge.f32.partialorder %v14481_v0, 0.0  ;;  %v9237_v14 = vsub.f32 %v15448_v33, %v14529_v6  ;;  %v15451_v24 = vld [vmem:[#allocation84_spill] sm:$0xff]  ;;  %v9506_v56 = vld [vmem:[%s15059_s13 + $0x18] sm:$0xff]  ;;  %v12440_v8 = vld [vmem:[%s15059_s13] sm:$0xff] }
 0xe68   : > { %12169 = vmatpush3.bf16.msra.mxu0 %v12166_v20  ;;  %v12138_v34 = vpack.c.bf16 %v9460_v52, %v9459_v43  ;;  %v9475_v23 = vadd.f32 %v9427_v28, %v15447_v48  ;;  %v9238_v40 = vsub.f32 %v15450_v26, %v15449_v17  ;;  %vm9322_vm11 = vcmp.ge.f32.partialorder %v14461_v7, 0.0  ;;  %v15452_v20 = vld [vmem:[#allocation21_spill] sm:$0xff]  ;;  %v15454_v48 = vld [vmem:[#allocation64_spill] sm:$0xff] }
 0xe69   : > { %v9476_v58 = vadd.f32 %v9428_v21, %v15451_v24  ;;  %v9365_v25 = vsel %vm9317_vm7, %v15445_v60, %v9221_v57  ;;  %v9366_v18 = vsel %vm9318_vm6, %v15446_v46, %v9222_v38  ;;  %v9223_v43 = vsub.f32 %v15452_v20, %v14562_v10  ;;  %v15453_v46 = vld [vmem:[#allocation19_spill] sm:$0xff]  ;;  %v15455_v17 = vld [vmem:[#allocation65_spill] sm:$0xff] }
 0xe6a   : > { %12139 = vmatprep.subr.bf16.mxu1 %v12138_v34  ;;  %v9413_v6 = vmul.f32 0.8, %v9365_v25  ;;  %v9414_v52 = vmul.f32 0.8, %v9366_v18  ;;  %v9381_v30 = vsel %vm9317_vm7, %v15448_v33, %v9237_v14  ;;  %v9382_v28 = vsel %vm9318_vm6, %v15450_v26, %v9238_v40  ;;  %v15456_v33 = vld [vmem:[#allocation44_spill] sm:$0xff]  ;;  %v15458_v26 = vld [vmem:[#allocation87_spill] sm:$0xff] }
 0xe6b   : > { %v12170_v21 = vpack.c.bf16 %v9476_v58, %v9475_v23  ;;  %12141 = vmatpush3.bf16.msra.mxu1 %v12138_v34  ;;  %v9429_v60 = vmul.f32 0.8, %v9381_v30  ;;  %v9430_v57 = vmul.f32 0.8, %v9382_v28  ;;  %v9224_v38 = vsub.f32 %v15453_v46, %v14545_v50  ;;  %v15457_v34 = vld [vmem:[#allocation90_spill] sm:$0xff]  ;;  %v15532_v0 = vld [vmem:[#allocation105_spill] sm:$0xff] }
 0xe6c   : > { %v9461_v10 = vadd.f32 %v9413_v6, %v15454_v48  ;;  %v9462_v24 = vadd.f32 %v9414_v52, %v15455_v17  ;;  %v9367_v25 = vsel %vm9319_vm8, %v15452_v20, %v9223_v43  ;;  %v9239_v14 = vsub.f32 %v15456_v33, %v14565_v3  ;;  %v15459_v43 = vld [vmem:[#allocation104_spill] sm:$0xff]  ;;  %v15460_v6 = vld [vmem:[#allocation42_spill] sm:$0xff] }
 0xe6d   : > { %vm9324_vm12 = vcmp.ge.f32.partialorder %v14503_v4, 0.0  ;;  %vm9323_vm13 = vcmp.ge.f32.partialorder %v14536_v19, 0.0  ;;  %12171 = vmatprep.subr.bf16.mxu0 %v12170_v21  ;;  %v9477_v23 = vadd.f32 %v9429_v60, %v15457_v34  ;;  %v9478_v50 = vadd.f32 %v9430_v57, %v15458_v26  ;;  %v15461_v28 = vld [vmem:[#allocation70_spill] sm:$0xff]  ;;  %v15462_v57 = vld [vmem:[#allocation25_spill] sm:$0xff]  ;;  %v15466_v34 = vld [vmem:[#allocation48_spill] sm:$0xff] }
 0xe6e   : > { %v9368_v40 = vsel %vm9320_vm9, %v15453_v46, %v9224_v38  ;;  %v9415_v58 = vmul.f32 0.8, %v9367_v25  ;;  %12173 = vmatpush3.bf16.msra.mxu0 %v12170_v21  ;;  %v12142_v18 = vpack.c.bf16 %v9462_v24, %v9461_v10  ;;  %v9240_v3 = vsub.f32 %v15460_v6, %v15459_v43  ;;  %v15463_v46 = vld [vmem:[#allocation68_spill] sm:$0xff]  ;;  %v15464_v10 = vld [vmem:[#allocation59_spill] sm:$0xff] }
 0xe6f   : > { %v9416_v20 = vmul.f32 0.8, %v9368_v40  ;;  %v9383_v52 = vsel %vm9319_vm8, %v15456_v33, %v9239_v14  ;;  %v12174_v30 = vpack.c.bf16 %v9478_v50, %v9477_v23  ;;  %v9225_v17 = vsub.f32 %v15462_v57, %v14614_v49  ;;  %v15465_v24 = vld [vmem:[#allocation23_spill] sm:$0xff]  ;;  %v15468_v50 = vld [vmem:[#allocation60_spill] sm:$0xff]  ;;  %v15469_v40 = vld [vmem:[#allocation46_spill] sm:$0xff] }
 0xe70   : > { %v9463_v60 = vadd.f32 %v9415_v58, %v15461_v28  ;;  %v9431_v48 = vmul.f32 0.8, %v9383_v52  ;;  %12143 = vmatprep.subr.bf16.mxu1 %v12142_v18  ;;  %v9384_v21 = vsel %vm9320_vm9, %v15460_v6, %v9240_v3  ;;  %v9226_v25 = vsub.f32 %v15465_v24, %v15464_v10  ;;  %v15467_v23 = vld [vmem:[#allocation95_spill] sm:$0xff]  ;;  %v15470_v6 = vld [vmem:[#allocation92_spill] sm:$0xff] }
 0xe71   : > { %v9464_v38 = vadd.f32 %v9416_v20, %v15463_v46  ;;  %v9241_v33 = vsub.f32 %v15466_v34, %v14617_v62  ;;  %vm9325_vm14 = vcmp.ge.f32.partialorder %v14586_v59, 0.0  ;;  %12175 = vmatprep.subr.bf16.mxu0 %v12174_v30  ;;  %12145 = vmatpush3.bf16.msra.mxu1 %v12142_v18  ;;  %v9432_v14 = vmul.f32 0.8, %v9384_v21 }
 0xe72   : > { %v9479_v49 = vadd.f32 %v9431_v48, %v15467_v23  ;;  %v9369_v26 = vsel %vm9321_vm10, %v15462_v57, %v9225_v17  ;;  %v9242_v58 = vsub.f32 %v15469_v40, %v15468_v50  ;;  %12177 = vmatpush3.bf16.msra.mxu0 %v12174_v30  ;;  %v9370_v62 = vsel %vm9322_vm11, %v15465_v24, %v9226_v25  ;;  %v15471_v30 = vld [vmem:[#allocation74_spill] sm:$0xff]  ;;  %v15472_v17 = vld [vmem:[#allocation29_spill] sm:$0xff]  ;;  %v15474_v24 = vld [vmem:[#allocation71_spill] sm:$0xff] }
 0xe73   : > { %v12146_v20 = vpack.c.bf16 %v9464_v38, %v9463_v60  ;;  %v9417_v43 = vmul.f32 0.8, %v9369_v26  ;;  %v9385_v18 = vsel %vm9321_vm10, %v15466_v34, %v9241_v33  ;;  %v9480_v3 = vadd.f32 %v9432_v14, %v15470_v6  ;;  %v15473_v38 = vld [vmem:[#allocation27_spill] sm:$0xff]  ;;  %v15475_v34 = vld [vmem:[#allocation101_spill] sm:$0xff]  ;;  %v15476_v14 = vld [vmem:[#allocation52_spill] sm:$0xff] }
 0xe74   : > { %v9418_v52 = vmul.f32 0.8, %v9370_v62  ;;  %v9386_v28 = vsel %vm9322_vm11, %v15469_v40, %v9242_v58  ;;  %v9433_v48 = vmul.f32 0.8, %v9385_v18  ;;  %v9227_v46 = vsub.f32 %v15472_v17, %v14660_v39  ;;  %v15477_v26 = vld [vmem:[#allocation98_spill] sm:$0xff] }
 0xe75   : > { %12147 = vmatprep.subr.bf16.mxu1 %v12146_v20  ;;  %v9465_v60 = vadd.f32 %v9417_v43, %v15471_v30  ;;  %v9434_v57 = vmul.f32 0.8, %v9386_v28  ;;  %v9228_v21 = vsub.f32 %v15473_v38, %v14624_v32  ;;  %v12178_v10 = vpack.c.bf16 %v9480_v3, %v9479_v49  ;;  %v15478_v32 = vld [vmem:[#allocation50_spill] sm:$0xff]  ;;  %v15479_v3 = vld [vmem:[#allocation33_spill] sm:$0xff] }
 0xe76   : > { %12149 = vmatpush3.bf16.msra.mxu1 %v12146_v20  ;;  %v9466_v25 = vadd.f32 %v9418_v52, %v15474_v24  ;;  %v9481_v33 = vadd.f32 %v9433_v48, %v15475_v34  ;;  %v9243_v23 = vsub.f32 %v15476_v14, %v14663_v15  ;;  %v9371_v40 = vsel %vm9323_vm13, %v15472_v17, %v9227_v46  ;;  %v15481_v48 = vld [vmem:[#allocation76_spill] sm:$0xff]  ;;  %v15483_v46 = vld [vmem:[#allocation138_spill] sm:$0xff] }
 0xe77   : > { %v9482_v50 = vadd.f32 %v9434_v57, %v15477_v26  ;;  %v9372_v39 = vsel %vm9324_vm12, %v15473_v38, %v9228_v21  ;;  %v9244_v49 = vsub.f32 %v15478_v32, %v14627_v41  ;;  %12179 = vmatprep.subr.bf16.mxu0 %v12178_v10  ;;  %v9419_v20 = vmul.f32 0.8, %v9371_v40  ;;  %v15480_v41 = vld [vmem:[#allocation79_spill] sm:$0xff]  ;;  %v15487_v40 = vld [vmem:[#allocation37_spill] sm:$0xff] }
 0xe78   : > { %v12150_v58 = vpack.c.bf16 %v9466_v25, %v9465_v60  ;;  %v9420_v62 = vmul.f32 0.8, %v9372_v39  ;;  %v9387_v15 = vsel %vm9323_vm13, %v15476_v14, %v9243_v23  ;;  %12181 = vmatpush3.bf16.msra.mxu0 %v12178_v10  ;;  %v9229_v52 = vsub.f32 %v15479_v3, %v14718_v29  ;;  %v15482_v57 = vld [vmem:[#allocation31_spill] sm:$0xff]  ;;  %v15484_v29 = vld [vmem:[#allocation56_spill] sm:$0xff]  ;;  %v15486_v23 = vld [vmem:[#allocation54_spill] sm:$0xff] }
 0xe79   : > { %v12182_v43 = vpack.c.bf16 %v9482_v50, %v9481_v33  ;;  %v9388_v18 = vsel %vm9324_vm12, %v15478_v32, %v9244_v49  ;;  %v9435_v6 = vmul.f32 0.8, %v9387_v15  ;;  %v9467_v28 = vadd.f32 %v9419_v20, %v15480_v41  ;;  %v15485_v25 = vld [vmem:[#allocation103_spill] sm:$0xff]  ;;  %v15488_v39 = vld [vmem:[#allocation77_spill] sm:$0xff] }
 0xe7a   : > { %12151 = vmatprep.subr.bf16.mxu1 %v12150_v58  ;;  %v9468_v30 = vadd.f32 %v9420_v62, %v15481_v48  ;;  %v9436_v60 = vmul.f32 0.8, %v9388_v18  ;;  %v9230_v17 = vsub.f32 %v15482_v57, %v14678_v16  ;;  %vm9326_vm1 = vcmp.ge.f32.partialorder %v14556_v5, 0.0  ;;  %v15491_v15 = vld [vmem:[#allocation35_spill] sm:$0xff]  ;;  %v15495_v48 = vld [vmem:[#allocation125_spill] sm:$0xff] }
 0xe7b   : > { %12183 = vmatprep.subr.bf16.mxu0 %v12182_v43  ;;  %12153 = vmatpush3.bf16.msra.mxu1 %v12150_v58  ;;  %v9483_v38 = vadd.f32 %v9435_v6, %v15483_v46  ;;  %v9373_v21 = vsel %vm9325_vm14, %v15479_v3, %v9229_v52  ;;  %v9245_v10 = vsub.f32 %v15484_v29, %v14721_v54  ;;  %v15490_v58 = vld [vmem:[#allocation81_spill] sm:$0xff]  ;;  %v15494_v6 = vld [vmem:[#allocation82_spill] sm:$0xff]  ;;  %v15499_v46 = vld [vmem:[#allocation39_spill] sm:$0xff] }
 0xe7c   : > { %v12154_v24 = vpack.c.bf16 %v9468_v30, %v9467_v28  ;;  %v9484_v34 = vadd.f32 %v9436_v60, %v15485_v25  ;;  %v9374_v16 = vsel %vm9326_vm1, %v15482_v57, %v9230_v17  ;;  %v9421_v33 = vmul.f32 0.8, %v9373_v21  ;;  %12185 = vmatpush3.bf16.msra.mxu0 %v12182_v43  ;;  %v15492_v43 = vld [vmem:[#allocation134_spill] sm:$0xff]  ;;  %v15496_v60 = vld [vmem:[#allocation41_spill] sm:$0xff] }
 0xe7d   : > { %v9422_v14 = vmul.f32 0.8, %v9374_v16  ;;  %v9246_v26 = vsub.f32 %v15486_v23, %v14681_v31  ;;  %v9389_v50 = vsel %vm9325_vm14, %v15484_v29, %v9245_v10  ;;  %v15489_v54 = vsub.f32 %v15487_v40, %v15488_v39  ;;  %v15497_v57 = vld [vmem:[#allocation89_spill] sm:$0xff] }
 0xe7e   : > { %12155 = vmatprep.subr.bf16.mxu1 %v12154_v24  ;;  %v12186_v49 = vpack.c.bf16 %v9484_v34, %v9483_v38  ;;  %v9469_v20 = vadd.f32 %v9421_v33, %v15490_v58  ;;  %v9437_v62 = vmul.f32 0.8, %v9389_v50  ;;  %v15493_v18 = vsub.f32 %v15491_v15, %v15492_v43  ;;  %v15500_v38 = vld [vmem:[#allocation106_spill] sm:$0xff]  ;;  %v15503_v34 = vld [vmem:[#allocation85_spill] sm:$0xff] }
 0xe7f   : > { %v9391_v32 = vsel %vm9311_vm15, %v15487_v40, %v15489_v54  ;;  %12157 = vmatpush3.bf16.msra.mxu1 %v12154_v24  ;;  %v9470_v3 = vadd.f32 %v9422_v14, %v15494_v6  ;;  %v9390_v35 = vsel %vm9326_vm1, %v15486_v23, %v9246_v26  ;;  %v15498_v17 = vsub.f32 %v15496_v60, %v15497_v57  ;;  %v15502_v24 = vld [vmem:[#allocation88_spill] sm:$0xff]  ;;  %v15505_v50 = vld [vmem:[#allocation45_spill] sm:$0xff]  ;;  %v15508_v54 = vld [vmem:[#allocation43_spill] sm:$0xff] }
 0xe80   : > { %v9392_v31 = vsel %vm9312_vm0, %v15491_v15, %v15493_v18  ;;  %v9439_v52 = vmul.f32 0.8, %v9391_v32  ;;  %12187 = vmatprep.subr.bf16.mxu0 %v12186_v49  ;;  %v9438_v28 = vmul.f32 0.8, %v9390_v35  ;;  %v9485_v30 = vadd.f32 %v9437_v62, %v15495_v48  ;;  %v15504_v14 = vld [vmem:[#allocation108_spill] sm:$0xff]  ;;  %v15514_v35 = vld [vmem:[#allocation131_spill] sm:$0xff] }
 0xe81   : > { %v9440_v41 = vmul.f32 0.8, %v9392_v31  ;;  %v9393_v51 = vsel %vm9313_vm3, %v15496_v60, %v15498_v17  ;;  %v15501_v21 = vsub.f32 %v15499_v46, %v15500_v38  ;;  %12189 = vmatpush3.bf16.msra.mxu0 %v12186_v49  ;;  %v12158_v10 = vpack.c.bf16 %v9470_v3, %v9469_v20  ;;  %v15511_v20 = vld [vmem:[#allocation93_spill] sm:$0xff]  ;;  %v15512_v31 = vld [vmem:[#allocation91_spill] sm:$0xff]  ;;  %v14921_v60 = vld [vmem:[%s15059_s13 + $0x10] sm:$0xff] }
 0xe82   : > { %v9487_v25 = vadd.f32 %v9439_v52, %v15502_v24  ;;  %v9441_v33 = vmul.f32 0.8, %v9393_v51  ;;  %v9486_v23 = vadd.f32 %v9438_v28, %v15504_v14  ;;  %v15507_v40 = vsub.f32 %v15505_v50, %v15506_v45  ;;  %v15513_v3 = vld [vmem:[#allocation49_spill] sm:$0xff]  ;;  %v15517_v28 = vld [vmem:[#allocation58_spill] sm:$0xff]  ;;  %v15519_v57 = vld [vmem:[#allocation96_spill] sm:$0xff] }
 0xe83   : > { %v9394_v29 = vsel %vm9314_vm2, %v15499_v46, %v15501_v21  ;;  %v9488_v16 = vadd.f32 %v9440_v41, %v15503_v34  ;;  %v15510_v32 = vsub.f32 %v15508_v54, %v15509_v61  ;;  %12159 = vmatprep.subr.bf16.mxu1 %v12158_v10  ;;  %v15515_v52 = vsub.f32 %v15513_v3, %v15514_v35  ;;  %v15516_v41 = vld [vmem:[#allocation47_spill] sm:$0xff]  ;;  %v15520_v51 = vld [vmem:[#allocation94_spill] sm:$0xff]  ;;  %v15525_v34 = vld [vmem:[#allocation116_spill] sm:$0xff] }
 0xe84   : > { %v9442_v26 = vmul.f32 0.8, %v9394_v29  ;;  %v9395_v39 = vsel %vm9315_vm5, %v15505_v50, %v15507_v40  ;;  %v9489_v62 = vadd.f32 %v9441_v33, %v15511_v20  ;;  %v12190_v18 = vpack.c.bf16 %v9486_v23, %v9485_v30  ;;  %12161 = vmatpush3.bf16.msra.mxu1 %v12158_v10  ;;  %v15521_v29 = vld [vmem:[#allocation53_spill] sm:$0xff]  ;;  %v15522_v10 = vld [vmem:[#allocation132_spill] sm:$0xff]  ;;  %v15527_v14 = vld [vmem:[#allocation118_spill] sm:$0xff] }
 0xe85   : > { %v9396_v49 = vsel %vm9316_vm4, %v15508_v54, %v15510_v32  ;;  %v12194_v58 = vpack.c.bf16 %v9488_v16, %v9487_v25  ;;  %v9443_v15 = vmul.f32 0.8, %v9395_v39  ;;  %v9397_v55 = vsel %vm9317_vm7, %v15513_v3, %v15515_v52  ;;  %v15524_v25 = vld [vmem:[#allocation51_spill] sm:$0xff]  ;;  %v15537_v3 = vld [vmem:[#allocation128_spill] sm:$0xff] }
 0xe86   : > { %v9444_v43 = vmul.f32 0.8, %v9396_v49  ;;  %v9490_v6 = vadd.f32 %v9442_v26, %v15512_v31  ;;  %v15518_v48 = vsub.f32 %v15516_v41, %v15517_v28  ;;  %v9445_v38 = vmul.f32 0.8, %v9397_v55  ;;  %12191 = vmatprep.subr.bf16.mxu0 %v12190_v18  ;;  %v15530_v40 = vld [vmem:[#allocation99_spill] sm:$0xff] }
 0xe87   : > { %12195 = vmatprep.subr.bf16.mxu1 %v12194_v58  ;;  %v9491_v17 = vadd.f32 %v9443_v15, %v15519_v57  ;;  %v15523_v24 = vsub.f32 %v15521_v29, %v15522_v10  ;;  %v15526_v16 = vsub.f32 %v15524_v25, %v15525_v34  ;;  %v15528_v23 = vsub.f32 %v15377_v36, %v15527_v14  ;;  %v15531_v32 = vld [vmem:[#allocation55_spill] sm:$0xff]  ;;  %v15534_v15 = vld [vmem:[#allocation86_spill] sm:$0xff] }
 0xe88   : > { %v9398_v30 = vsel %vm9318_vm6, %v15516_v41, %v15518_v48  ;;  %v9492_v46 = vadd.f32 %v9444_v43, %v15520_v51  ;;  %v12198_v21 = vpack.c.bf16 %v9490_v6, %v9489_v62  ;;  %12193 = vmatpush3.bf16.msra.mxu0 %v12190_v18  ;;  %11641 = vmatmul.mubr.f32.vlgmr.msra.gmra.mrb[118].mxu1 %v14903_v27  ;;  %v15536_v6 = vld [vmem:[#allocation137_spill] sm:$0xff]  ;;  %v9309_v55 = vmul.f32 0.2, %v15403_v11  ;;  %v15539_v41 = vld [vmem:[#allocation114_spill] sm:$0xff]  ;;  %v15540_v48 = vld [vmem:[#allocation100_spill] sm:$0xff] }
 0xe89   : > { %v9446_v47 = vmul.f32 0.8, %v9398_v30  ;;  %v9399_v13 = vsel %vm9319_vm8, %v15521_v29, %v15523_v24  ;;  %v9400_v33 = vsel %vm9320_vm9, %v15524_v25, %v15526_v16  ;;  %v9401_v26 = vsel %vm9321_vm10, %v15377_v36, %v15528_v23  ;;  %12197 = vmatpush3.bf16.msra.mxu1 %v12194_v58  ;;  %11643 = vmatprep.mubr.f32.mxu1 %v14921_v60  ;;  %v15541_v51 = vld [vmem:[#allocation4_spill] sm:$0xff]  ;;  %v15547_v34 = vld [vmem:[#allocation7_spill] sm:$0xff] }
 0xe8a   : > { %v12202_v50 = vpack.c.bf16 %v9492_v46, %v9491_v17  ;;  %v9493_v45 = vadd.f32 %v9445_v38, %v15529_v12  ;;  %v9447_v54 = vmul.f32 0.8, %v9399_v13  ;;  %v9448_v61 = vmul.f32 0.8, %v9400_v33  ;;  %12199 = vmatprep.subr.bf16.mxu1 %v12198_v21  ;;  %v15546_v13 = vld [vmem:[#allocation3_spill] sm:$0xff] }
 0xe8b   : > { %v9494_v39 = vadd.f32 %v9446_v47, %v15530_v40  ;;  %v15533_v36 = vsub.f32 %v15531_v32, %v15532_v0  ;;  %v9449_v20 = vmul.f32 0.8, %v9401_v26  ;;  %v9403_v58 = vsel %vm9323_vm13, %v15390_v63, %v9259_v37  ;;  %11679 = vmatmul.mubr.f32.vlgmr.msra.gmra.mrb[138].mxu0 %v14903_v27  ;;  %v15538_v37 = vld [vmem:[#allocation97_spill] sm:$0xff]  ;;  %v15549_v14 = vld [vmem:[#allocation11_spill] sm:$0xff]  ;;  %v15554_v40 = vld [vmem:[#allocation8_spill] sm:$0xff] }
 0xe8c   : > { %v9495_v43 = vadd.f32 %v9447_v54, %v15534_v15  ;;  %v15535_v31 = vsub.f32 %v15378_v2, %v14630_v22  ;;  %v9496_v9 = vadd.f32 %v9448_v61, %v15536_v6  ;;  %v9451_v19 = vmul.f32 0.8, %v9403_v58  ;;  %11681 = vmatprep.mubr.f32.mxu0 %v14921_v60  ;;  %11644 = vmatmul.mubr.f32.gmra.mrb[120].mxu1 %v9506_v56  ;;  %v15542_v47 = vld [vmem:[#allocation5_spill] sm:$0xff]  ;;  %v15558_v0 = vld [vmem:[#allocation10_spill] sm:$0xff] }
 0xe8d   : > { %v9402_v49 = vsel %vm9322_vm11, %v15531_v32, %v15533_v36  ;;  %v12206_v62 = vpack.c.bf16 %v9494_v39, %v9493_v45  ;;  %v9497_v35 = vadd.f32 %v9449_v20, %v15537_v3  ;;  %v9406_v4 = vsel %vm9326_vm1, %v15392_v53, %v9262_v44  ;;  %12201 = vmatpush3.bf16.msra.mxu1 %v12198_v21  ;;  %v15561_v20 = vld [vmem:[#allocation12_spill] sm:$0xff]  ;;  %v15562_v15 = vld [vmem:[#allocation13_spill] sm:$0xff] }
 0xe8e   : > { %v9450_v18 = vmul.f32 0.8, %v9402_v49  ;;  %v9404_v7 = vsel %vm9324_vm12, %v15378_v2, %v15535_v31  ;;  %v9405_v2 = vsel %vm9325_vm14, %v15403_v11, %v9261_v1  ;;  %v12210_v22 = vpack.c.bf16 %v9496_v9, %v9495_v43  ;;  %11716 = vmatprep.mubr.f32.mxu1 %v12440_v8  ;;  %12203 = vmatprep.subr.bf16.mxu1 %v12202_v50 }
 0xe8f   : > { %v9452_v63 = vmul.f32 0.8, %v9404_v7  ;;  %v9499_v28 = vadd.f32 %v9451_v19, %v15539_v41  ;;  %v9453_v57 = vmul.f32 0.8, %v9405_v2  ;;  %v9310_v11 = vmul.f32 0.2, %v15392_v53  ;;  %11682 = vmatmul.mubr.f32.gmra.mrb[140].mxu0 %v9506_v56 }
 0xe90   : > { %v9498_v52 = vadd.f32 %v9450_v18, %v15538_v37  ;;  %v9454_v42 = vmul.f32 0.8, %v9406_v4  ;;  %vm15543_vm1 = vcmask 130048  }
 0xe91   : > { %v9500_v30 = vadd.f32 %v9452_v63, %v15540_v48  ;;  %v9501_v44 = vadd.f32 %v9453_v57, %v9309_v55  ;;  %12205 = vmatpush3.bf16.msra.mxu1 %v12202_v50  ;;  %vm15545_vm0 = vmmov %vm15543_vm1  ;;  %v15552_v50 = vld [vmem:[#allocation6_spill] sm:$0xff] }
 0xe92   : > { %v12214_v59 = vpack.c.bf16 %v9498_v52, %v9497_v35  ;;  %v9502_v1 = vadd.f32 %v9454_v42, %v9310_v11  ;;  %12207 = vmatprep.subr.bf16.mxu1 %v12206_v62  ;;  %vm15548_vm15 = vmmov %vm15545_vm0 }
 0xe93   : > { %v12218_v5 = vpack.c.bf16 %v9500_v30, %v9499_v28  ;;  %vm15550_vm2 = vmmov %vm15545_vm0 }
 0xe94   : > { %v12222_v17 = vpack.c.bf16 %v9502_v1, %v9501_v44  ;;  %vm15551_vm3 = vmmov %vm15545_vm0 }
 0xe95   : > { %12209 = vmatpush3.bf16.msra.mxu1 %v12206_v62  ;;  %vm15553_vm4 = vmmov %vm15545_vm0 }
 0xe96   : > { %12211 = vmatprep.subr.bf16.mxu1 %v12210_v22  ;;  %vm15555_vm5 = vmmov %vm15545_vm0 }
 0xe97   : > { %vm15556_vm6 = vmmov %vm15545_vm0 }
 0xe98   : > { %vm15559_vm7 = vmmov %vm15545_vm0 }
 0xe99   : > { %12213 = vmatpush3.bf16.msra.mxu1 %v12210_v22  ;;  %vm15560_vm8 = vmmov %vm15545_vm0 }
 0xe9a   : > { %12215 = vmatprep.subr.bf16.mxu1 %v12214_v59  ;;  %vm15563_vm9 = vmmov %vm15545_vm0 }
 0xe9b   : > { %vm15564_vm10 = vmmov %vm15545_vm0 }
 0xe9d   : > { %12217 = vmatpush3.bf16.msra.mxu1 %v12214_v59 }
 0xe9e   : > { %12219 = vmatprep.subr.bf16.mxu1 %v12218_v5 }
 0xea1   : > { %12221 = vmatpush3.bf16.msra.mxu1 %v12218_v5 }
 0xea2   : > { %12223 = vmatprep.subr.bf16.mxu1 %v12222_v17 }
 0xea5   : > { %12225 = vmatpush3.bf16.msra.mxu1 %v12222_v17 }
 0xea8   : > { %11717 = vmatmul.mubr.f32.vlgmr.msra.gmra.mrb[122].mxu1 %v14903_v27 }
 0xea9   : > { %11719 = vmatprep.mubr.f32.mxu1 %v14921_v60  ;;  %v15544_v60 = vld [vmem:[#allocation2_spill] sm:$0xff] }
 0xeac   : > { %11720 = vmatmul.mubr.f32.gmra.mrb[124].mxu1 %v9506_v56  ;;  %v15557_v56 = vld [vmem:[#allocation9_spill] sm:$0xff] }
 0xf5b   : > { %v11642_v53 = vpop.f32.mrb[118].mxu1 }
 0xf5c   : > { %v9763_v46 = vadd.f32 %v11642_v53, %v15541_v51  ;;  %v9573_v38 = vpop.f32.mrb[119].mxu1 }
 0xf5d   : > { %v9762_v21 = vadd.f32 %v9573_v38, %v15542_v47 }
 0xf5e   : > { %9775 = vst.msk [vmem:[%s14999_s23 + $0x8] sm:$0xff] %vm15543_vm1, %v9763_v46  ;;  %v11680_v27 = vpop.f32.mrb[138].mxu0 }
 0xf5f   : > { %v9767_v29 = vadd.f32 %v11680_v27, %v15544_v60  ;;  %9774 = vst.msk [vmem:[%s14999_s23] sm:$0xff] %vm15545_vm0, %v9762_v21  ;;  %v9658_v10 = vpop.f32.mrb[139].mxu0  ;;  %v11645_v24 = vpop.f32.mrb[120].mxu1 }
 0xf60   : > { %v9766_v25 = vadd.f32 %v9658_v10, %v15546_v13  ;;  %v9765_v16 = vadd.f32 %v11645_v24, %v15547_v34  ;;  %v9583_v33 = vpop.f32.mrb[121].mxu1 }
 0xf61   : > { %9779 = vst.msk [vmem:[%s14999_s23 + $0x28] sm:$0xff] %vm15548_vm15, %v9767_v29  ;;  %v9764_v23 = vadd.f32 %v9583_v33, %v15549_v14 }
 0xf62   : > { %9778 = vst.msk [vmem:[%s14999_s23 + $0x20] sm:$0xff] %vm15550_vm2, %v9766_v25  ;;  %v11683_v26 = vpop.f32.mrb[140].mxu0 }
 0xf63   : > { %9777 = vst.msk [vmem:[%s14999_s23 + $0x18] sm:$0xff] %vm15551_vm3, %v9765_v16  ;;  %v9769_v12 = vadd.f32 %v11683_v26, %v15552_v50  ;;  %v9668_v45 = vpop.f32.mrb[141].mxu0 }
 0xf64   : > { %9776 = vst.msk [vmem:[%s14999_s23 + $0x10] sm:$0xff] %vm15553_vm4, %v9764_v23  ;;  %v9768_v39 = vadd.f32 %v9668_v45, %v15554_v40 }
 0xf65   : > { %9781 = vst.msk [vmem:[%s14999_s23 + $0x38] sm:$0xff] %vm15555_vm5, %v9769_v12 }
 0xf66   : > { %9780 = vst.msk [vmem:[%s14999_s23 + $0x30] sm:$0xff] %vm15556_vm6, %v9768_v39 }
 0xf7b   : > { %v11718_v54 = vpop.f32.mrb[122].mxu1 }
 0xf7c   : > { %v9771_v61 = vadd.f32 %v11718_v54, %v15557_v56  ;;  %v9743_v32 = vpop.f32.mrb[123].mxu1 }
 0xf7d   : > { %v9770_v36 = vadd.f32 %v9743_v32, %v15558_v0 }
 0xf7e   : > { %9783 = vst.msk [vmem:[%s14999_s23 + $0x48] sm:$0xff] %vm15559_vm7, %v9771_v61 }
 0xf7f   : > { %9782 = vst.msk [vmem:[%s14999_s23 + $0x40] sm:$0xff] %vm15560_vm8, %v9770_v36  ;;  %v11721_v49 = vpop.f32.mrb[124].mxu1 }
 0xf80   : > { %v9773_v58 = vadd.f32 %v11721_v49, %v15561_v20  ;;  %v9753_v62 = vpop.f32.mrb[125].mxu1 }
 0xf81   : > { %v9772_v43 = vadd.f32 %v9753_v62, %v15562_v15 }
 0xf82   : > { %9785 = vst.msk [vmem:[%s14999_s23 + $0x58] sm:$0xff] %vm15563_vm9, %v9773_v58 }
 0xf83   : > { %9784 = vst.msk [vmem:[%s14999_s23 + $0x50] sm:$0xff] %vm15564_vm10, %v9772_v43 }
 0xf84 PF: > { %s24_s15 = sadd.s32 1, %s12463_s15   ;;  %s15565_s29 = smov %s12459_s30 }
 0xf85   : > { %p21_p5 = scmp.ge.s32.totalorder %s24_s15, 4   ;;  %s15566_s30 = smov %s15568_s16 }
 0xf87   :  { %23 = sbr.rel (!%p21_p5) target bundleno = 2 (0x2), region = 112 }

</bundles_post_ra>
